<compile_context>
chip_gen: v7x
topology: tpu7x:2x2x1
jax: 0.10.0
libtpu: 0.0.40
codegen_flags: <defaults>
</compile_context>

<pallas_src>
import functools

import jax
import jax.numpy as jnp
from jax import lax
from jax.experimental import pallas as pl
from jax.experimental.pallas import tpu as pltpu


LANE = 128
_VMEM_LIMIT_BYTES = 48 * 1024 * 1024    # < v7x 64 MiB physical, fine on v5e/v6e
_VMEM_BUDGET_BYTES = 24 * 1024 * 1024   # per-grid-step working-set target


def _round_up(x, m):
    return (x + m - 1) // m * m


def _pick_batch_block(B, rows_per_batch, bytes_per_batch, *, target_rows=256,
                      vmem_budget=_VMEM_BUDGET_BYTES):
    """How many batch elements to fold into one grid step (matmul M dim).

    Goals (perf review): (a) M = bb*rows_per_batch >= ~256 so the 256-row MXU
    (128 on v5e) is filled, (b) keep >= 2 grid steps when possible so both v7x
    TensorCores get work on the "parallel" axis, (c) stay in the VMEM budget.
    """
    divisors = [d for d in range(1, B + 1) if B % d == 0]
    cands = [d for d in divisors if B // d >= 2] or [1]
    cands = [d for d in cands if d * bytes_per_batch <= vmem_budget] or cands[:1]
    for d in cands:
        if d * rows_per_batch >= target_rows:
            return d
    return cands[-1]


# ----------------------------------------------------------------------------
# Fused NINBlock kernel:
#   relu(conv3x3 s2 p1) -> relu(conv1x1) -> relu(conv1x1)
#   [-> global avg pool -> final 1x1 conv]          (last block only)
# all inside ONE pallas_call; intermediates never touch HBM.
# ----------------------------------------------------------------------------
def _make_block_kernel(bb, Ho, Wo, C, C_pad, fuse_pool):
    S = Ho * Wo
    M = bb * S

    def kernel(xs_ref, w3_ref, b3_ref, w1a_ref, b1a_ref, w1b_ref, b1b_ref,
               *rest):
        if fuse_pool:
            wo_ref, bo_ref, o_ref, col_ref = rest
        else:
            o_ref, col_ref = rest

        # --- 1) im2col.  The input is parity-decomposed:
        #     xs[b, 2*(kh%2)+(kw%2), u, v, :] == x_pad[b, 2u+(kh%2), 2v+(kw%2), :]
        # so every tap below is a UNIT-STRIDE static slice.  Taps land at lane
        # offsets that are multiples of C_pad (128-aligned).
        if C_pad != C:
            # Zero the padded lane groups so the matmul never reads
            # uninitialized VMEM (0 * NaN = NaN), even though the matching
            # weight rows are zero.
            for t in range(9):
                col_ref[:, t * C_pad + C:(t + 1) * C_pad] = jnp.zeros(
                    (M, C_pad - C), col_ref.dtype)
        for b in range(bb):
            r0 = b * S
            for kh in range(3):
                for kw in range(3):
                    p = (kh % 2) * 2 + (kw % 2)
                    dh, dw = kh // 2, kw // 2
                    t = kh * 3 + kw
                    tap = xs_ref[b, p, dh:dh + Ho, dw:dw + Wo, :]   # (Ho, Wo, C)
                    col_ref[r0:r0 + S, t * C_pad:t * C_pad + C] = (
                        tap.reshape(S, C))

        # --- 2) 3x3 conv == ONE deep (M, 9*C_pad) x (9*C_pad, C) matmul.
        y = jnp.dot(col_ref[...], w3_ref[...],
                    preferred_element_type=jnp.float32)
        y = jnp.maximum(y + b3_ref[...], 0.0)

        # --- 3) conv1a (1x1) + ReLU.
        y = jnp.dot(y.astype(w1a_ref.dtype), w1a_ref[...],
                    preferred_element_type=jnp.float32)
        y = jnp.maximum(y + b1a_ref[...], 0.0)

        # --- 4) conv1b (1x1) + ReLU.
        y = jnp.dot(y.astype(w1b_ref.dtype), w1b_ref[...],
                    preferred_element_type=jnp.float32)
        y = jnp.maximum(y + b1b_ref[...], 0.0)

        if fuse_pool:
            # --- 5) global average pool + final 1x1 conv (linear ops commute),
            # so the last activation never round-trips HBM either.
            pooled = jnp.mean(y.reshape(bb, S, C), axis=1)          # (bb, C) f32
            out = jnp.dot(pooled.astype(wo_ref.dtype), wo_ref[...],
                          preferred_element_type=jnp.float32)
            o_ref[:, 0, :] = (out + bo_ref[...]).astype(o_ref.dtype)
        else:
            o_ref[...] = y.reshape(bb, S, C).astype(o_ref.dtype)
        # nn.Dropout(p=0) is the identity.
        # TODO(synk): training-mode dropout (p>0) would use pltpu.prng_* here.

    return kernel


def nin_block_fused(xs, w3_im2col, b3, w1a, b1a, w1b, b1b, *,
                    pool_weights=None, act_dtype=jnp.bfloat16):
    """One fused NINBlock (see _make_block_kernel).

    xs: (B, 4, Hq, Wq, C) parity-decomposed zero-padded input (_pad_parity).
    w3_im2col: (9*C_pad, C); rows past C in each C_pad group are zero.
    Returns (B, Ho*Wo, C) activations, or (B, 1, out_ch) pooled logits
    when pool_weights=(wo, bo) is given (last block).
    """
    B, _, Hq, Wq, C = xs.shape
    Ho, Wo = Hq - 1, Wq - 1
    S = Ho * Wo
    C_pad = w3_im2col.shape[0] // 9
    fuse_pool = pool_weights is not None

    # Per-batch-element VMEM estimate: double-buffered input block + im2col
    # scratch + double-buffered output block (all bf16).
    bytes_per_batch = (2 * 4 * Hq * Wq * C * 2
                       + S * 9 * C_pad * 2
                       + 2 * S * C * 2)
    bb = _pick_batch_block(B, S, bytes_per_batch)
    grid = (B // bb,)

    in_specs = [
        pl.BlockSpec((bb, 4, Hq, Wq, C), lambda i: (i, 0, 0, 0, 0)),
        pl.BlockSpec((9 * C_pad, C), lambda i: (0, 0)),
        pl.BlockSpec((1, C), lambda i: (0, 0)),
        pl.BlockSpec((C, C), lambda i: (0, 0)),
        pl.BlockSpec((1, C), lambda i: (0, 0)),
        pl.BlockSpec((C, C), lambda i: (0, 0)),
        pl.BlockSpec((1, C), lambda i: (0, 0)),
    ]
    args = [xs, w3_im2col, b3, w1a, b1a, w1b, b1b]

    if fuse_pool:
        wo, bo = pool_weights
        out_ch = wo.shape[1]
        in_specs += [pl.BlockSpec((C, out_ch), lambda i: (0, 0)),
                     pl.BlockSpec((1, out_ch), lambda i: (0, 0))]
        args += [wo, bo]
        out_shape = jax.ShapeDtypeStruct((B, 1, out_ch), jnp.float32)
        out_spec = pl.BlockSpec((bb, 1, out_ch), lambda i: (i, 0, 0))
    else:
        out_shape = jax.ShapeDtypeStruct((B, S, C), act_dtype)
        out_spec = pl.BlockSpec((bb, S, C), lambda i: (i, 0, 0))

    return pl.pallas_call(
        _make_block_kernel(bb, Ho, Wo, C, C_pad, fuse_pool),
        out_shape=out_shape,
        grid_spec=pltpu.PrefetchScalarGridSpec(
            num_scalar_prefetch=0,
            grid=grid,
            in_specs=in_specs,
            out_specs=out_spec,
            scratch_shapes=[pltpu.VMEM((bb * S, 9 * C_pad), act_dtype)]),
        compiler_params=pltpu.CompilerParams(
            dimension_semantics=("parallel",),
            vmem_limit_bytes=_VMEM_LIMIT_BYTES),
    )(*args)


# ----------------------------------------------------------------------------
# XLA-side layout plumbing.
# ----------------------------------------------------------------------------
def _pad_parity(x_nhwc):
    """(B, H, W, C) -> (B, 4, H//2+1, W//2+1, C) zero-padded, parity-decomposed:
       out[b, 2*r + s, u, v, c] == pad(x, 1)[b, 2u + r, 2v + s, c]
    so every stride-2 tap in the kernel becomes a unit-stride slice."""
    B, H, W, C = x_nhwc.shape
    # TODO(synk): odd H/W (allowed by Conv2d(stride=2, padding=1)) needs an
    # extra one-sided pad here; even sizes only for now.
    assert H % 2 == 0 and W % 2 == 0, "even spatial sizes required"
    Hq, Wq = H // 2 + 1, W // 2 + 1
    xp = jnp.pad(x_nhwc, ((0, 0), (1, 1), (1, 1), (0, 0)))
    xs = xp.reshape(B, Hq, 2, Wq, 2, C).transpose(0, 2, 4, 1, 3, 5)
    return xs.reshape(B, 4, Hq, Wq, C)


def _prep_block_weights(blk, C, C_pad, dtype):
    """PyTorch OIHW weights -> kernel layouts (im2col-major 3x3, (Cin,Cout) 1x1)."""
    w3, b3 = blk["conv3"]                                  # (C, C, 3, 3), (C,)
    w3t = jnp.transpose(w3, (2, 3, 1, 0))                  # (3, 3, Cin, Cout)
    w3t = jnp.pad(w3t, ((0, 0), (0, 0), (0, C_pad - C), (0, 0)))
    w3t = w3t.reshape(9 * C_pad, C).astype(dtype)

    def w1(w):                                             # (Cout, Cin, 1, 1) -> (Cin, Cout)
        return jnp.transpose(w.reshape(w.shape[0], w.shape[1]), (1, 0)).astype(dtype)

    w1a, b1a = blk["conv1a"]
    w1b, b1b = blk["conv1b"]
    return (w3t, b3.reshape(1, C).astype(jnp.float32),
            w1(w1a), b1a.reshape(1, C).astype(jnp.float32),
            w1(w1b), b1b.reshape(1, C).astype(jnp.float32))


# ----------------------------------------------------------------------------
# NIN forward (matches the PyTorch module's forward).
# ----------------------------------------------------------------------------
def nin_forward(x_nchw, params, *, is_flatten=False, act_dtype=jnp.bfloat16):
    """x_nchw: (B, in_ch, H, W) -> (B, out_ch, 1, 1) (or (B, out_ch) if is_flatten)."""
    B = x_nchw.shape[0]

    # Stem 1x1 conv (+ReLU): Cin is tiny (e.g. 4), so a Pallas call is pure
    # launch overhead -- one fused XLA einsum with the NCHW->NHWC transpose
    # (perf-review item), then hand bf16 activations to the fused block kernels.
    w_stem, b_stem = params["chan"]
    C = w_stem.shape[0]
    C_pad = _round_up(C, LANE)
    h = jnp.einsum("bchw,oc->bhwo", x_nchw, w_stem.reshape(C, w_stem.shape[1]),
                   preferred_element_type=jnp.float32)
    h = jnp.maximum(h + b_stem, 0.0).astype(act_dtype)     # (B, H, W, C)

    wo, bo = params["out"]
    out_ch = wo.shape[0]
    pool_w = jnp.transpose(wo.reshape(out_ch, C), (1, 0)).astype(act_dtype)
    pool_b = bo.reshape(1, out_ch).astype(jnp.float32)

    n_blocks = len(params["blocks"])
    if n_blocks == 0:   # degenerate depth=0: pool + final 1x1 directly in XLA
        pooled = jnp.mean(h.astype(jnp.float32), axis=(1, 2))
        y = pooled @ pool_w.astype(jnp.float32) + pool_b
    else:
        for bi, blk in enumerate(params["blocks"]):
            xs = _pad_parity(h)                             # (B, 4, Hq, Wq, C)
            Ho, Wo = xs.shape[2] - 1, xs.shape[3] - 1
            wargs = _prep_block_weights(blk, C, C_pad, act_dtype)
            last = bi == n_blocks - 1
            out = nin_block_fused(
                xs, *wargs,
                pool_weights=(pool_w, pool_b) if last else None,
                act_dtype=act_dtype)
            if last:
                y = out.reshape(B, out_ch)                  # (B, out_ch) f32
            else:
                h = out.reshape(B, Ho, Wo, C)

    if is_flatten:
        return y
    return y.reshape(B, out_ch, 1, 1)


# ----------------------------------------------------------------------------
# Deterministic parameter init (PyTorch OIHW layout) and pure-XLA reference.
# ----------------------------------------------------------------------------
def _conv_params(key, cout, cin, k):
    wk, bk = jax.random.split(key)
    scale = (cin * k * k) ** -0.5
    w = jax.random.normal(wk, (cout, cin, k, k), jnp.float32) * scale
    b = jax.random.normal(bk, (cout,), jnp.float32) * scale
    return w, b


def init_nin_params(key, in_channels, out_channels, depth=2, width=2):
    chan = 96 * width
    keys = jax.random.split(key, 2 + 3 * depth)
    params = {"chan": _conv_params(keys[0], chan, in_channels, 1), "blocks": []}
    for d in range(depth):
        params["blocks"].append({
            "conv3": _conv_params(keys[1 + 3 * d], chan, chan, 3),
            "conv1a": _conv_params(keys[2 + 3 * d], chan, chan, 1),
            "conv1b": _conv_params(keys[3 + 3 * d], chan, chan, 1),
        })
    params["out"] = _conv_params(keys[1 + 3 * depth], out_channels, chan, 1)
    return params


def nin_reference(x, params):
    def conv(h, wb, stride, pad):
        w, b = wb
        y = lax.conv_general_dilated(
            h, w, (stride, stride), ((pad, pad), (pad, pad)),
            dimension_numbers=("NCHW", "OIHW", "NCHW"))
        return y + b[None, :, None, None]

    h = jnp.maximum(conv(x, params["chan"], 1, 0), 0.0)
    for blk in params["blocks"]:
        h = jnp.maximum(conv(h, blk["conv3"], 2, 1), 0.0)
        h = jnp.maximum(conv(h, blk["conv1a"], 1, 0), 0.0)
        h = jnp.maximum(conv(h, blk["conv1b"], 1, 0), 0.0)
    h = conv(h, params["out"], 1, 0)
    return jnp.mean(h, axis=(2, 3), keepdims=True)          # adaptive_avg_pool2d((1,1))


if __name__ == "__main__":
    B, in_channels, out_channels, H, W = 2, 4, 8, 16, 16
    depth, width = 2, 2                                      # module defaults -> chan = 192

    key = jax.random.PRNGKey(0)
    kx, kp = jax.random.split(key)
    x = jax.random.normal(kx, (B, in_channels, H, W), jnp.float32)
    params = init_nin_params(kp, in_channels, out_channels, depth=depth, width=width)

    fwd = jax.jit(functools.partial(nin_forward, is_flatten=False))
    out = jax.block_until_ready(fwd(x, params))

    ref = nin_reference(x, params)

    assert out.shape == (B, out_channels, 1, 1), out.shape
    max_err = float(jnp.max(jnp.abs(out - ref)))
    # bf16 matmul operands (f32 accumulate) across 8 conv layers -> ~1e-2 scale.
    assert jnp.allclose(out, ref, atol=2e-2, rtol=2e-2), max_err
    print("KERNEL_OK")
</pallas_src>

<mosaic_0001>
module attributes {stable_mosaic.version = 11 : i64} {
  func.func @kernel(%arg0: i32, %arg1: memref<1x4x9x9x192xbf16, #tpu.memory_space<vmem>>, %arg2: memref<2304x192xbf16, #tpu.memory_space<vmem>>, %arg3: memref<1x192xf32, #tpu.memory_space<vmem>>, %arg4: memref<192x192xbf16, #tpu.memory_space<vmem>>, %arg5: memref<1x192xf32, #tpu.memory_space<vmem>>, %arg6: memref<192x192xbf16, #tpu.memory_space<vmem>>, %arg7: memref<1x192xf32, #tpu.memory_space<vmem>>, %arg8: memref<1x64x192xbf16, #tpu.memory_space<vmem>>, %arg9: memref<64x2304xbf16, #tpu.memory_space<vmem>>) attributes {dimension_semantics = [#tpu.dimension_semantics<parallel>], iteration_bounds = array<i64: 2>, scalar_prefetch = 0 : i64, scratch_operands = 1 : i64, tpu.core_type = #tpu.core_type<tc>, window_params = [{transform_indices = @transform_0, window_bounds = array<i64: 1, 4, 9, 9, 192>}, {pipeline_mode = #tpu.pipeline_mode<synchronous>, transform_indices = @transform_1, window_bounds = array<i64: 2304, 192>}, {pipeline_mode = #tpu.pipeline_mode<synchronous>, transform_indices = @transform_2, window_bounds = array<i64: 1, 192>}, {pipeline_mode = #tpu.pipeline_mode<synchronous>, transform_indices = @transform_3, window_bounds = array<i64: 192, 192>}, {pipeline_mode = #tpu.pipeline_mode<synchronous>, transform_indices = @transform_4, window_bounds = array<i64: 1, 192>}, {pipeline_mode = #tpu.pipeline_mode<synchronous>, transform_indices = @transform_5, window_bounds = array<i64: 192, 192>}, {pipeline_mode = #tpu.pipeline_mode<synchronous>, transform_indices = @transform_6, window_bounds = array<i64: 1, 192>}, {transform_indices = @transform_7, window_bounds = array<i64: 1, 64, 192>}]} {
    %cst = arith.constant 0.000000e+00 : bf16
    %0 = vector.broadcast %cst : bf16 to vector<64x64xbf16>
    %c0 = arith.constant 0 : index
    %c192 = arith.constant 192 : index
    %1 = vector.load %arg9[%c0, %c192] : memref<64x2304xbf16, #tpu.memory_space<vmem>>, vector<64x64xbf16>
    tpu.vector_store %arg9[%c0, %c192], %0 {strides = array<i32>} : memref<64x2304xbf16, #tpu.memory_space<vmem>>, vector<64x64xbf16>,
    %cst_0 = arith.constant 0.000000e+00 : bf16
    %2 = vector.broadcast %cst_0 : bf16 to vector<64x64xbf16>
    %c0_1 = arith.constant 0 : index
    %c448 = arith.constant 448 : index
    %3 = vector.load %arg9[%c0_1, %c448] : memref<64x2304xbf16, #tpu.memory_space<vmem>>, vector<64x64xbf16>
    tpu.vector_store %arg9[%c0_1, %c448], %2 {strides = array<i32>} : memref<64x2304xbf16, #tpu.memory_space<vmem>>, vector<64x64xbf16>,
    %cst_2 = arith.constant 0.000000e+00 : bf16
    %4 = vector.broadcast %cst_2 : bf16 to vector<64x64xbf16>
    %c0_3 = arith.constant 0 : index
    %c704 = arith.constant 704 : index
    %5 = vector.load %arg9[%c0_3, %c704] : memref<64x2304xbf16, #tpu.memory_space<vmem>>, vector<64x64xbf16>
    tpu.vector_store %arg9[%c0_3, %c704], %4 {strides = array<i32>} : memref<64x2304xbf16, #tpu.memory_space<vmem>>, vector<64x64xbf16>,
    %cst_4 = arith.constant 0.000000e+00 : bf16
    %6 = vector.broadcast %cst_4 : bf16 to vector<64x64xbf16>
    %c0_5 = arith.constant 0 : index
    %c960 = arith.constant 960 : index
    %7 = vector.load %arg9[%c0_5, %c960] : memref<64x2304xbf16, #tpu.memory_space<vmem>>, vector<64x64xbf16>
    tpu.vector_store %arg9[%c0_5, %c960], %6 {strides = array<i32>} : memref<64x2304xbf16, #tpu.memory_space<vmem>>, vector<64x64xbf16>,
    %cst_6 = arith.constant 0.000000e+00 : bf16
    %8 = vector.broadcast %cst_6 : bf16 to vector<64x64xbf16>
    %c0_7 = arith.constant 0 : index
    %c1216 = arith.constant 1216 : index
    %9 = vector.load %arg9[%c0_7, %c1216] : memref<64x2304xbf16, #tpu.memory_space<vmem>>, vector<64x64xbf16>
    tpu.vector_store %arg9[%c0_7, %c1216], %8 {strides = array<i32>} : memref<64x2304xbf16, #tpu.memory_space<vmem>>, vector<64x64xbf16>,
    %cst_8 = arith.constant 0.000000e+00 : bf16
    %10 = vector.broadcast %cst_8 : bf16 to vector<64x64xbf16>
    %c0_9 = arith.constant 0 : index
    %c1472 = arith.constant 1472 : index
    %11 = vector.load %arg9[%c0_9, %c1472] : memref<64x2304xbf16, #tpu.memory_space<vmem>>, vector<64x64xbf16>
    tpu.vector_store %arg9[%c0_9, %c1472], %10 {strides = array<i32>} : memref<64x2304xbf16, #tpu.memory_space<vmem>>, vector<64x64xbf16>,
    %cst_10 = arith.constant 0.000000e+00 : bf16
    %12 = vector.broadcast %cst_10 : bf16 to vector<64x64xbf16>
    %c0_11 = arith.constant 0 : index
    %c1728 = arith.constant 1728 : index
    %13 = vector.load %arg9[%c0_11, %c1728] : memref<64x2304xbf16, #tpu.memory_space<vmem>>, vector<64x64xbf16>
    tpu.vector_store %arg9[%c0_11, %c1728], %12 {strides = array<i32>} : memref<64x2304xbf16, #tpu.memory_space<vmem>>, vector<64x64xbf16>,
    %cst_12 = arith.constant 0.000000e+00 : bf16
    %14 = vector.broadcast %cst_12 : bf16 to vector<64x64xbf16>
    %c0_13 = arith.constant 0 : index
    %c1984 = arith.constant 1984 : index
    %15 = vector.load %arg9[%c0_13, %c1984] : memref<64x2304xbf16, #tpu.memory_space<vmem>>, vector<64x64xbf16>
    tpu.vector_store %arg9[%c0_13, %c1984], %14 {strides = array<i32>} : memref<64x2304xbf16, #tpu.memory_space<vmem>>, vector<64x64xbf16>,
    %cst_14 = arith.constant 0.000000e+00 : bf16
    %16 = vector.broadcast %cst_14 : bf16 to vector<64x64xbf16>
    %c0_15 = arith.constant 0 : index
    %c2240 = arith.constant 2240 : index
    %17 = vector.load %arg9[%c0_15, %c2240] : memref<64x2304xbf16, #tpu.memory_space<vmem>>, vector<64x64xbf16>
    tpu.vector_store %arg9[%c0_15, %c2240], %16 {strides = array<i32>} : memref<64x2304xbf16, #tpu.memory_space<vmem>>, vector<64x64xbf16>,
    %c0_16 = arith.constant 0 : index
    %c0_17 = arith.constant 0 : index
    %c0_18 = arith.constant 0 : index
    %c0_19 = arith.constant 0 : index
    %c0_20 = arith.constant 0 : index
    %18 = vector.load %arg1[%c0_16, %c0_17, %c0_18, %c0_19, %c0_20] : memref<1x4x9x9x192xbf16, #tpu.memory_space<vmem>>, vector<1x1x8x8x192xbf16>
    %19 = vector.shape_cast %18 : vector<1x1x8x8x192xbf16> to vector<8x8x192xbf16>
    %20 = vector.shape_cast %19 : vector<8x8x192xbf16> to vector<64x192xbf16>
    %c0_21 = arith.constant 0 : index
    %c0_22 = arith.constant 0 : index
    %21 = vector.load %arg9[%c0_21, %c0_22] : memref<64x2304xbf16, #tpu.memory_space<vmem>>, vector<64x192xbf16>
    tpu.vector_store %arg9[%c0_21, %c0_22], %20 {strides = array<i32>} : memref<64x2304xbf16, #tpu.memory_space<vmem>>, vector<64x192xbf16>,
    %c0_23 = arith.constant 0 : index
    %c1 = arith.constant 1 : index
    %c0_24 = arith.constant 0 : index
    %c0_25 = arith.constant 0 : index
    %c0_26 = arith.constant 0 : index
    %22 = vector.load %arg1[%c0_23, %c1, %c0_24, %c0_25, %c0_26] : memref<1x4x9x9x192xbf16, #tpu.memory_space<vmem>>, vector<1x1x8x8x192xbf16>
    %23 = vector.shape_cast %22 : vector<1x1x8x8x192xbf16> to vector<8x8x192xbf16>
    %24 = vector.shape_cast %23 : vector<8x8x192xbf16> to vector<64x192xbf16>
    %c0_27 = arith.constant 0 : index
    %c256 = arith.constant 256 : index
    %25 = vector.load %arg9[%c0_27, %c256] : memref<64x2304xbf16, #tpu.memory_space<vmem>>, vector<64x192xbf16>
    tpu.vector_store %arg9[%c0_27, %c256], %24 {strides = array<i32>} : memref<64x2304xbf16, #tpu.memory_space<vmem>>, vector<64x192xbf16>,
    %c0_28 = arith.constant 0 : index
    %c0_29 = arith.constant 0 : index
    %c0_30 = arith.constant 0 : index
    %c1_31 = arith.constant 1 : index
    %c0_32 = arith.constant 0 : index
    %26 = vector.load %arg1[%c0_28, %c0_29, %c0_30, %c1_31, %c0_32] : memref<1x4x9x9x192xbf16, #tpu.memory_space<vmem>>, vector<1x1x8x8x192xbf16>
    %27 = vector.shape_cast %26 : vector<1x1x8x8x192xbf16> to vector<8x8x192xbf16>
    %28 = vector.shape_cast %27 : vector<8x8x192xbf16> to vector<64x192xbf16>
    %c0_33 = arith.constant 0 : index
    %c512 = arith.constant 512 : index
    %29 = vector.load %arg9[%c0_33, %c512] : memref<64x2304xbf16, #tpu.memory_space<vmem>>, vector<64x192xbf16>
    tpu.vector_store %arg9[%c0_33, %c512], %28 {strides = array<i32>} : memref<64x2304xbf16, #tpu.memory_space<vmem>>, vector<64x192xbf16>,
    %c0_34 = arith.constant 0 : index
    %c2 = arith.constant 2 : index
    %c0_35 = arith.constant 0 : index
    %c0_36 = arith.constant 0 : index
    %c0_37 = arith.constant 0 : index
    %30 = vector.load %arg1[%c0_34, %c2, %c0_35, %c0_36, %c0_37] : memref<1x4x9x9x192xbf16, #tpu.memory_space<vmem>>, vector<1x1x8x8x192xbf16>
    %31 = vector.shape_cast %30 : vector<1x1x8x8x192xbf16> to vector<8x8x192xbf16>
    %32 = vector.shape_cast %31 : vector<8x8x192xbf16> to vector<64x192xbf16>
    %c0_38 = arith.constant 0 : index
    %c768 = arith.constant 768 : index
    %33 = vector.load %arg9[%c0_38, %c768] : memref<64x2304xbf16, #tpu.memory_space<vmem>>, vector<64x192xbf16>
    tpu.vector_store %arg9[%c0_38, %c768], %32 {strides = array<i32>} : memref<64x2304xbf16, #tpu.memory_space<vmem>>, vector<64x192xbf16>,
    %c0_39 = arith.constant 0 : index
    %c3 = arith.constant 3 : index
    %c0_40 = arith.constant 0 : index
    %c0_41 = arith.constant 0 : index
    %c0_42 = arith.constant 0 : index
    %34 = vector.load %arg1[%c0_39, %c3, %c0_40, %c0_41, %c0_42] : memref<1x4x9x9x192xbf16, #tpu.memory_space<vmem>>, vector<1x1x8x8x192xbf16>
    %35 = vector.shape_cast %34 : vector<1x1x8x8x192xbf16> to vector<8x8x192xbf16>
    %36 = vector.shape_cast %35 : vector<8x8x192xbf16> to vector<64x192xbf16>
    %c0_43 = arith.constant 0 : index
    %c1024 = arith.constant 1024 : index
    %37 = vector.load %arg9[%c0_43, %c1024] : memref<64x2304xbf16, #tpu.memory_space<vmem>>, vector<64x192xbf16>
    tpu.vector_store %arg9[%c0_43, %c1024], %36 {strides = array<i32>} : memref<64x2304xbf16, #tpu.memory_space<vmem>>, vector<64x192xbf16>,
    %c0_44 = arith.constant 0 : index
    %c2_45 = arith.constant 2 : index
    %c0_46 = arith.constant 0 : index
    %c1_47 = arith.constant 1 : index
    %c0_48 = arith.constant 0 : index
    %38 = vector.load %arg1[%c0_44, %c2_45, %c0_46, %c1_47, %c0_48] : memref<1x4x9x9x192xbf16, #tpu.memory_space<vmem>>, vector<1x1x8x8x192xbf16>
    %39 = vector.shape_cast %38 : vector<1x1x8x8x192xbf16> to vector<8x8x192xbf16>
    %40 = vector.shape_cast %39 : vector<8x8x192xbf16> to vector<64x192xbf16>
    %c0_49 = arith.constant 0 : index
    %c1280 = arith.constant 1280 : index
    %41 = vector.load %arg9[%c0_49, %c1280] : memref<64x2304xbf16, #tpu.memory_space<vmem>>, vector<64x192xbf16>
    tpu.vector_store %arg9[%c0_49, %c1280], %40 {strides = array<i32>} : memref<64x2304xbf16, #tpu.memory_space<vmem>>, vector<64x192xbf16>,
    %c0_50 = arith.constant 0 : index
    %c0_51 = arith.constant 0 : index
    %c1_52 = arith.constant 1 : index
    %c0_53 = arith.constant 0 : index
    %c0_54 = arith.constant 0 : index
    %42 = vector.load %arg1[%c0_50, %c0_51, %c1_52, %c0_53, %c0_54] : memref<1x4x9x9x192xbf16, #tpu.memory_space<vmem>>, vector<1x1x8x8x192xbf16>
    %43 = vector.shape_cast %42 : vector<1x1x8x8x192xbf16> to vector<8x8x192xbf16>
    %44 = vector.shape_cast %43 : vector<8x8x192xbf16> to vector<64x192xbf16>
    %c0_55 = arith.constant 0 : index
    %c1536 = arith.constant 1536 : index
    %45 = vector.load %arg9[%c0_55, %c1536] : memref<64x2304xbf16, #tpu.memory_space<vmem>>, vector<64x192xbf16>
    tpu.vector_store %arg9[%c0_55, %c1536], %44 {strides = array<i32>} : memref<64x2304xbf16, #tpu.memory_space<vmem>>, vector<64x192xbf16>,
    %c0_56 = arith.constant 0 : index
    %c1_57 = arith.constant 1 : index
    %c1_58 = arith.constant 1 : index
    %c0_59 = arith.constant 0 : index
    %c0_60 = arith.constant 0 : index
    %46 = vector.load %arg1[%c0_56, %c1_57, %c1_58, %c0_59, %c0_60] : memref<1x4x9x9x192xbf16, #tpu.memory_space<vmem>>, vector<1x1x8x8x192xbf16>
    %47 = vector.shape_cast %46 : vector<1x1x8x8x192xbf16> to vector<8x8x192xbf16>
    %48 = vector.shape_cast %47 : vector<8x8x192xbf16> to vector<64x192xbf16>
    %c0_61 = arith.constant 0 : index
    %c1792 = arith.constant 1792 : index
    %49 = vector.load %arg9[%c0_61, %c1792] : memref<64x2304xbf16, #tpu.memory_space<vmem>>, vector<64x192xbf16>
    tpu.vector_store %arg9[%c0_61, %c1792], %48 {strides = array<i32>} : memref<64x2304xbf16, #tpu.memory_space<vmem>>, vector<64x192xbf16>,
    %c0_62 = arith.constant 0 : index
    %c0_63 = arith.constant 0 : index
    %c1_64 = arith.constant 1 : index
    %c1_65 = arith.constant 1 : index
    %c0_66 = arith.constant 0 : index
    %50 = vector.load %arg1[%c0_62, %c0_63, %c1_64, %c1_65, %c0_66] : memref<1x4x9x9x192xbf16, #tpu.memory_space<vmem>>, vector<1x1x8x8x192xbf16>
    %51 = vector.shape_cast %50 : vector<1x1x8x8x192xbf16> to vector<8x8x192xbf16>
    %52 = vector.shape_cast %51 : vector<8x8x192xbf16> to vector<64x192xbf16>
    %c0_67 = arith.constant 0 : index
    %c2048 = arith.constant 2048 : index
    %53 = vector.load %arg9[%c0_67, %c2048] : memref<64x2304xbf16, #tpu.memory_space<vmem>>, vector<64x192xbf16>
    tpu.vector_store %arg9[%c0_67, %c2048], %52 {strides = array<i32>} : memref<64x2304xbf16, #tpu.memory_space<vmem>>, vector<64x192xbf16>,
    %c0_68 = arith.constant 0 : index
    %c0_69 = arith.constant 0 : index
    %54 = vector.load %arg9[%c0_68, %c0_69] : memref<64x2304xbf16, #tpu.memory_space<vmem>>, vector<64x2304xbf16>
    %c0_70 = arith.constant 0 : index
    %c0_71 = arith.constant 0 : index
    %55 = vector.load %arg2[%c0_70, %c0_71] : memref<2304x192xbf16, #tpu.memory_space<vmem>>, vector<2304x192xbf16>
    %cst_72 = arith.constant dense<0.000000e+00> : vector<64x192xf32>
    %56 = tpu.matmul %54, %55, %cst_72 {dimension_numbers = #tpu.dot_dimension_numbers<[1], [0], [0], [1], [0, 0, 1, 1], [], []>} : vector<64x2304xbf16>, vector<2304x192xbf16>, vector<64x192xf32> -> vector<64x192xf32>
    %c0_73 = arith.constant 0 : index
    %c0_74 = arith.constant 0 : index
    %57 = vector.load %arg3[%c0_73, %c0_74] : memref<1x192xf32, #tpu.memory_space<vmem>>, vector<1x192xf32>
    %58 = vector.broadcast %57 : vector<1x192xf32> to vector<64x192xf32>
    %59 = arith.addf %56, %58 : vector<64x192xf32>
    %cst_75 = arith.constant 0.000000e+00 : f32
    %60 = vector.broadcast %cst_75 : f32 to vector<64x192xf32>
    %61 = arith.maximumf %59, %60 : vector<64x192xf32>
    %62 = arith.truncf %61 : vector<64x192xf32> to vector<64x192xbf16>
    %c0_76 = arith.constant 0 : index
    %c0_77 = arith.constant 0 : index
    %63 = vector.load %arg4[%c0_76, %c0_77] : memref<192x192xbf16, #tpu.memory_space<vmem>>, vector<192x192xbf16>
    %cst_78 = arith.constant dense<0.000000e+00> : vector<64x192xf32>
    %64 = tpu.matmul %62, %63, %cst_78 {dimension_numbers = #tpu.dot_dimension_numbers<[1], [0], [0], [1], [0, 0, 1, 1], [], []>} : vector<64x192xbf16>, vector<192x192xbf16>, vector<64x192xf32> -> vector<64x192xf32>
    %c0_79 = arith.constant 0 : index
    %c0_80 = arith.constant 0 : index
    %65 = vector.load %arg5[%c0_79, %c0_80] : memref<1x192xf32, #tpu.memory_space<vmem>>, vector<1x192xf32>
    %66 = vector.broadcast %65 : vector<1x192xf32> to vector<64x192xf32>
    %67 = arith.addf %64, %66 : vector<64x192xf32>
    %cst_81 = arith.constant 0.000000e+00 : f32
    %68 = vector.broadcast %cst_81 : f32 to vector<64x192xf32>
    %69 = arith.maximumf %67, %68 : vector<64x192xf32>
    %70 = arith.truncf %69 : vector<64x192xf32> to vector<64x192xbf16>
    %c0_82 = arith.constant 0 : index
    %c0_83 = arith.constant 0 : index
    %71 = vector.load %arg6[%c0_82, %c0_83] : memref<192x192xbf16, #tpu.memory_space<vmem>>, vector<192x192xbf16>
    %cst_84 = arith.constant dense<0.000000e+00> : vector<64x192xf32>
    %72 = tpu.matmul %70, %71, %cst_84 {dimension_numbers = #tpu.dot_dimension_numbers<[1], [0], [0], [1], [0, 0, 1, 1], [], []>} : vector<64x192xbf16>, vector<192x192xbf16>, vector<64x192xf32> -> vector<64x192xf32>
    %c0_85 = arith.constant 0 : index
    %c0_86 = arith.constant 0 : index
    %73 = vector.load %arg7[%c0_85, %c0_86] : memref<1x192xf32, #tpu.memory_space<vmem>>, vector<1x192xf32>
    %74 = vector.broadcast %73 : vector<1x192xf32> to vector<64x192xf32>
    %75 = arith.addf %72, %74 : vector<64x192xf32>
    %cst_87 = arith.constant 0.000000e+00 : f32
    %76 = vector.broadcast %cst_87 : f32 to vector<64x192xf32>
    %77 = arith.maximumf %75, %76 : vector<64x192xf32>
    %78 = vector.shape_cast %77 : vector<64x192xf32> to vector<1x64x192xf32>
    %79 = arith.truncf %78 : vector<1x64x192xf32> to vector<1x64x192xbf16>
    %c0_88 = arith.constant 0 : index
    %c0_89 = arith.constant 0 : index
    %c0_90 = arith.constant 0 : index
    %80 = vector.load %arg8[%c0_88, %c0_89, %c0_90] : memref<1x64x192xbf16, #tpu.memory_space<vmem>>, vector<1x64x192xbf16>
    tpu.vector_store %arg8[%c0_88, %c0_89, %c0_90], %79 {strides = array<i32>} : memref<1x64x192xbf16, #tpu.memory_space<vmem>>, vector<1x64x192xbf16>,
    return
  }
  func.func @transform_0(%arg0: i32) -> (i32, i32, i32, i32, i32) {
    %c0_i32 = arith.constant 0 : i32
    %c0_i32_0 = arith.constant 0 : i32
    %c0_i32_1 = arith.constant 0 : i32
    %c0_i32_2 = arith.constant 0 : i32
    %c0_i32_3 = arith.constant 0 : i32
    return %arg0, %c0_i32, %c0_i32_0, %c0_i32_1, %c0_i32_2 : i32, i32, i32, i32, i32
  }
  func.func @transform_1(%arg0: i32) -> (i32, i32) {
    %c0_i32 = arith.constant 0 : i32
    %c0_i32_0 = arith.constant 0 : i32
    %c0_i32_1 = arith.constant 0 : i32
    return %c0_i32, %c0_i32_0 : i32, i32
  }
  func.func @transform_2(%arg0: i32) -> (i32, i32) {
    %c0_i32 = arith.constant 0 : i32
    %c0_i32_0 = arith.constant 0 : i32
    %c0_i32_1 = arith.constant 0 : i32
    return %c0_i32, %c0_i32_0 : i32, i32
  }
  func.func @transform_3(%arg0: i32) -> (i32, i32) {
    %c0_i32 = arith.constant 0 : i32
    %c0_i32_0 = arith.constant 0 : i32
    %c0_i32_1 = arith.constant 0 : i32
    return %c0_i32, %c0_i32_0 : i32, i32
  }
  func.func @transform_4(%arg0: i32) -> (i32, i32) {
    %c0_i32 = arith.constant 0 : i32
    %c0_i32_0 = arith.constant 0 : i32
    %c0_i32_1 = arith.constant 0 : i32
    return %c0_i32, %c0_i32_0 : i32, i32
  }
  func.func @transform_5(%arg0: i32) -> (i32, i32) {
    %c0_i32 = arith.constant 0 : i32
    %c0_i32_0 = arith.constant 0 : i32
    %c0_i32_1 = arith.constant 0 : i32
    return %c0_i32, %c0_i32_0 : i32, i32
  }
  func.func @transform_6(%arg0: i32) -> (i32, i32) {
    %c0_i32 = arith.constant 0 : i32
    %c0_i32_0 = arith.constant 0 : i32
    %c0_i32_1 = arith.constant 0 : i32
    return %c0_i32, %c0_i32_0 : i32, i32
  }
  func.func @transform_7(%arg0: i32) -> (i32, i32, i32) {
    %c0_i32 = arith.constant 0 : i32
    %c0_i32_0 = arith.constant 0 : i32
    %c0_i32_1 = arith.constant 0 : i32
    return %arg0, %c0_i32, %c0_i32_0 : i32, i32, i32
  }
}

module attributes {stable_mosaic.version = 11 : i64} {
  func.func @kernel(%arg0: i32, %arg1: memref<1x4x5x5x192xbf16, #tpu.memory_space<vmem>>, %arg2: memref<2304x192xbf16, #tpu.memory_space<vmem>>, %arg3: memref<1x192xf32, #tpu.memory_space<vmem>>, %arg4: memref<192x192xbf16, #tpu.memory_space<vmem>>, %arg5: memref<1x192xf32, #tpu.memory_space<vmem>>, %arg6: memref<192x192xbf16, #tpu.memory_space<vmem>>, %arg7: memref<1x192xf32, #tpu.memory_space<vmem>>, %arg8: memref<192x8xbf16, #tpu.memory_space<vmem>>, %arg9: memref<1x8xf32, #tpu.memory_space<vmem>>, %arg10: memref<1x1x8xf32, #tpu.memory_space<vmem>>, %arg11: memref<16x2304xbf16, #tpu.memory_space<vmem>>) attributes {dimension_semantics = [#tpu.dimension_semantics<parallel>], iteration_bounds = array<i64: 2>, scalar_prefetch = 0 : i64, scratch_operands = 1 : i64, tpu.core_type = #tpu.core_type<tc>, window_params = [{transform_indices = @transform_0, window_bounds = array<i64: 1, 4, 5, 5, 192>}, {pipeline_mode = #tpu.pipeline_mode<synchronous>, transform_indices = @transform_1, window_bounds = array<i64: 2304, 192>}, {pipeline_mode = #tpu.pipeline_mode<synchronous>, transform_indices = @transform_2, window_bounds = array<i64: 1, 192>}, {pipeline_mode = #tpu.pipeline_mode<synchronous>, transform_indices = @transform_3, window_bounds = array<i64: 192, 192>}, {pipeline_mode = #tpu.pipeline_mode<synchronous>, transform_indices = @transform_4, window_bounds = array<i64: 1, 192>}, {pipeline_mode = #tpu.pipeline_mode<synchronous>, transform_indices = @transform_5, window_bounds = array<i64: 192, 192>}, {pipeline_mode = #tpu.pipeline_mode<synchronous>, transform_indices = @transform_6, window_bounds = array<i64: 1, 192>}, {pipeline_mode = #tpu.pipeline_mode<synchronous>, transform_indices = @transform_7, window_bounds = array<i64: 192, 8>}, {pipeline_mode = #tpu.pipeline_mode<synchronous>, transform_indices = @transform_8, window_bounds = array<i64: 1, 8>}, {transform_indices = @transform_9, window_bounds = array<i64: 1, 1, 8>}]} {
    %cst = arith.constant 0.000000e+00 : bf16
    %0 = vector.broadcast %cst : bf16 to vector<16x64xbf16>
    %c0 = arith.constant 0 : index
    %c192 = arith.constant 192 : index
    %1 = vector.load %arg11[%c0, %c192] : memref<16x2304xbf16, #tpu.memory_space<vmem>>, vector<16x64xbf16>
    tpu.vector_store %arg11[%c0, %c192], %0 {strides = array<i32>} : memref<16x2304xbf16, #tpu.memory_space<vmem>>, vector<16x64xbf16>,
    %cst_0 = arith.constant 0.000000e+00 : bf16
    %2 = vector.broadcast %cst_0 : bf16 to vector<16x64xbf16>
    %c0_1 = arith.constant 0 : index
    %c448 = arith.constant 448 : index
    %3 = vector.load %arg11[%c0_1, %c448] : memref<16x2304xbf16, #tpu.memory_space<vmem>>, vector<16x64xbf16>
    tpu.vector_store %arg11[%c0_1, %c448], %2 {strides = array<i32>} : memref<16x2304xbf16, #tpu.memory_space<vmem>>, vector<16x64xbf16>,
    %cst_2 = arith.constant 0.000000e+00 : bf16
    %4 = vector.broadcast %cst_2 : bf16 to vector<16x64xbf16>
    %c0_3 = arith.constant 0 : index
    %c704 = arith.constant 704 : index
    %5 = vector.load %arg11[%c0_3, %c704] : memref<16x2304xbf16, #tpu.memory_space<vmem>>, vector<16x64xbf16>
    tpu.vector_store %arg11[%c0_3, %c704], %4 {strides = array<i32>} : memref<16x2304xbf16, #tpu.memory_space<vmem>>, vector<16x64xbf16>,
    %cst_4 = arith.constant 0.000000e+00 : bf16
    %6 = vector.broadcast %cst_4 : bf16 to vector<16x64xbf16>
    %c0_5 = arith.constant 0 : index
    %c960 = arith.constant 960 : index
    %7 = vector.load %arg11[%c0_5, %c960] : memref<16x2304xbf16, #tpu.memory_space<vmem>>, vector<16x64xbf16>
    tpu.vector_store %arg11[%c0_5, %c960], %6 {strides = array<i32>} : memref<16x2304xbf16, #tpu.memory_space<vmem>>, vector<16x64xbf16>,
    %cst_6 = arith.constant 0.000000e+00 : bf16
    %8 = vector.broadcast %cst_6 : bf16 to vector<16x64xbf16>
    %c0_7 = arith.constant 0 : index
    %c1216 = arith.constant 1216 : index
    %9 = vector.load %arg11[%c0_7, %c1216] : memref<16x2304xbf16, #tpu.memory_space<vmem>>, vector<16x64xbf16>
    tpu.vector_store %arg11[%c0_7, %c1216], %8 {strides = array<i32>} : memref<16x2304xbf16, #tpu.memory_space<vmem>>, vector<16x64xbf16>,
    %cst_8 = arith.constant 0.000000e+00 : bf16
    %10 = vector.broadcast %cst_8 : bf16 to vector<16x64xbf16>
    %c0_9 = arith.constant 0 : index
    %c1472 = arith.constant 1472 : index
    %11 = vector.load %arg11[%c0_9, %c1472] : memref<16x2304xbf16, #tpu.memory_space<vmem>>, vector<16x64xbf16>
    tpu.vector_store %arg11[%c0_9, %c1472], %10 {strides = array<i32>} : memref<16x2304xbf16, #tpu.memory_space<vmem>>, vector<16x64xbf16>,
    %cst_10 = arith.constant 0.000000e+00 : bf16
    %12 = vector.broadcast %cst_10 : bf16 to vector<16x64xbf16>
    %c0_11 = arith.constant 0 : index
    %c1728 = arith.constant 1728 : index
    %13 = vector.load %arg11[%c0_11, %c1728] : memref<16x2304xbf16, #tpu.memory_space<vmem>>, vector<16x64xbf16>
    tpu.vector_store %arg11[%c0_11, %c1728], %12 {strides = array<i32>} : memref<16x2304xbf16, #tpu.memory_space<vmem>>, vector<16x64xbf16>,
    %cst_12 = arith.constant 0.000000e+00 : bf16
    %14 = vector.broadcast %cst_12 : bf16 to vector<16x64xbf16>
    %c0_13 = arith.constant 0 : index
    %c1984 = arith.constant 1984 : index
    %15 = vector.load %arg11[%c0_13, %c1984] : memref<16x2304xbf16, #tpu.memory_space<vmem>>, vector<16x64xbf16>
    tpu.vector_store %arg11[%c0_13, %c1984], %14 {strides = array<i32>} : memref<16x2304xbf16, #tpu.memory_space<vmem>>, vector<16x64xbf16>,
    %cst_14 = arith.constant 0.000000e+00 : bf16
    %16 = vector.broadcast %cst_14 : bf16 to vector<16x64xbf16>
    %c0_15 = arith.constant 0 : index
    %c2240 = arith.constant 2240 : index
    %17 = vector.load %arg11[%c0_15, %c2240] : memref<16x2304xbf16, #tpu.memory_space<vmem>>, vector<16x64xbf16>
    tpu.vector_store %arg11[%c0_15, %c2240], %16 {strides = array<i32>} : memref<16x2304xbf16, #tpu.memory_space<vmem>>, vector<16x64xbf16>,
    %c0_16 = arith.constant 0 : index
    %c0_17 = arith.constant 0 : index
    %c0_18 = arith.constant 0 : index
    %c0_19 = arith.constant 0 : index
    %c0_20 = arith.constant 0 : index
    %18 = vector.load %arg1[%c0_16, %c0_17, %c0_18, %c0_19, %c0_20] : memref<1x4x5x5x192xbf16, #tpu.memory_space<vmem>>, vector<1x1x4x4x192xbf16>
    %19 = vector.shape_cast %18 : vector<1x1x4x4x192xbf16> to vector<4x4x192xbf16>
    %20 = vector.shape_cast %19 : vector<4x4x192xbf16> to vector<16x192xbf16>
    %c0_21 = arith.constant 0 : index
    %c0_22 = arith.constant 0 : index
    %21 = vector.load %arg11[%c0_21, %c0_22] : memref<16x2304xbf16, #tpu.memory_space<vmem>>, vector<16x192xbf16>
    tpu.vector_store %arg11[%c0_21, %c0_22], %20 {strides = array<i32>} : memref<16x2304xbf16, #tpu.memory_space<vmem>>, vector<16x192xbf16>,
    %c0_23 = arith.constant 0 : index
    %c1 = arith.constant 1 : index
    %c0_24 = arith.constant 0 : index
    %c0_25 = arith.constant 0 : index
    %c0_26 = arith.constant 0 : index
    %22 = vector.load %arg1[%c0_23, %c1, %c0_24, %c0_25, %c0_26] : memref<1x4x5x5x192xbf16, #tpu.memory_space<vmem>>, vector<1x1x4x4x192xbf16>
    %23 = vector.shape_cast %22 : vector<1x1x4x4x192xbf16> to vector<4x4x192xbf16>
    %24 = vector.shape_cast %23 : vector<4x4x192xbf16> to vector<16x192xbf16>
    %c0_27 = arith.constant 0 : index
    %c256 = arith.constant 256 : index
    %25 = vector.load %arg11[%c0_27, %c256] : memref<16x2304xbf16, #tpu.memory_space<vmem>>, vector<16x192xbf16>
    tpu.vector_store %arg11[%c0_27, %c256], %24 {strides = array<i32>} : memref<16x2304xbf16, #tpu.memory_space<vmem>>, vector<16x192xbf16>,
    %c0_28 = arith.constant 0 : index
    %c0_29 = arith.constant 0 : index
    %c0_30 = arith.constant 0 : index
    %c1_31 = arith.constant 1 : index
    %c0_32 = arith.constant 0 : index
    %26 = vector.load %arg1[%c0_28, %c0_29, %c0_30, %c1_31, %c0_32] : memref<1x4x5x5x192xbf16, #tpu.memory_space<vmem>>, vector<1x1x4x4x192xbf16>
    %27 = vector.shape_cast %26 : vector<1x1x4x4x192xbf16> to vector<4x4x192xbf16>
    %28 = vector.shape_cast %27 : vector<4x4x192xbf16> to vector<16x192xbf16>
    %c0_33 = arith.constant 0 : index
    %c512 = arith.constant 512 : index
    %29 = vector.load %arg11[%c0_33, %c512] : memref<16x2304xbf16, #tpu.memory_space<vmem>>, vector<16x192xbf16>
    tpu.vector_store %arg11[%c0_33, %c512], %28 {strides = array<i32>} : memref<16x2304xbf16, #tpu.memory_space<vmem>>, vector<16x192xbf16>,
    %c0_34 = arith.constant 0 : index
    %c2 = arith.constant 2 : index
    %c0_35 = arith.constant 0 : index
    %c0_36 = arith.constant 0 : index
    %c0_37 = arith.constant 0 : index
    %30 = vector.load %arg1[%c0_34, %c2, %c0_35, %c0_36, %c0_37] : memref<1x4x5x5x192xbf16, #tpu.memory_space<vmem>>, vector<1x1x4x4x192xbf16>
    %31 = vector.shape_cast %30 : vector<1x1x4x4x192xbf16> to vector<4x4x192xbf16>
    %32 = vector.shape_cast %31 : vector<4x4x192xbf16> to vector<16x192xbf16>
    %c0_38 = arith.constant 0 : index
    %c768 = arith.constant 768 : index
    %33 = vector.load %arg11[%c0_38, %c768] : memref<16x2304xbf16, #tpu.memory_space<vmem>>, vector<16x192xbf16>
    tpu.vector_store %arg11[%c0_38, %c768], %32 {strides = array<i32>} : memref<16x2304xbf16, #tpu.memory_space<vmem>>, vector<16x192xbf16>,
    %c0_39 = arith.constant 0 : index
    %c3 = arith.constant 3 : index
    %c0_40 = arith.constant 0 : index
    %c0_41 = arith.constant 0 : index
    %c0_42 = arith.constant 0 : index
    %34 = vector.load %arg1[%c0_39, %c3, %c0_40, %c0_41, %c0_42] : memref<1x4x5x5x192xbf16, #tpu.memory_space<vmem>>, vector<1x1x4x4x192xbf16>
    %35 = vector.shape_cast %34 : vector<1x1x4x4x192xbf16> to vector<4x4x192xbf16>
    %36 = vector.shape_cast %35 : vector<4x4x192xbf16> to vector<16x192xbf16>
    %c0_43 = arith.constant 0 : index
    %c1024 = arith.constant 1024 : index
    %37 = vector.load %arg11[%c0_43, %c1024] : memref<16x2304xbf16, #tpu.memory_space<vmem>>, vector<16x192xbf16>
    tpu.vector_store %arg11[%c0_43, %c1024], %36 {strides = array<i32>} : memref<16x2304xbf16, #tpu.memory_space<vmem>>, vector<16x192xbf16>,
    %c0_44 = arith.constant 0 : index
    %c2_45 = arith.constant 2 : index
    %c0_46 = arith.constant 0 : index
    %c1_47 = arith.constant 1 : index
    %c0_48 = arith.constant 0 : index
    %38 = vector.load %arg1[%c0_44, %c2_45, %c0_46, %c1_47, %c0_48] : memref<1x4x5x5x192xbf16, #tpu.memory_space<vmem>>, vector<1x1x4x4x192xbf16>
    %39 = vector.shape_cast %38 : vector<1x1x4x4x192xbf16> to vector<4x4x192xbf16>
    %40 = vector.shape_cast %39 : vector<4x4x192xbf16> to vector<16x192xbf16>
    %c0_49 = arith.constant 0 : index
    %c1280 = arith.constant 1280 : index
    %41 = vector.load %arg11[%c0_49, %c1280] : memref<16x2304xbf16, #tpu.memory_space<vmem>>, vector<16x192xbf16>
    tpu.vector_store %arg11[%c0_49, %c1280], %40 {strides = array<i32>} : memref<16x2304xbf16, #tpu.memory_space<vmem>>, vector<16x192xbf16>,
    %c0_50 = arith.constant 0 : index
    %c0_51 = arith.constant 0 : index
    %c1_52 = arith.constant 1 : index
    %c0_53 = arith.constant 0 : index
    %c0_54 = arith.constant 0 : index
    %42 = vector.load %arg1[%c0_50, %c0_51, %c1_52, %c0_53, %c0_54] : memref<1x4x5x5x192xbf16, #tpu.memory_space<vmem>>, vector<1x1x4x4x192xbf16>
    %43 = vector.shape_cast %42 : vector<1x1x4x4x192xbf16> to vector<4x4x192xbf16>
    %44 = vector.shape_cast %43 : vector<4x4x192xbf16> to vector<16x192xbf16>
    %c0_55 = arith.constant 0 : index
    %c1536 = arith.constant 1536 : index
    %45 = vector.load %arg11[%c0_55, %c1536] : memref<16x2304xbf16, #tpu.memory_space<vmem>>, vector<16x192xbf16>
    tpu.vector_store %arg11[%c0_55, %c1536], %44 {strides = array<i32>} : memref<16x2304xbf16, #tpu.memory_space<vmem>>, vector<16x192xbf16>,
    %c0_56 = arith.constant 0 : index
    %c1_57 = arith.constant 1 : index
    %c1_58 = arith.constant 1 : index
    %c0_59 = arith.constant 0 : index
    %c0_60 = arith.constant 0 : index
    %46 = vector.load %arg1[%c0_56, %c1_57, %c1_58, %c0_59, %c0_60] : memref<1x4x5x5x192xbf16, #tpu.memory_space<vmem>>, vector<1x1x4x4x192xbf16>
    %47 = vector.shape_cast %46 : vector<1x1x4x4x192xbf16> to vector<4x4x192xbf16>
    %48 = vector.shape_cast %47 : vector<4x4x192xbf16> to vector<16x192xbf16>
    %c0_61 = arith.constant 0 : index
    %c1792 = arith.constant 1792 : index
    %49 = vector.load %arg11[%c0_61, %c1792] : memref<16x2304xbf16, #tpu.memory_space<vmem>>, vector<16x192xbf16>
    tpu.vector_store %arg11[%c0_61, %c1792], %48 {strides = array<i32>} : memref<16x2304xbf16, #tpu.memory_space<vmem>>, vector<16x192xbf16>,
    %c0_62 = arith.constant 0 : index
    %c0_63 = arith.constant 0 : index
    %c1_64 = arith.constant 1 : index
    %c1_65 = arith.constant 1 : index
    %c0_66 = arith.constant 0 : index
    %50 = vector.load %arg1[%c0_62, %c0_63, %c1_64, %c1_65, %c0_66] : memref<1x4x5x5x192xbf16, #tpu.memory_space<vmem>>, vector<1x1x4x4x192xbf16>
    %51 = vector.shape_cast %50 : vector<1x1x4x4x192xbf16> to vector<4x4x192xbf16>
    %52 = vector.shape_cast %51 : vector<4x4x192xbf16> to vector<16x192xbf16>
    %c0_67 = arith.constant 0 : index
    %c2048 = arith.constant 2048 : index
    %53 = vector.load %arg11[%c0_67, %c2048] : memref<16x2304xbf16, #tpu.memory_space<vmem>>, vector<16x192xbf16>
    tpu.vector_store %arg11[%c0_67, %c2048], %52 {strides = array<i32>} : memref<16x2304xbf16, #tpu.memory_space<vmem>>, vector<16x192xbf16>,
    %c0_68 = arith.constant 0 : index
    %c0_69 = arith.constant 0 : index
    %54 = vector.load %arg11[%c0_68, %c0_69] : memref<16x2304xbf16, #tpu.memory_space<vmem>>, vector<16x2304xbf16>
    %c0_70 = arith.constant 0 : index
    %c0_71 = arith.constant 0 : index
    %55 = vector.load %arg2[%c0_70, %c0_71] : memref<2304x192xbf16, #tpu.memory_space<vmem>>, vector<2304x192xbf16>
    %cst_72 = arith.constant dense<0.000000e+00> : vector<16x192xf32>
    %56 = tpu.matmul %54, %55, %cst_72 {dimension_numbers = #tpu.dot_dimension_numbers<[1], [0], [0], [1], [0, 0, 1, 1], [], []>} : vector<16x2304xbf16>, vector<2304x192xbf16>, vector<16x192xf32> -> vector<16x192xf32>
    %c0_73 = arith.constant 0 : index
    %c0_74 = arith.constant 0 : index
    %57 = vector.load %arg3[%c0_73, %c0_74] : memref<1x192xf32, #tpu.memory_space<vmem>>, vector<1x192xf32>
    %58 = vector.broadcast %57 : vector<1x192xf32> to vector<16x192xf32>
    %59 = arith.addf %56, %58 : vector<16x192xf32>
    %cst_75 = arith.constant 0.000000e+00 : f32
    %60 = vector.broadcast %cst_75 : f32 to vector<16x192xf32>
    %61 = arith.maximumf %59, %60 : vector<16x192xf32>
    %62 = arith.truncf %61 : vector<16x192xf32> to vector<16x192xbf16>
    %c0_76 = arith.constant 0 : index
    %c0_77 = arith.constant 0 : index
    %63 = vector.load %arg4[%c0_76, %c0_77] : memref<192x192xbf16, #tpu.memory_space<vmem>>, vector<192x192xbf16>
    %cst_78 = arith.constant dense<0.000000e+00> : vector<16x192xf32>
    %64 = tpu.matmul %62, %63, %cst_78 {dimension_numbers = #tpu.dot_dimension_numbers<[1], [0], [0], [1], [0, 0, 1, 1], [], []>} : vector<16x192xbf16>, vector<192x192xbf16>, vector<16x192xf32> -> vector<16x192xf32>
    %c0_79 = arith.constant 0 : index
    %c0_80 = arith.constant 0 : index
    %65 = vector.load %arg5[%c0_79, %c0_80] : memref<1x192xf32, #tpu.memory_space<vmem>>, vector<1x192xf32>
    %66 = vector.broadcast %65 : vector<1x192xf32> to vector<16x192xf32>
    %67 = arith.addf %64, %66 : vector<16x192xf32>
    %cst_81 = arith.constant 0.000000e+00 : f32
    %68 = vector.broadcast %cst_81 : f32 to vector<16x192xf32>
    %69 = arith.maximumf %67, %68 : vector<16x192xf32>
    %70 = arith.truncf %69 : vector<16x192xf32> to vector<16x192xbf16>
    %c0_82 = arith.constant 0 : index
    %c0_83 = arith.constant 0 : index
    %71 = vector.load %arg6[%c0_82, %c0_83] : memref<192x192xbf16, #tpu.memory_space<vmem>>, vector<192x192xbf16>
    %cst_84 = arith.constant dense<0.000000e+00> : vector<16x192xf32>
    %72 = tpu.matmul %70, %71, %cst_84 {dimension_numbers = #tpu.dot_dimension_numbers<[1], [0], [0], [1], [0, 0, 1, 1], [], []>} : vector<16x192xbf16>, vector<192x192xbf16>, vector<16x192xf32> -> vector<16x192xf32>
    %c0_85 = arith.constant 0 : index
    %c0_86 = arith.constant 0 : index
    %73 = vector.load %arg7[%c0_85, %c0_86] : memref<1x192xf32, #tpu.memory_space<vmem>>, vector<1x192xf32>
    %74 = vector.broadcast %73 : vector<1x192xf32> to vector<16x192xf32>
    %75 = arith.addf %72, %74 : vector<16x192xf32>
    %cst_87 = arith.constant 0.000000e+00 : f32
    %76 = vector.broadcast %cst_87 : f32 to vector<16x192xf32>
    %77 = arith.maximumf %75, %76 : vector<16x192xf32>
    %78 = vector.shape_cast %77 : vector<16x192xf32> to vector<1x16x192xf32>
    %cst_88 = arith.constant dense<0.000000e+00> : vector<1x192xf32>
    %79 = vector.multi_reduction <add>, %78, %cst_88 [1] : vector<1x16x192xf32> to vector<1x192xf32>
    %cst_89 = arith.constant 1.600000e+01 : f32
    %80 = vector.broadcast %cst_89 : f32 to vector<1x192xf32>
    %81 = arith.divf %79, %80 : vector<1x192xf32>
    %82 = arith.truncf %81 : vector<1x192xf32> to vector<1x192xbf16>
    %c0_90 = arith.constant 0 : index
    %c0_91 = arith.constant 0 : index
    %83 = vector.load %arg8[%c0_90, %c0_91] : memref<192x8xbf16, #tpu.memory_space<vmem>>, vector<192x8xbf16>
    %cst_92 = arith.constant dense<0.000000e+00> : vector<1x8xf32>
    %84 = tpu.matmul %82, %83, %cst_92 {dimension_numbers = #tpu.dot_dimension_numbers<[1], [0], [0], [1], [0, 0, 1, 1], [], []>} : vector<1x192xbf16>, vector<192x8xbf16>, vector<1x8xf32> -> vector<1x8xf32>
    %c0_93 = arith.constant 0 : index
    %c0_94 = arith.constant 0 : index
    %85 = vector.load %arg9[%c0_93, %c0_94] : memref<1x8xf32, #tpu.memory_space<vmem>>, vector<1x8xf32>
    %86 = arith.addf %84, %85 : vector<1x8xf32>
    %c0_95 = arith.constant 0 : index
    %c0_96 = arith.constant 0 : index
    %c0_97 = arith.constant 0 : index
    %87 = vector.load %arg10[%c0_95, %c0_96, %c0_97] : memref<1x1x8xf32, #tpu.memory_space<vmem>>, vector<1x1x8xf32>
    %88 = vector.shape_cast %87 : vector<1x1x8xf32> to vector<1x8xf32>
    %89 = vector.shape_cast %86 : vector<1x8xf32> to vector<1x1x8xf32>
    tpu.vector_store %arg10[%c0_95, %c0_96, %c0_97], %89 {strides = array<i32>} : memref<1x1x8xf32, #tpu.memory_space<vmem>>, vector<1x1x8xf32>,
    return
  }
  func.func @transform_0(%arg0: i32) -> (i32, i32, i32, i32, i32) {
    %c0_i32 = arith.constant 0 : i32
    %c0_i32_0 = arith.constant 0 : i32
    %c0_i32_1 = arith.constant 0 : i32
    %c0_i32_2 = arith.constant 0 : i32
    %c0_i32_3 = arith.constant 0 : i32
    return %arg0, %c0_i32, %c0_i32_0, %c0_i32_1, %c0_i32_2 : i32, i32, i32, i32, i32
  }
  func.func @transform_1(%arg0: i32) -> (i32, i32) {
    %c0_i32 = arith.constant 0 : i32
    %c0_i32_0 = arith.constant 0 : i32
    %c0_i32_1 = arith.constant 0 : i32
    return %c0_i32, %c0_i32_0 : i32, i32
  }
  func.func @transform_2(%arg0: i32) -> (i32, i32) {
    %c0_i32 = arith.constant 0 : i32
    %c0_i32_0 = arith.constant 0 : i32
    %c0_i32_1 = arith.constant 0 : i32
    return %c0_i32, %c0_i32_0 : i32, i32
  }
  func.func @transform_3(%arg0: i32) -> (i32, i32) {
    %c0_i32 = arith.constant 0 : i32
    %c0_i32_0 = arith.constant 0 : i32
    %c0_i32_1 = arith.constant 0 : i32
    return %c0_i32, %c0_i32_0 : i32, i32
  }
  func.func @transform_4(%arg0: i32) -> (i32, i32) {
    %c0_i32 = arith.constant 0 : i32
    %c0_i32_0 = arith.constant 0 : i32
    %c0_i32_1 = arith.constant 0 : i32
    return %c0_i32, %c0_i32_0 : i32, i32
  }
  func.func @transform_5(%arg0: i32) -> (i32, i32) {
    %c0_i32 = arith.constant 0 : i32
    %c0_i32_0 = arith.constant 0 : i32
    %c0_i32_1 = arith.constant 0 : i32
    return %c0_i32, %c0_i32_0 : i32, i32
  }
  func.func @transform_6(%arg0: i32) -> (i32, i32) {
    %c0_i32 = arith.constant 0 : i32
    %c0_i32_0 = arith.constant 0 : i32
    %c0_i32_1 = arith.constant 0 : i32
    return %c0_i32, %c0_i32_0 : i32, i32
  }
  func.func @transform_7(%arg0: i32) -> (i32, i32) {
    %c0_i32 = arith.constant 0 : i32
    %c0_i32_0 = arith.constant 0 : i32
    %c0_i32_1 = arith.constant 0 : i32
    return %c0_i32, %c0_i32_0 : i32, i32
  }
  func.func @transform_8(%arg0: i32) -> (i32, i32) {
    %c0_i32 = arith.constant 0 : i32
    %c0_i32_0 = arith.constant 0 : i32
    %c0_i32_1 = arith.constant 0 : i32
    return %c0_i32, %c0_i32_0 : i32, i32
  }
  func.func @transform_9(%arg0: i32) -> (i32, i32, i32) {
    %c0_i32 = arith.constant 0 : i32
    %c0_i32_0 = arith.constant 0 : i32
    %c0_i32_1 = arith.constant 0 : i32
    return %arg0, %c0_i32, %c0_i32_0 : i32, i32, i32
  }
}

</mosaic_0001>

<bundles_post_ra>
// kernel: nin_forward.2
= control target key start
LH: loop header
LB: loop body
LE: loop exit
PB: predicated region body
PF: predicated region fallthrough
CT: control target
= control target key end

     0   :  { %s5580_s24 = smov 0   ;;  %s7294_s0 = inlined_call_operand.vmem [shape: bf16[2,4,9,9,192], index: 0, kind: input, shape index: {}]   ;;  %s7295_s1 = inlined_call_operand.vmem [shape: bf16[2304,192], index: 1, kind: input, shape index: {}]   ;;  %s7296_s2 = inlined_call_operand.vmem [shape: f32[1,192], index: 2, kind: input, shape index: {}]   ;;  %s7297_s3 = inlined_call_operand.vmem [shape: bf16[192,192], index: 3, kind: input, shape index: {}]   ;;  %s7298_s4 = inlined_call_operand.vmem [shape: f32[1,192], index: 4, kind: input, shape index: {}]   ;;  %s7299_s5 = inlined_call_operand.vmem [shape: bf16[192,192], index: 5, kind: input, shape index: {}]   ;;  %s7300_s6 = inlined_call_operand.vmem [shape: f32[1,192], index: 6, kind: input, shape index: {}]   ;;  %s7301_s7 = inlined_call_operand.vmem [shape: bf16[2,64,192], index: 7, kind: output, shape index: {}]  }
   0x1 LB: > { %s4295_s25 = sadd.s32 4294967295, %s5537_s24   ;;  %p4299_p0 = scmp.ge.s32.totalorder %s5537_s24, 1  ;;  %s5537_s24 = sphi %s5580_s24, %s17_s24  }
   0x2   : > { %p237_p1 = scmp.lt.s32.totalorder %s5537_s24, 3 }
   0x4   : > { %p238_p2 = pnand %p4299_p0, %p237_p1 }
   0x5   : > { %v4988_v0 = vld [vmem:[%s7295_s1 + $0x4] ss:$8 sps:$4 sm:$0xff] (!%p238_p2)   ;;  %vm280_vm0 = vcmask (!%p238_p2), 1048064   ;;  %v4992_v2 = vld [vmem:[%s7295_s1] ss:$8 sps:$4 sm:$0xff] (!%p238_p2)   ;;  %v5539_v4 = vmov (!%p238_p2), 0  }
   0x6   : > { %241 = sbr.rel (%p238_p2) target bundleno = 1017 (0x3f9), region = 48  ;;  %v4990_v1 = vld [vmem:[%s7295_s1 + $0x404] ss:$8 sps:$4 sm:$0xff] (!%p238_p2)   ;;  %2978 = vmatprep.subr.bf16.mxu1 (!%p238_p2), %v4988_v0  ;;  %v4993_v3 = vld [vmem:[%s7295_s1 + $0x400] ss:$8 sps:$4 sm:$0xff] (!%p238_p2)   ;;  %281 = vst.msk [vmem:[#allocation2 + $0x8] sm:$0xff] (!%p238_p2), %vm280_vm0, %v5539_v4 }
   0x7   : > { %282 = vst.msk [vmem:[#allocation2 + $0x98] sm:$0xff] (!%p238_p2), %vm280_vm0, %v5539_v4  ;;  %283 = vst.msk [vmem:[#allocation2 + $0x128] sm:$0xff] (!%p238_p2), %vm280_vm0, %v5539_v4  ;;  %3270 = vmatprep.subr.bf16.mxu0 (!%p238_p2), %v4990_v1  ;;  %v4994_v5 = vld [vmem:[%s7295_s1 + $0x14] ss:$8 sps:$4 sm:$0xff] (!%p238_p2)   ;;  %2979 = vmatpush1.bf16.msra.mxu1 (!%p238_p2), %v4992_v2  ;;  %v4998_v7 = vld [vmem:[%s7295_s1 + $0x10] ss:$8 sps:$4 sm:$0xff] (!%p238_p2)  }
   0x8   : > { %284 = vst.msk [vmem:[#allocation2 + $0x1b8] sm:$0xff] (!%p238_p2), %vm280_vm0, %v5539_v4  ;;  %285 = vst.msk [vmem:[#allocation2 + $0x18] sm:$0xff] (!%p238_p2), %vm280_vm0, %v5539_v4  ;;  %3271 = vmatpush1.bf16.msra.mxu0 (!%p238_p2), %v4993_v3  ;;  %v4996_v6 = vld [vmem:[%s7295_s1 + $0x414] ss:$8 sps:$4 sm:$0xff] (!%p238_p2)   ;;  %2980 = vmatprep.subr.bf16.mxu1 (!%p238_p2), %v4994_v5  ;;  %v4999_v8 = vld [vmem:[%s7295_s1 + $0x410] ss:$8 sps:$4 sm:$0xff] (!%p238_p2)  }
   0x9   : > { %286 = vst.msk [vmem:[#allocation2 + $0xa8] sm:$0xff] (!%p238_p2), %vm280_vm0, %v5539_v4  ;;  %287 = vst.msk [vmem:[#allocation2 + $0x138] sm:$0xff] (!%p238_p2), %vm280_vm0, %v5539_v4  ;;  %3272 = vmatprep.subr.bf16.mxu0 (!%p238_p2), %v4996_v6  ;;  %v5000_v9 = vld [vmem:[%s7295_s1 + $0x24] ss:$8 sps:$4 sm:$0xff] (!%p238_p2)   ;;  %v5004_v11 = vld [vmem:[%s7295_s1 + $0x20] ss:$8 sps:$4 sm:$0xff] (!%p238_p2)  }
   0xa   : > { %288 = vst.msk [vmem:[#allocation2 + $0x1c8] sm:$0xff] (!%p238_p2), %vm280_vm0, %v5539_v4  ;;  %289 = vst.msk [vmem:[#allocation2 + $0x28] sm:$0xff] (!%p238_p2), %vm280_vm0, %v5539_v4  ;;  %v5002_v10 = vld [vmem:[%s7295_s1 + $0x424] ss:$8 sps:$4 sm:$0xff] (!%p238_p2)   ;;  %v5005_v12 = vld [vmem:[%s7295_s1 + $0x420] ss:$8 sps:$4 sm:$0xff] (!%p238_p2)  }
   0xb   : > { %290 = vst.msk [vmem:[#allocation2 + $0xb8] sm:$0xff] (!%p238_p2), %vm280_vm0, %v5539_v4  ;;  %291 = vst.msk [vmem:[#allocation2 + $0x148] sm:$0xff] (!%p238_p2), %vm280_vm0, %v5539_v4  ;;  %2981 = vmatpush1.bf16.msra.mxu1 (!%p238_p2), %v4998_v7  ;;  %v5006_v13 = vld [vmem:[%s7295_s1 + $0x34] ss:$8 sps:$4 sm:$0xff] (!%p238_p2)   ;;  %v5010_v15 = vld [vmem:[%s7295_s1 + $0x30] ss:$8 sps:$4 sm:$0xff] (!%p238_p2)  }
   0xc   : > { %292 = vst.msk [vmem:[#allocation2 + $0x1d8] sm:$0xff] (!%p238_p2), %vm280_vm0, %v5539_v4  ;;  %293 = vst.msk [vmem:[#allocation2 + $0x38] sm:$0xff] (!%p238_p2), %vm280_vm0, %v5539_v4  ;;  %3273 = vmatpush1.bf16.msra.mxu0 (!%p238_p2), %v4999_v8  ;;  %2982 = vmatprep.subr.bf16.mxu1 (!%p238_p2), %v5000_v9  ;;  %v5008_v14 = vld [vmem:[%s7295_s1 + $0x434] ss:$8 sps:$4 sm:$0xff] (!%p238_p2)   ;;  %v5011_v16 = vld [vmem:[%s7295_s1 + $0x430] ss:$8 sps:$4 sm:$0xff] (!%p238_p2)  }
   0xd   : > { %294 = vst.msk [vmem:[#allocation2 + $0xc8] sm:$0xff] %vm280_vm0, %v5539_v4  ;;  %295 = vst.msk [vmem:[#allocation2 + $0x158] sm:$0xff] %vm280_vm0, %v5539_v4  ;;  %3274 = vmatprep.subr.bf16.mxu0 %v5002_v10  ;;  %v5012_v17 = vld [vmem:[%s7295_s1 + $0x44] ss:$8 sps:$4 sm:$0xff]   ;;  %v5016_v19 = vld [vmem:[%s7295_s1 + $0x40] ss:$8 sps:$4 sm:$0xff]  }
   0xe   : > { %296 = vst.msk [vmem:[#allocation2 + $0x1e8] sm:$0xff] %vm280_vm0, %v5539_v4  ;;  %297 = vst.msk [vmem:[#allocation2 + $0x48] sm:$0xff] %vm280_vm0, %v5539_v4  ;;  %v5014_v18 = vld [vmem:[%s7295_s1 + $0x444] ss:$8 sps:$4 sm:$0xff]   ;;  %v5017_v20 = vld [vmem:[%s7295_s1 + $0x440] ss:$8 sps:$4 sm:$0xff]  }
   0xf   : > { %298 = vst.msk [vmem:[#allocation2 + $0xd8] sm:$0xff] %vm280_vm0, %v5539_v4  ;;  %299 = vst.msk [vmem:[#allocation2 + $0x168] sm:$0xff] %vm280_vm0, %v5539_v4  ;;  %2983 = vmatpush1.bf16.msra.mxu1 %v5004_v11  ;;  %v5018_v21 = vld [vmem:[%s7295_s1 + $0x54] ss:$8 sps:$4 sm:$0xff]   ;;  %v5022_v23 = vld [vmem:[%s7295_s1 + $0x50] ss:$8 sps:$4 sm:$0xff]  }
  0x10   : > { %300 = vst.msk [vmem:[#allocation2 + $0x1f8] sm:$0xff] %vm280_vm0, %v5539_v4  ;;  %301 = vst.msk [vmem:[#allocation2 + $0x58] sm:$0xff] %vm280_vm0, %v5539_v4  ;;  %3275 = vmatpush1.bf16.msra.mxu0 %v5005_v12  ;;  %2984 = vmatprep.subr.bf16.mxu1 %v5006_v13  ;;  %v5020_v22 = vld [vmem:[%s7295_s1 + $0x454] ss:$8 sps:$4 sm:$0xff]   ;;  %v5023_v24 = vld [vmem:[%s7295_s1 + $0x450] ss:$8 sps:$4 sm:$0xff]  }
  0x11   : > { %302 = vst.msk [vmem:[#allocation2 + $0xe8] sm:$0xff] %vm280_vm0, %v5539_v4  ;;  %303 = vst.msk [vmem:[#allocation2 + $0x178] sm:$0xff] %vm280_vm0, %v5539_v4  ;;  %3276 = vmatprep.subr.bf16.mxu0 %v5008_v14  ;;  %v5024_v25 = vld [vmem:[%s7295_s1 + $0x64] ss:$8 sps:$4 sm:$0xff]   ;;  %v5028_v27 = vld [vmem:[%s7295_s1 + $0x60] ss:$8 sps:$4 sm:$0xff]  }
  0x12   : > { %304 = vst.msk [vmem:[#allocation2 + $0x208] sm:$0xff] %vm280_vm0, %v5539_v4  ;;  %305 = vst.msk [vmem:[#allocation2 + $0x68] sm:$0xff] %vm280_vm0, %v5539_v4  ;;  %v5026_v26 = vld [vmem:[%s7295_s1 + $0x464] ss:$8 sps:$4 sm:$0xff]   ;;  %v5029_v28 = vld [vmem:[%s7295_s1 + $0x460] ss:$8 sps:$4 sm:$0xff]  }
  0x13   : > { %306 = vst.msk [vmem:[#allocation2 + $0xf8] sm:$0xff] %vm280_vm0, %v5539_v4  ;;  %307 = vst.msk [vmem:[#allocation2 + $0x188] sm:$0xff] %vm280_vm0, %v5539_v4  ;;  %2985 = vmatpush1.bf16.msra.mxu1 %v5010_v15  ;;  %v5030_v29 = vld [vmem:[%s7295_s1 + $0x74] ss:$8 sps:$4 sm:$0xff]   ;;  %v5034_v31 = vld [vmem:[%s7295_s1 + $0x70] ss:$8 sps:$4 sm:$0xff]  }
  0x14   : > { %308 = vst.msk [vmem:[#allocation2 + $0x218] sm:$0xff] %vm280_vm0, %v5539_v4  ;;  %309 = vst.msk [vmem:[#allocation2 + $0x78] sm:$0xff] %vm280_vm0, %v5539_v4  ;;  %3277 = vmatpush1.bf16.msra.mxu0 %v5011_v16  ;;  %2986 = vmatprep.subr.bf16.mxu1 %v5012_v17  ;;  %v5032_v30 = vld [vmem:[%s7295_s1 + $0x474] ss:$8 sps:$4 sm:$0xff]   ;;  %v5035_v32 = vld [vmem:[%s7295_s1 + $0x470] ss:$8 sps:$4 sm:$0xff]  }
  0x15   : > { %310 = vst.msk [vmem:[#allocation2 + $0x108] sm:$0xff] %vm280_vm0, %v5539_v4  ;;  %311 = vst.msk [vmem:[#allocation2 + $0x198] sm:$0xff] %vm280_vm0, %v5539_v4  ;;  %3278 = vmatprep.subr.bf16.mxu0 %v5014_v18  ;;  %v5036_v33 = vld [vmem:[%s7295_s1 + $0x84] ss:$8 sps:$4 sm:$0xff]   ;;  %p269_p3 = scmp.lt.s32.totalorder %s4295_s25, 1  ;;  %vm366_vm1 = vcmask 523264  }
  0x16   : > { %312 = vst.msk [vmem:[#allocation2 + $0x228] sm:$0xff] %vm280_vm0, %v5539_v4  ;;  %313 = vst.msk [vmem:[#allocation2 + $0x88] sm:$0xff] %vm280_vm0, %v5539_v4  ;;  %v5038_v34 = vld [vmem:[%s7295_s1 + $0x484] ss:$8 sps:$4 sm:$0xff]   ;;  %v5040_v35 = vld [vmem:[%s7295_s1 + $0x80] ss:$8 sps:$4 sm:$0xff]  }
  0x17   : > { %314 = vst.msk [vmem:[#allocation2 + $0x118] sm:$0xff] %vm280_vm0, %v5539_v4  ;;  %315 = vst.msk [vmem:[#allocation2 + $0x1a8] sm:$0xff] %vm280_vm0, %v5539_v4  ;;  %2987 = vmatpush1.bf16.msra.mxu1 %v5016_v19  ;;  %v5041_v36 = vld [vmem:[%s7295_s1 + $0x480] ss:$8 sps:$4 sm:$0xff]   ;;  %v5042_v37 = vld [vmem:[%s7295_s1 + $0x94] ss:$8 sps:$4 sm:$0xff]  }
  0x18   : > { %316 = vst.msk [vmem:[#allocation2 + $0x238] sm:$0xff] %vm280_vm0, %v5539_v4  ;;  %3279 = vmatpush1.bf16.msra.mxu0 %v5017_v20  ;;  %2988 = vmatprep.subr.bf16.mxu1 %v5018_v21  ;;  %s7307_s25 = smov (!%p269_p3, %s4295_s25), 1  ;;  %v5044_v38 = vld [vmem:[%s7295_s1 + $0x494] ss:$8 sps:$4 sm:$0xff]   ;;  %v5046_v39 = vld [vmem:[%s7295_s1 + $0x90] ss:$8 sps:$4 sm:$0xff]  }
  0x19   : > { %3280 = vmatprep.subr.bf16.mxu0 %v5020_v22  ;;  %v5047_v40 = vld [vmem:[%s7295_s1 + $0x490] ss:$8 sps:$4 sm:$0xff]   ;;  %v5048_v41 = vld [vmem:[%s7295_s1 + $0xa4] ss:$8 sps:$4 sm:$0xff]   ;;  %s4978_s22 = smul.u32 576, %s7307_s25  ;;  %s4801_s11 = sshll.u32 %s7307_s25, 6 }
  0x1a   : > { %v5050_v42 = vld [vmem:[%s7295_s1 + $0x4a4] ss:$8 sps:$4 sm:$0xff]   ;;  %v5052_v43 = vld [vmem:[%s7295_s1 + $0xa0] ss:$8 sps:$4 sm:$0xff]   ;;  %v5054_v45 = vld [vmem:[%s7295_s1 + $0xb4] ss:$8 sps:$4 sm:$0xff]   ;;  %s7255_s15 = scalar_lea.vmem %s7301_s7, %s4801_s11 }
  0x1b   : > { %2989 = vmatpush1.bf16.msra.mxu1 %v5022_v23  ;;  %v5053_v44 = vld [vmem:[%s7295_s1 + $0x4a0] ss:$8 sps:$4 sm:$0xff]   ;;  %s5769_s12 = scalar_lea.vmem %s7294_s0, %s4978_s22  ;;  %v5056_v46 = vld [vmem:[%s7295_s1 + $0x4b4] ss:$8 sps:$4 sm:$0xff]   ;;  %v5058_v47 = vld [vmem:[%s7295_s1 + $0xb0] ss:$8 sps:$4 sm:$0xff]  }
  0x1c   : > { %3281 = vmatpush1.bf16.msra.mxu0 %v5023_v24  ;;  %2990 = vmatprep.subr.bf16.mxu1 %v5024_v25  ;;  %v5059_v48 = vld [vmem:[%s7295_s1 + $0x4b0] ss:$8 sps:$4 sm:$0xff]   ;;  %v317_v49 = vld [vmem:[%s5769_s12] sm:$0xff]  ;;  %v5066_v61 = vld [vmem:[%s7295_s1 + $0xd4] ss:$8 sps:$4 sm:$0xff]   ;;  %vm4229_vm5 = vcmask 1043456  }
  0x1d   : > { %3282 = vmatprep.subr.bf16.mxu0 %v5026_v26  ;;  %v318_v50 = vld [vmem:[%s5769_s12 + $0x10] sm:$0xff]  ;;  %v5060_v52 = vld [vmem:[%s7295_s1 + $0xc4] ss:$8 sps:$4 sm:$0xff]   ;;  %v5064_v59 = vld [vmem:[%s7295_s1 + $0xc0] ss:$8 sps:$4 sm:$0xff]   ;;  %vm4230_vm6 = vcmask 523268  }
  0x1e   : > { %v5084_v51 = vld [vmem:[%s5769_s12 + $0x4] ss:$16 sps:$4 sm:$0xff]   ;;  %v4303_v54 = vcombine.low %v317_v49, %v318_v50  ;;  %v5065_v60 = vld [vmem:[%s7295_s1 + $0x4c0] ss:$8 sps:$4 sm:$0xff]   ;;  %v5070_v63 = vld [vmem:[%s7295_s1 + $0xd0] ss:$8 sps:$4 sm:$0xff]  }
  0x1f   : > { %2991 = vmatpush1.bf16.msra.mxu1 %v5028_v27  ;;  %v5062_v53 = vld [vmem:[%s7295_s1 + $0x4c4] ss:$8 sps:$4 sm:$0xff]   ;;  %367 = vst.msk [vmem:[#allocation2 + $0x8] sm:$0xff] %vm366_vm1, %v5084_v51  ;;  %v4351_v55 = vld [vmem:[%s5769_s12 + $0x1b0] sm:$0xff]  ;;  %v5076_v5 = vld [vmem:[%s7295_s1 + $0xe0] ss:$8 sps:$4 sm:$0xff]  }
  0x20   : > { %3283 = vmatpush1.bf16.msra.mxu0 %v5029_v28  ;;  %2992 = vmatprep.subr.bf16.mxu1 %v5030_v29  ;;  %v4352_v56 = vld [vmem:[%s5769_s12 + $0x1c0] sm:$0xff]  ;;  %v5068_v62 = vld [vmem:[%s7295_s1 + $0x4d4] ss:$8 sps:$4 sm:$0xff]   ;;  %v5071_v0 = vld [vmem:[%s7295_s1 + $0x4d0] ss:$8 sps:$4 sm:$0xff]  }
  0x21   : > { %3284 = vmatprep.subr.bf16.mxu0 %v5032_v30  ;;  %v5089_v57 = vld [vmem:[%s5769_s12 + $0x1b4] ss:$16 sps:$4 sm:$0xff]   ;;  %v4359_v58 = vcombine.low %v4351_v55, %v4352_v56  ;;  %v5077_v6 = vld [vmem:[%s7295_s1 + $0x4e0] ss:$8 sps:$4 sm:$0xff]   ;;  %v5082_v9 = vld [vmem:[%s7295_s1 + $0xf0] ss:$8 sps:$4 sm:$0xff]  }
  0x22   : > { %709 = vst.msk [vmem:[#allocation2 + $0x48] sm:$0xff] %vm366_vm1, %v5089_v57  ;;  %v5072_v1 = vld [vmem:[%s7295_s1 + $0xe4] ss:$8 sps:$4 sm:$0xff]   ;;  %v5078_v7 = vld [vmem:[%s7295_s1 + $0xf4] ss:$8 sps:$4 sm:$0xff]   ;;  %vm7257_vm7 = vmor %vm4230_vm6, %vm4229_vm5 }
  0x23   : > { %2993 = vmatpush1.bf16.msra.mxu1 %v5034_v31  ;;  %v5074_v3 = vld [vmem:[%s7295_s1 + $0x4e4] ss:$8 sps:$4 sm:$0xff]   ;;  %v5080_v8 = vld [vmem:[%s7295_s1 + $0x4f4] ss:$8 sps:$4 sm:$0xff]   ;;  %v5083_v10 = vld [vmem:[%s7295_s1 + $0x4f0] ss:$8 sps:$4 sm:$0xff]  }
  0x24   : > { %3285 = vmatpush1.bf16.msra.mxu0 %v5035_v32  ;;  %2994 = vmatprep.subr.bf16.mxu1 %v5036_v33  ;;  %v5088_v11 = vld [vmem:[%s7295_s1 + $0x104] ss:$8 sps:$4 sm:$0xff]   ;;  %v5086_v13 = vld [vmem:[%s7295_s1 + $0x100] ss:$8 sps:$4 sm:$0xff]   ;;  %v5096_v15 = vld [vmem:[%s7295_s1 + $0x114] ss:$8 sps:$4 sm:$0xff]  }
  0x25   : > { %3286 = vmatprep.subr.bf16.mxu0 %v5038_v34  ;;  %v5093_v12 = vld [vmem:[%s7295_s1 + $0x504] ss:$8 sps:$4 sm:$0xff]   ;;  %v5091_v14 = vld [vmem:[%s7295_s1 + $0x500] ss:$8 sps:$4 sm:$0xff]   ;;  %v5099_v16 = vld [vmem:[%s7295_s1 + $0x514] ss:$8 sps:$4 sm:$0xff]  }
  0x26   : > { %v1167_v2 = vld [vmem:[#allocation2 + $0x8] sm:$0xff]  ;;  %v5094_v17 = vld [vmem:[%s7295_s1 + $0x110] ss:$8 sps:$4 sm:$0xff]   ;;  %v5108_v23 = vld [vmem:[%s7295_s1 + $0x134] ss:$8 sps:$4 sm:$0xff]  }
  0x27   : > { %2995 = vmatpush1.bf16.msra.mxu1 %v5040_v35  ;;  %3010 = vmatprep.mubr.bf16.mxu1 %v1167_v2  ;;  %v5097_v18 = vld [vmem:[%s7295_s1 + $0x510] ss:$8 sps:$4 sm:$0xff]   ;;  %v5102_v19 = vld [vmem:[%s7295_s1 + $0x124] ss:$8 sps:$4 sm:$0xff]   ;;  %v5100_v21 = vld [vmem:[%s7295_s1 + $0x120] ss:$8 sps:$4 sm:$0xff]  }
  0x28   : > { %3287 = vmatpush1.bf16.msra.mxu0 %v5041_v36  ;;  %2996 = vmatprep.subr.bf16.mxu1 %v5042_v37  ;;  %v5105_v20 = vld [vmem:[%s7295_s1 + $0x524] ss:$8 sps:$4 sm:$0xff]   ;;  %v5103_v22 = vld [vmem:[%s7295_s1 + $0x520] ss:$8 sps:$4 sm:$0xff]   ;;  %v320_v25 = vld [vmem:[%s5769_s12 + $0x30] sm:$0xff] }
  0x29   : > { %3288 = vmatprep.subr.bf16.mxu0 %v5044_v38  ;;  %v1175_v4 = vld [vmem:[#allocation2 + $0x48] sm:$0xff]  ;;  %v319_v24 = vld [vmem:[%s5769_s12 + $0x20] sm:$0xff]  ;;  %v5111_v27 = vld [vmem:[%s7295_s1 + $0x534] ss:$8 sps:$4 sm:$0xff]   ;;  %vm447_vm2 = vsmask.f32 3328 }
  0x2a   : > { %3302 = vmatprep.mubr.bf16.mxu0 %v1175_v4  ;;  %v5148_v26 = vld [vmem:[%s5769_s12 + $0x24] ss:$16 sps:$4 sm:$0xff]   ;;  %v4305_v28 = vcombine.low %v319_v24, %v320_v25  ;;  %v5106_v33 = vld [vmem:[%s7295_s1 + $0x130] ss:$8 sps:$4 sm:$0xff]   ;;  %v5112_v37 = vld [vmem:[%s7295_s1 + $0x140] ss:$8 sps:$4 sm:$0xff]  }
  0x2b   : > { %2997 = vmatpush1.bf16.msra.mxu1 %v5046_v39  ;;  %369 = vst.msk [vmem:[#allocation2 + $0x98] sm:$0xff] %vm366_vm1, %v5148_v26  ;;  %v4353_v29 = vld [vmem:[%s5769_s12 + $0x1d0] sm:$0xff]  ;;  %v4354_v30 = vld [vmem:[%s5769_s12 + $0x1e0] sm:$0xff]  ;;  %vm448_vm3 = vsmask.f32 7440 }
  0x2c   : > { %3289 = vmatpush1.bf16.msra.mxu0 %v5047_v40  ;;  %2998 = vmatprep.subr.bf16.mxu1 %v5048_v41  ;;  %v5153_v31 = vld [vmem:[%s5769_s12 + $0x1d4] ss:$16 sps:$4 sm:$0xff]   ;;  %v4361_v32 = vcombine.low %v4353_v29, %v4354_v30  ;;  %v5109_v34 = vld [vmem:[%s7295_s1 + $0x530] ss:$8 sps:$4 sm:$0xff]   ;;  %v5115_v38 = vld [vmem:[%s7295_s1 + $0x540] ss:$8 sps:$4 sm:$0xff]  }
  0x2d   : > { %3290 = vmatprep.subr.bf16.mxu0 %v5050_v42  ;;  %v5114_v35 = vld [vmem:[%s7295_s1 + $0x144] ss:$8 sps:$4 sm:$0xff]   ;;  %711 = vst.msk [vmem:[#allocation2 + $0xd8] sm:$0xff] %vm366_vm1, %v5153_v31  ;;  %v322_v40 = vld [vmem:[%s5769_s12 + $0x50] sm:$0xff]  ;;  %v5124_v55 = vld [vmem:[%s7295_s1 + $0x160] ss:$8 sps:$4 sm:$0xff]  }
  0x2e   : > { %v5117_v36 = vld [vmem:[%s7295_s1 + $0x544] ss:$8 sps:$4 sm:$0xff]   ;;  %v5118_v49 = vld [vmem:[%s7295_s1 + $0x150] ss:$8 sps:$4 sm:$0xff]   ;;  %v5127_v56 = vld [vmem:[%s7295_s1 + $0x560] ss:$8 sps:$4 sm:$0xff]  }
  0x2f   : > { %2999 = vmatpush1.bf16.msra.mxu1 %v5052_v43  ;;  %v321_v39 = vld [vmem:[%s5769_s12 + $0x40] sm:$0xff]  ;;  %v5120_v43 = vld [vmem:[%s7295_s1 + $0x154] ss:$8 sps:$4 sm:$0xff]   ;;  %v5121_v51 = vld [vmem:[%s7295_s1 + $0x550] ss:$8 sps:$4 sm:$0xff]  }
  0x30   : > { %3291 = vmatpush1.bf16.msra.mxu0 %v5053_v44  ;;  %3000 = vmatprep.subr.bf16.mxu1 %v5054_v45  ;;  %v5164_v41 = vld [vmem:[%s5769_s12 + $0x44] ss:$16 sps:$4 sm:$0xff]   ;;  %v4307_v42 = vcombine.low %v321_v39, %v322_v40  ;;  %v4370_v24 = vld [vmem:[%s5769_s12 + $0x138] sm:$0x11]  ;;  %vm6014_vm4 = vmor %vm447_vm2, %vm448_vm3 }
  0x31   : > { %3292 = vmatprep.subr.bf16.mxu0 %v5056_v46  ;;  %v5123_v44 = vld [vmem:[%s7295_s1 + $0x554] ss:$8 sps:$4 sm:$0xff]   ;;  %371 = vst.msk [vmem:[#allocation2 + $0x128] sm:$0xff] %vm366_vm1, %v5164_v41  ;;  %v323_v57 = vld [vmem:[%s5769_s12 + $0x60] sm:$0xff]  ;;  %v756_v30 = vshll.u32 %v4370_v24, 16 }
  0x32   : > { %v1185_v45 = vld [vmem:[#allocation2 + $0x98] sm:$0xff]  ;;  %v4355_v46 = vld [vmem:[%s5769_s12 + $0x1f0] sm:$0xff]  ;;  %v5152_v31 = vld [vmem:[%s7295_s1 + $0x1a4] ss:$8 sps:$4 sm:$0xff]  }
  0x33   : > { %3001 = vmatpush1.bf16.msra.mxu1 %v5058_v47  ;;  %v4356_v47 = vld [vmem:[%s5769_s12 + $0x200] sm:$0xff]  ;;  %v5160_v39 = vld [vmem:[%s7295_s1 + $0x1b4] ss:$8 sps:$4 sm:$0xff]   ;;  %v5207_v24 = vld [vmem:[%s7295_s1 + $0x610] ss:$8 sps:$4 sm:$0xff]  }
  0x34   : > { %3293 = vmatpush1.bf16.msra.mxu0 %v5059_v48  ;;  %3002 = vmatprep.subr.bf16.mxu1 %v5060_v52  ;;  %v5169_v48 = vld [vmem:[%s5769_s12 + $0x1f4] ss:$16 sps:$4 sm:$0xff]   ;;  %v4363_v50 = vcombine.low %v4355_v46, %v4356_v47  ;;  %v1193_v52 = vld [vmem:[#allocation2 + $0xd8] sm:$0xff] }
  0x35   : > { %3294 = vmatprep.subr.bf16.mxu0 %v5062_v53  ;;  %713 = vst.msk [vmem:[#allocation2 + $0x168] sm:$0xff] %vm366_vm1, %v5169_v48  ;;  %v5126_v53 = vld [vmem:[%s7295_s1 + $0x164] ss:$8 sps:$4 sm:$0xff]  }
  0x36   : > { %v5185_v2 = vld [vmem:[%s5769_s12 + $0x214] ss:$16 sps:$4 sm:$0xff]  }
  0x37   : > { %3003 = vmatpush1.bf16.msra.mxu1 %v5064_v59  ;;  %v5180_v59 = vld [vmem:[%s5769_s12 + $0x64] ss:$16 sps:$4 sm:$0xff]   ;;  %715 = vst.msk [vmem:[#allocation2 + $0x1f8] sm:$0xff] %vm366_vm1, %v5185_v2  ;;  %v5182_v2 = vld [vmem:[%s7295_s1 + $0x1e0] ss:$8 sps:$4 sm:$0xff]  }
  0x38   : > { %3295 = vmatpush1.bf16.msra.mxu0 %v5065_v60  ;;  %3004 = vmatprep.subr.bf16.mxu1 %v5066_v61  ;;  %v5132_v61 = vld [vmem:[%s7295_s1 + $0x174] ss:$8 sps:$4 sm:$0xff]   ;;  %373 = vst.msk [vmem:[#allocation2 + $0x1b8] sm:$0xff] %vm366_vm1, %v5180_v59 }
  0x39   : > { %3296 = vmatprep.subr.bf16.mxu0 %v5068_v62  ;;  %v5135_v62 = vld [vmem:[%s7295_s1 + $0x574] ss:$8 sps:$4 sm:$0xff]  }
  0x3a   : > { %v5176_v59 = vld [vmem:[%s7295_s1 + $0x1d4] ss:$8 sps:$4 sm:$0xff]  }
  0x3b   : > { %3005 = vmatpush1.bf16.msra.mxu1 %v5070_v63  ;;  %v1203_v63 = vld [vmem:[#allocation2 + $0x128] sm:$0xff] }
  0x3c   : > { %3297 = vmatpush1.bf16.msra.mxu0 %v5071_v0  ;;  %3006 = vmatprep.subr.bf16.mxu1 %v5072_v1  ;;  %v4357_v0 = vld [vmem:[%s5769_s12 + $0x210] sm:$0xff]  ;;  %v4358_v1 = vld [vmem:[%s5769_s12 + $0x220] sm:$0xff] }
  0x3d   : > { %3298 = vmatprep.subr.bf16.mxu0 %v5074_v3  ;;  %v1211_v3 = vld [vmem:[#allocation2 + $0x168] sm:$0xff]  ;;  %v4365_v4 = vcombine.low %v4357_v0, %v4358_v1 }
  0x3e   : > { %v5189_v0 = vld [vmem:[%s7295_s1 + $0x5e4] ss:$8 sps:$4 sm:$0xff]  }
  0x3f   : > { %3007 = vmatpush1.bf16.msra.mxu1 %v5076_v5  ;;  %v5130_v5 = vld [vmem:[%s7295_s1 + $0x170] ss:$8 sps:$4 sm:$0xff]  }
  0x40   : > { %3299 = vmatpush1.bf16.msra.mxu0 %v5077_v6  ;;  %3008 = vmatprep.subr.bf16.mxu1 %v5078_v7  ;;  %v5133_v6 = vld [vmem:[%s7295_s1 + $0x570] ss:$8 sps:$4 sm:$0xff]   ;;  %v5138_v7 = vld [vmem:[%s7295_s1 + $0x184] ss:$8 sps:$4 sm:$0xff]  }
  0x41   : > { %3300 = vmatprep.subr.bf16.mxu0 %v5080_v8  ;;  %v5141_v8 = vld [vmem:[%s7295_s1 + $0x584] ss:$8 sps:$4 sm:$0xff]  }
  0x43   : > { %3009 = vmatpush1.bf16.msra.mxu1 %v5082_v9  ;;  %v5136_v9 = vld [vmem:[%s7295_s1 + $0x180] ss:$8 sps:$4 sm:$0xff]  }
  0x44   : > { %3301 = vmatpush1.bf16.msra.mxu0 %v5083_v10  ;;  %3051 = vmatprep.subr.bf16.mxu1 %v5088_v11  ;;  %v5139_v10 = vld [vmem:[%s7295_s1 + $0x580] ss:$8 sps:$4 sm:$0xff]   ;;  %v5969_v11 = vld [vmem:[%s5769_s12 + $0x90] sm:$0xff] }
  0x45   : > { %3343 = vmatprep.subr.bf16.mxu0 %v5093_v12  ;;  %v5972_v12 = vld [vmem:[%s5769_s12 + $0xa0] sm:$0xff] }
  0x46   : > { %3011 = vmatmul.mubr.bf16.vlgmr.msra.gmra.mrb[0].mxu1 %v4303_v54  ;;  %v5129_v54 = vld [vmem:[%s7295_s1 + $0x564] ss:$8 sps:$4 sm:$0xff]  }
  0x47   : > { %3303 = vmatmul.mubr.bf16.vlgmr.msra.gmra.mrb[0].mxu0 %v4359_v58  ;;  %3052 = vmatpush1.bf16.msra.mxu1 %v5086_v13  ;;  %v324_v58 = vld [vmem:[%s5769_s12 + $0x70] sm:$0xff] }
  0x48   : > { %3344 = vmatpush1.bf16.msra.mxu0 %v5091_v14  ;;  %3053 = vmatprep.subr.bf16.mxu1 %v5096_v15  ;;  %v4309_v60 = vcombine.low %v323_v57, %v324_v58  ;;  %v5196_v13 = vld [vmem:[%s5769_s12 + $0x94] ss:$16 sps:$4 sm:$0xff]   ;;  %v4319_v14 = vcombine.low %v5969_v11, %v5972_v12  ;;  %v5166_v57 = vld [vmem:[%s7295_s1 + $0x1c0] ss:$8 sps:$4 sm:$0xff]  }
  0x49   : > { %3345 = vmatprep.subr.bf16.mxu0 %v5099_v16  ;;  %3020 = vmatprep.mubr.bf16.mxu1 %v1185_v45  ;;  %v5144_v15 = vld [vmem:[%s7295_s1 + $0x194] ss:$8 sps:$4 sm:$0xff]   ;;  %424 = vst.msk [vmem:[#allocation2 + $0x18] sm:$0xff] %vm366_vm1, %v5196_v13  ;;  %v758_v45 = vrot.slane %v756_v30, 5  ;;  %v5171_v58 = vld [vmem:[%s7295_s1 + $0x5c0] ss:$8 sps:$4 sm:$0xff]  }
  0x4a   : > { %3312 = vmatprep.mubr.bf16.mxu0 %v1193_v52  ;;  %v5147_v16 = vld [vmem:[%s7295_s1 + $0x594] ss:$8 sps:$4 sm:$0xff]   ;;  %v5168_v52 = vld [vmem:[%s7295_s1 + $0x1c4] ss:$8 sps:$4 sm:$0xff]   ;;  %v5201_v13 = vld [vmem:[%s7295_s1 + $0x600] ss:$8 sps:$4 sm:$0xff]  }
  0x4b   : > { %3054 = vmatpush1.bf16.msra.mxu1 %v5094_v17  ;;  %v1221_v17 = vld [vmem:[#allocation2 + $0x1b8] sm:$0xff]  ;;  %v5215_v11 = vld [vmem:[%s7295_s1 + $0x624] ss:$8 sps:$4 sm:$0xff]  }
  0x4c   : > { %3346 = vmatpush1.bf16.msra.mxu0 %v5097_v18  ;;  %3055 = vmatprep.subr.bf16.mxu1 %v5102_v19  ;;  %v5142_v18 = vld [vmem:[%s7295_s1 + $0x190] ss:$8 sps:$4 sm:$0xff]  }
  0x4d   : > { %3347 = vmatprep.subr.bf16.mxu0 %v5105_v20  ;;  %v5145_v19 = vld [vmem:[%s7295_s1 + $0x590] ss:$8 sps:$4 sm:$0xff]   ;;  %v4367_v20 = vld [vmem:[%s5769_s12 + $0x120] sm:$0xff] }
  0x4e   : > { %3021 = vmatmul.mubr.bf16.gmra.mrb[4].mxu1 %v4305_v28  ;;  %v733_v25 = vshrl.u32 %v4367_v20, 16  ;;  %v736_v26 = vshll.u32 %v4367_v20, 16  ;;  %v5209_v20 = vld [vmem:[%s7295_s1 + $0x614] ss:$8 sps:$4 sm:$0xff]  }
  0x4f   : > { %3056 = vmatpush1.bf16.msra.mxu1 %v5100_v21  ;;  %3313 = vmatmul.mubr.bf16.gmra.mrb[4].mxu0 %v4361_v32  ;;  %v4368_v21 = vld [vmem:[%s5769_s12 + $0x128] sm:$0x11] }
  0x50   : > { %3348 = vmatpush1.bf16.msra.mxu0 %v5103_v22  ;;  %3057 = vmatprep.subr.bf16.mxu1 %v5108_v23  ;;  %v1229_v22 = vld [vmem:[#allocation2 + $0x1f8] sm:$0xff]  ;;  %v4369_v23 = vld [vmem:[%s5769_s12 + $0x130] sm:$0xff]  ;;  %v5157_v32 = vld [vmem:[%s7295_s1 + $0x5a4] ss:$8 sps:$4 sm:$0xff]  }
  0x51   : > { %3349 = vmatprep.subr.bf16.mxu0 %v5111_v27  ;;  %3030 = vmatprep.mubr.bf16.mxu1 %v1203_v63  ;;  %v742_v27 = vshll.u32 %v4368_v21, 16  ;;  %v747_v28 = vshrl.u32 %v4369_v23, 16  ;;  %v750_v29 = vshll.u32 %v4369_v23, 16  ;;  %v1169_v46 = vld [vmem:[#allocation2 + $0x18] sm:$0xff]  ;;  %v5184_v63 = vld [vmem:[%s7295_s1 + $0x1e4] ss:$8 sps:$4 sm:$0xff]  }
  0x52   : > { %3322 = vmatprep.mubr.bf16.mxu0 %v1211_v3  ;;  %v5187_v3 = vld [vmem:[%s7295_s1 + $0x5e0] ss:$8 sps:$4 sm:$0xff]   ;;  %v5204_v23 = vld [vmem:[%s7295_s1 + $0x210] ss:$8 sps:$4 sm:$0xff]  }
  0x53   : > { %3058 = vmatpush1.bf16.msra.mxu1 %v5106_v33  ;;  %v735_v33 = vrot.slane %v733_v25, 4  ;;  %v744_v41 = vrot.slane %v742_v27, 5  ;;  %v4371_v21 = vld [vmem:[%s5769_s12 + $0x140] sm:$0xff]  ;;  %v4373_v25 = vld [vmem:[%s5769_s12 + $0x150] sm:$0xff] }
  0x54   : > { %3350 = vmatpush1.bf16.msra.mxu0 %v5109_v34  ;;  %3059 = vmatprep.subr.bf16.mxu1 %v5114_v35  ;;  %v738_v34 = vrot.slane %v736_v26, 5  ;;  %v5150_v35 = vld [vmem:[%s7295_s1 + $0x1a0] ss:$8 sps:$4 sm:$0xff]   ;;  %v4374_v26 = vld [vmem:[%s5769_s12 + $0x158] sm:$0x11]  ;;  %v761_v27 = vshrl.u32 %v4371_v21, 16 }
  0x55   : > { %3351 = vmatprep.subr.bf16.mxu0 %v5117_v36  ;;  %v749_v36 = vrot.slane %v747_v28, 4  ;;  %v764_v28 = vshll.u32 %v4371_v21, 16  ;;  %v775_v30 = vshrl.u32 %v4373_v25, 16  ;;  %v6193_v21 = vld [vmem:[%s5769_s12 + $0xf0] sm:$0xff] }
  0x56   : > { %3031 = vmatmul.mubr.bf16.gmra.mrb[8].mxu1 %v4307_v42  ;;  %v739_v40 = vor.u32 %v738_v34, %v735_v33  ;;  %v5163_v42 = vld [vmem:[%s7295_s1 + $0x5b4] ss:$8 sps:$4 sm:$0xff]   ;;  %v5212_v33 = vld [vmem:[%s7295_s1 + $0x224] ss:$8 sps:$4 sm:$0xff]   ;;  %v763_v34 = vrot.slane %v761_v27, 4 }
  0x57   : > { %3060 = vmatpush1.bf16.msra.mxu1 %v5112_v37  ;;  %3323 = vmatmul.mubr.bf16.gmra.mrb[8].mxu0 %v4363_v50  ;;  %v752_v37 = vrot.slane %v750_v29, 5  ;;  %v5161_v50 = vld [vmem:[%s7295_s1 + $0x5b0] ss:$8 sps:$4 sm:$0xff]   ;;  %v777_v12 = vrot.slane %v775_v30, 4  ;;  %v5236_v30 = vld [vmem:[%s7295_s1 + $0x264] ss:$8 sps:$4 sm:$0xff]  }
  0x58   : > { %3352 = vmatpush1.bf16.msra.mxu0 %v5115_v38  ;;  %3061 = vmatprep.subr.bf16.mxu1 %v5120_v43  ;;  %v5155_v38 = vld [vmem:[%s7295_s1 + $0x5a0] ss:$8 sps:$4 sm:$0xff]   ;;  %v740_v47 = vrot.slane %v739_v40, 4  ;;  %v5218_v40 = vld [vmem:[%s7295_s1 + $0x234] ss:$8 sps:$4 sm:$0xff]  }
  0x59   : > { %3353 = vmatprep.subr.bf16.mxu0 %v5123_v44  ;;  %3040 = vmatprep.mubr.bf16.mxu1 %v1221_v17  ;;  %v753_v44 = vor.u32 %v752_v37, %v749_v36  ;;  %v5258_v17 = vld [vmem:[%s5769_s12 + $0xb4] ss:$16 sps:$4 sm:$0xff]   ;;  %v5210_v36 = vld [vmem:[%s7295_s1 + $0x220] ss:$8 sps:$4 sm:$0xff]   ;;  %v5231_v27 = vld [vmem:[%s7295_s1 + $0x650] ss:$8 sps:$4 sm:$0xff]  }
  0x5a   : > { %3332 = vmatprep.mubr.bf16.mxu0 %v1229_v22  ;;  %426 = vst.msk [vmem:[#allocation2 + $0xa8] sm:$0xff] %vm366_vm1, %v5258_v17  ;;  %v4372_v22 = vld [vmem:[%s5769_s12 + $0x148] sm:$0x11]  ;;  %v5230_v17 = vld [vmem:[%s7295_s1 + $0x254] ss:$8 sps:$4 sm:$0xff]  }
  0x5b   : > { %3062 = vmatpush1.bf16.msra.mxu1 %v5118_v49  ;;  %v754_v48 = vrot.slane %v753_v44, 4  ;;  %v5158_v49 = vld [vmem:[%s7295_s1 + $0x1b0] ss:$8 sps:$4 sm:$0xff]   ;;  %v770_v29 = vshll.u32 %v4372_v22, 16 }
  0x5c   : > { %3354 = vmatpush1.bf16.msra.mxu0 %v5121_v51  ;;  %3063 = vmatprep.subr.bf16.mxu1 %v5126_v53  ;;  %v6026_v51 = vsel %vm6014_vm4, %v740_v47, %v744_v41  ;;  %v6139_v44 = vld [vmem:[%s5769_s12 + $0xd0] sm:$0xff]  ;;  %v6142_v47 = vld [vmem:[%s5769_s12 + $0xe0] sm:$0xff] }
  0x5d   : > { %3355 = vmatprep.subr.bf16.mxu0 %v5129_v54  ;;  %v6033_v53 = vsel %vm6014_vm4, %v754_v48, %v758_v45  ;;  %v5173_v54 = vld [vmem:[%s7295_s1 + $0x5c4] ss:$8 sps:$4 sm:$0xff]  }
  0x5e   : > { %3041 = vmatmul.mubr.bf16.gmra.mrb[12].mxu1 %v4309_v60  ;;  %v5179_v60 = vld [vmem:[%s7295_s1 + $0x5d4] ss:$8 sps:$4 sm:$0xff]  }
  0x5f   : > { %3064 = vmatpush1.bf16.msra.mxu1 %v5124_v55  ;;  %3333 = vmatmul.mubr.bf16.gmra.mrb[12].mxu0 %v4365_v4  ;;  %v4384_v55 = vcombine.high %v6026_v51, %v6033_v53  ;;  %v5192_v4 = vld [vmem:[%s7295_s1 + $0x1f4] ss:$8 sps:$4 sm:$0xff]  }
  0x60   : > { %3356 = vmatpush1.bf16.msra.mxu0 %v5127_v56  ;;  %3065 = vmatprep.subr.bf16.mxu1 %v5132_v61  ;;  %v4383_v56 = vcombine.low %v6026_v51, %v6033_v53  ;;  %v5174_v61 = vld [vmem:[%s7295_s1 + $0x1d0] ss:$8 sps:$4 sm:$0xff]   ;;  %v5272_v48 = vld [vmem:[%s5769_s12 + $0xd4] ss:$16 sps:$4 sm:$0xff]   ;;  %v4323_v51 = vcombine.low %v6139_v44, %v6142_v47 }
  0x61   : > { %3357 = vmatprep.subr.bf16.mxu0 %v5135_v62  ;;  %3083 = vmatprep.mubr.bf16.mxu1 %v1169_v46  ;;  %877 = vst.msk [vmem:[#allocation2 + $0x58] sm:$0xff] %vm366_vm1, %v4384_v55  ;;  %v5177_v62 = vld [vmem:[%s7295_s1 + $0x5d0] ss:$8 sps:$4 sm:$0xff]   ;;  %v1187_v45 = vld [vmem:[#allocation2 + $0xa8] sm:$0xff]  ;;  %428 = vst.msk [vmem:[#allocation2 + $0x138] sm:$0xff] %vm366_vm1, %v5272_v48 }
  0x62   : > { %v5219_v53 = vld [vmem:[%s7295_s1 + $0x630] ss:$8 sps:$4 sm:$0xff]   ;;  %v4375_v55 = vld [vmem:[%s5769_s12 + $0x160] sm:$0xff] }
  0x63   : > { %3066 = vmatpush1.bf16.msra.mxu1 %v5130_v5  ;;  %v5195_v5 = vld [vmem:[%s7295_s1 + $0x5f4] ss:$8 sps:$4 sm:$0xff]  }
  0x64   : > { %3358 = vmatpush1.bf16.msra.mxu0 %v5133_v6  ;;  %3067 = vmatprep.subr.bf16.mxu1 %v5138_v7  ;;  %v5190_v6 = vld [vmem:[%s7295_s1 + $0x1f0] ss:$8 sps:$4 sm:$0xff]  }
  0x65   : > { %3359 = vmatprep.subr.bf16.mxu0 %v5141_v8  ;;  %v5193_v7 = vld [vmem:[%s7295_s1 + $0x5f0] ss:$8 sps:$4 sm:$0xff]   ;;  %v5200_v8 = vld [vmem:[%s7295_s1 + $0x204] ss:$8 sps:$4 sm:$0xff]  }
  0x67   : > { %3068 = vmatpush1.bf16.msra.mxu1 %v5136_v9  ;;  %v5203_v9 = vld [vmem:[%s7295_s1 + $0x604] ss:$8 sps:$4 sm:$0xff]  }
  0x68   : > { %3360 = vmatpush1.bf16.msra.mxu0 %v5139_v10  ;;  %3069 = vmatprep.subr.bf16.mxu1 %v5144_v15  ;;  %v1177_v1 = vld [vmem:[#allocation2 + $0x58] sm:$0xff]  ;;  %v5198_v10 = vld [vmem:[%s7295_s1 + $0x200] ss:$8 sps:$4 sm:$0xff]   ;;  %v6098_v15 = vld [vmem:[%s5769_s12 + $0xb0] sm:$0xff] }
  0x69   : > { %3361 = vmatprep.subr.bf16.mxu0 %v5147_v16  ;;  %3375 = vmatprep.mubr.bf16.mxu0 %v1177_v1  ;;  %v4314_v16 = vld [vmem:[%s5769_s12 + $0xc0] sm:$0xff]  ;;  %v1205_v22 = vld [vmem:[#allocation2 + $0x138] sm:$0xff] }
  0x6b   : > { %3070 = vmatpush1.bf16.msra.mxu1 %v5142_v18  ;;  %v5206_v18 = vld [vmem:[%s7295_s1 + $0x214] ss:$8 sps:$4 sm:$0xff]  }
  0x6c   : > { %3362 = vmatpush1.bf16.msra.mxu0 %v5145_v19  ;;  %3071 = vmatprep.subr.bf16.mxu1 %v5152_v31  ;;  %v4321_v19 = vcombine.low %v6098_v15, %v4314_v16  ;;  %v778_v31 = vshll.u32 %v4373_v25, 16  ;;  %v5286_v25 = vld [vmem:[%s5769_s12 + $0xf4] ss:$16 sps:$4 sm:$0xff]  }
  0x6d   : > { %3363 = vmatprep.subr.bf16.mxu0 %v5157_v32  ;;  %v784_v32 = vshll.u32 %v4374_v26, 16  ;;  %v5228_v26 = vld [vmem:[%s7295_s1 + $0x250] ss:$8 sps:$4 sm:$0xff]   ;;  %430 = vst.msk [vmem:[#allocation2 + $0x1c8] sm:$0xff] %vm366_vm1, %v5286_v25 }
  0x6f   : > { %3072 = vmatpush1.bf16.msra.mxu1 %v5150_v35  ;;  %v766_v35 = vrot.slane %v764_v28, 5 }
  0x70   : > { %3364 = vmatpush1.bf16.msra.mxu0 %v5155_v38  ;;  %3073 = vmatprep.subr.bf16.mxu1 %v5160_v39  ;;  %v772_v38 = vrot.slane %v770_v29, 5  ;;  %v5213_v39 = vld [vmem:[%s7295_s1 + $0x620] ss:$8 sps:$4 sm:$0xff]  }
  0x71   : > { %3365 = vmatprep.subr.bf16.mxu0 %v5163_v42  ;;  %v767_v37 = vor.u32 %v766_v35, %v763_v34  ;;  %v786_v42 = vrot.slane %v784_v32, 5  ;;  %v4380_v34 = vld [vmem:[%s5769_s12 + $0x188] sm:$0x11] }
  0x73   : > { %3074 = vmatpush1.bf16.msra.mxu1 %v5158_v49  ;;  %v768_v46 = vrot.slane %v767_v37, 4  ;;  %v5221_v49 = vld [vmem:[%s7295_s1 + $0x634] ss:$8 sps:$4 sm:$0xff]   ;;  %v826_v37 = vshll.u32 %v4380_v34, 16 }
  0x74   : > { %3366 = vmatpush1.bf16.msra.mxu0 %v5161_v50  ;;  %3075 = vmatprep.subr.bf16.mxu1 %v5168_v52  ;;  %v5216_v52 = vld [vmem:[%s7295_s1 + $0x230] ss:$8 sps:$4 sm:$0xff]  }
  0x75   : > { %3367 = vmatprep.subr.bf16.mxu0 %v5173_v54  ;;  %v6158_v54 = vsel %vm6014_vm4, %v768_v46, %v772_v38 }
  0x77   : > { %3076 = vmatpush1.bf16.msra.mxu1 %v5166_v57 }
  0x78   : > { %3368 = vmatpush1.bf16.msra.mxu0 %v5171_v58  ;;  %3077 = vmatprep.subr.bf16.mxu1 %v5176_v59  ;;  %v4377_v58 = vld [vmem:[%s5769_s12 + $0x170] sm:$0xff]  ;;  %v4378_v59 = vld [vmem:[%s5769_s12 + $0x178] sm:$0x11] }
  0x79   : > { %3369 = vmatprep.subr.bf16.mxu0 %v5179_v60  ;;  %v789_v60 = vshrl.u32 %v4375_v55, 16 }
  0x7b   : > { %3078 = vmatpush1.bf16.msra.mxu1 %v5174_v61  ;;  %v792_v61 = vshll.u32 %v4375_v55, 16  ;;  %v5242_v55 = vld [vmem:[%s7295_s1 + $0x274] ss:$8 sps:$4 sm:$0xff]  }
  0x7c   : > { %3370 = vmatpush1.bf16.msra.mxu0 %v5177_v62  ;;  %3079 = vmatprep.subr.bf16.mxu1 %v5184_v63  ;;  %v5224_v63 = vld [vmem:[%s7295_s1 + $0x244] ss:$8 sps:$4 sm:$0xff]  }
  0x7d   : > { %3371 = vmatprep.subr.bf16.mxu0 %v5189_v0 }
  0x7f   : > { %3080 = vmatpush1.bf16.msra.mxu1 %v5182_v2  ;;  %v803_v2 = vshrl.u32 %v4377_v58, 16 }
  0x80   : > { %3372 = vmatpush1.bf16.msra.mxu0 %v5187_v3  ;;  %3081 = vmatprep.subr.bf16.mxu1 %v5192_v4  ;;  %v806_v3 = vshll.u32 %v4377_v58, 16  ;;  %v5227_v4 = vld [vmem:[%s7295_s1 + $0x644] ss:$8 sps:$4 sm:$0xff]  }
  0x81   : > { %3373 = vmatprep.subr.bf16.mxu0 %v5195_v5  ;;  %v791_v5 = vrot.slane %v789_v60, 4  ;;  %v5243_v60 = vld [vmem:[%s7295_s1 + $0x670] ss:$8 sps:$4 sm:$0xff]  }
  0x83   : > { %3082 = vmatpush1.bf16.msra.mxu1 %v5190_v6  ;;  %v794_v6 = vrot.slane %v792_v61, 5  ;;  %v1223_v61 = vld [vmem:[#allocation2 + $0x1c8] sm:$0xff] }
  0x84   : > { %3374 = vmatpush1.bf16.msra.mxu0 %v5193_v7  ;;  %3124 = vmatprep.subr.bf16.mxu1 %v5200_v8  ;;  %v812_v7 = vshll.u32 %v4378_v59, 16  ;;  %v5222_v8 = vld [vmem:[%s7295_s1 + $0x240] ss:$8 sps:$4 sm:$0xff]   ;;  %v5240_v59 = vld [vmem:[%s7295_s1 + $0x270] ss:$8 sps:$4 sm:$0xff]  }
  0x85   : > { %3416 = vmatprep.subr.bf16.mxu0 %v5203_v9  ;;  %v805_v9 = vrot.slane %v803_v2, 4  ;;  %v795_v15 = vor.u32 %v794_v6, %v791_v5 }
  0x86   : > { %3084 = vmatmul.mubr.bf16.vlgmr.msra.gmra.mrb[0].mxu1 %v4319_v14  ;;  %v780_v14 = vrot.slane %v778_v31, 5  ;;  %v5239_v31 = vld [vmem:[%s7295_s1 + $0x664] ss:$8 sps:$4 sm:$0xff]  }
  0x87   : > { %3376 = vmatmul.mubr.bf16.vlgmr.msra.gmra.mrb[0].mxu0 %v4383_v56  ;;  %3125 = vmatpush1.bf16.msra.mxu1 %v5198_v10  ;;  %v4376_v56 = vld [vmem:[%s5769_s12 + $0x168] sm:$0x11]  ;;  %v808_v10 = vrot.slane %v806_v3, 5  ;;  %v6256_v3 = vld [vmem:[%s5769_s12 + $0x10] sm:$0xff] }
  0x88   : > { %3417 = vmatpush1.bf16.msra.mxu0 %v5201_v13  ;;  %3126 = vmatprep.subr.bf16.mxu1 %v5206_v18  ;;  %v781_v41 = vor.u32 %v780_v14, %v777_v12  ;;  %v798_v62 = vshll.u32 %v4376_v56, 16  ;;  %v5225_v13 = vld [vmem:[%s7295_s1 + $0x640] ss:$8 sps:$4 sm:$0xff]   ;;  %v5233_v18 = vld [vmem:[%s7295_s1 + $0x654] ss:$8 sps:$4 sm:$0xff]  }
  0x89   : > { %3418 = vmatprep.subr.bf16.mxu0 %v5209_v20  ;;  %3093 = vmatprep.mubr.bf16.mxu1 %v1187_v45  ;;  %v814_v20 = vrot.slane %v812_v7, 5  ;;  %v4382_v12 = vld [vmem:[%s5769_s12 + $0x198] sm:$0x11] }
  0x8a   : > { %v782_v50 = vrot.slane %v781_v41, 4  ;;  %v800_v16 = vrot.slane %v798_v62, 5  ;;  %v840_v46 = vshll.u32 %v4382_v12, 16  ;;  %v5245_v56 = vld [vmem:[%s7295_s1 + $0x674] ss:$8 sps:$4 sm:$0xff]  }
  0x8b   : > { %3127 = vmatpush1.bf16.msra.mxu1 %v5204_v23  ;;  %v796_v23 = vrot.slane %v795_v15, 4  ;;  %v5251_v15 = vld [vmem:[%s7295_s1 + $0x684] ss:$8 sps:$4 sm:$0xff]  }
  0x8c   : > { %3419 = vmatpush1.bf16.msra.mxu0 %v5207_v24  ;;  %3128 = vmatprep.subr.bf16.mxu1 %v5212_v33  ;;  %v6165_v57 = vsel %vm6014_vm4, %v782_v50, %v786_v42  ;;  %v6196_v24 = vld [vmem:[%s5769_s12 + $0x100] sm:$0xff]  ;;  %v842_v58 = vrot.slane %v840_v46, 5  ;;  %v5268_v46 = vld [vmem:[%s7295_s1 + $0x2b4] ss:$8 sps:$4 sm:$0xff]  }
  0x8d   : > { %3420 = vmatprep.subr.bf16.mxu0 %v5215_v11  ;;  %v4386_v0 = vcombine.high %v6158_v54, %v6165_v57  ;;  %v4385_v1 = vcombine.low %v6158_v54, %v6165_v57  ;;  %v4325_v29 = vcombine.low %v6193_v21, %v6196_v24  ;;  %v6215_v32 = vsel %vm6014_vm4, %v796_v23, %v800_v16  ;;  %v4379_v33 = vld [vmem:[%s5769_s12 + $0x180] sm:$0xff]  ;;  %v4381_v11 = vld [vmem:[%s5769_s12 + $0x190] sm:$0xff] }
  0x8e   : > { %3094 = vmatmul.mubr.bf16.gmra.mrb[4].mxu1 %v4321_v19  ;;  %v809_v19 = vor.u32 %v808_v10, %v805_v9  ;;  %v817_v14 = vshrl.u32 %v4379_v33, 16  ;;  %v831_v41 = vshrl.u32 %v4381_v11, 16  ;;  %v834_v42 = vshll.u32 %v4381_v11, 16  ;;  %v5234_v50 = vld [vmem:[%s7295_s1 + $0x260] ss:$8 sps:$4 sm:$0xff]  }
  0x8f   : > { %3129 = vmatpush1.bf16.msra.mxu1 %v5210_v36  ;;  %879 = vst.msk [vmem:[#allocation2 + $0xe8] sm:$0xff] %vm366_vm1, %v4386_v0  ;;  %3103 = vmatprep.mubr.bf16.mxu1 %v1205_v22  ;;  %v820_v36 = vshll.u32 %v4379_v33, 16  ;;  %v4349_v54 = vcombine.low %v4379_v33, %v4381_v11  ;;  %v432_v0 = vld [vmem:[%s5769_s12 + $0x8] sm:$0x11]  ;;  %v465_v9 = vshrl.u32 %v6256_v3, 16  ;;  %v468_v10 = vshll.u32 %v6256_v3, 16 }
  0x90   : > { %3421 = vmatpush1.bf16.msra.mxu0 %v5213_v39  ;;  %3130 = vmatprep.subr.bf16.mxu1 %v5218_v40  ;;  %v810_v28 = vrot.slane %v809_v19, 4  ;;  %v819_v44 = vrot.slane %v817_v14, 4  ;;  %v833_v47 = vrot.slane %v831_v41, 4  ;;  %v836_v48 = vrot.slane %v834_v42, 5  ;;  %v5254_v21 = vld [vmem:[%s7295_s1 + $0x294] ss:$8 sps:$4 sm:$0xff]  }
  0x91   : > { %3422 = vmatprep.subr.bf16.mxu0 %v5221_v49  ;;  %v822_v45 = vrot.slane %v820_v36, 5  ;;  %v4350_v49 = vcombine.high %v4379_v33, %v4381_v11  ;;  %657 = vst [vmem:[#allocation2 + $0x1e0] sm:$0xff] %v4349_v54  ;;  %v467_v25 = vrot.slane %v465_v9, 4  ;;  %v5252_v14 = vld [vmem:[%s7295_s1 + $0x290] ss:$8 sps:$4 sm:$0xff]  }
  0x92   : > { %v6222_v35 = vsel %vm6014_vm4, %v810_v28, %v814_v20  ;;  %v837_v57 = vor.u32 %v836_v48, %v833_v47  ;;  %v5255_v36 = vld [vmem:[%s7295_s1 + $0x690] ss:$8 sps:$4 sm:$0xff]   ;;  %v5271_v47 = vld [vmem:[%s7295_s1 + $0x6b4] ss:$8 sps:$4 sm:$0xff]   ;;  %v5277_v54 = vld [vmem:[%s7295_s1 + $0x6c0] ss:$8 sps:$4 sm:$0xff]  }
  0x93   : > { %3131 = vmatpush1.bf16.msra.mxu1 %v5216_v52  ;;  %v4388_v39 = vcombine.high %v6215_v32, %v6222_v35  ;;  %v4387_v40 = vcombine.low %v6215_v32, %v6222_v35  ;;  %v823_v52 = vor.u32 %v822_v45, %v819_v44  ;;  %658 = vst.msk [vmem:[#allocation2 + $0x1e8] sm:$0xff] %vm366_vm1, %v4350_v49  ;;  %v5262_v32 = vld [vmem:[%s7295_s1 + $0x2a4] ss:$8 sps:$4 sm:$0xff]   ;;  %v5260_v44 = vld [vmem:[%s7295_s1 + $0x2a0] ss:$8 sps:$4 sm:$0xff]   ;;  %v6384_v9 = vld [vmem:[%s5769_s12 + $0x30] sm:$0xff] }
  0x94   : > { %3423 = vmatpush1.bf16.msra.mxu0 %v5219_v53  ;;  %3132 = vmatprep.subr.bf16.mxu1 %v5224_v63  ;;  %v828_v53 = vrot.slane %v826_v37, 5  ;;  %v431_v63 = vld [vmem:[%s5769_s12] sm:$0xff]  ;;  %v838_v2 = vrot.slane %v837_v57, 4  ;;  %v5266_v49 = vld [vmem:[%s7295_s1 + $0x2b0] ss:$8 sps:$4 sm:$0xff]  }
  0x95   : > { %3424 = vmatprep.subr.bf16.mxu0 %v5227_v4  ;;  %881 = vst.msk [vmem:[#allocation2 + $0x178] sm:$0xff] %vm366_vm1, %v4388_v39  ;;  %v824_v62 = vrot.slane %v823_v52, 4  ;;  %v434_v4 = vld [vmem:[%s5769_s12 + $0x18] sm:$0x11]  ;;  %v451_v5 = vshrl.u32 %v431_v63, 16  ;;  %v454_v6 = vshll.u32 %v431_v63, 16 }
  0x96   : > { %3104 = vmatmul.mubr.bf16.gmra.mrb[8].mxu1 %v4323_v51  ;;  %v1195_v38 = vld [vmem:[#allocation2 + $0xe8] sm:$0xff]  ;;  %v843_v16 = vsel %vm6014_vm4, %v838_v2, %v842_v58  ;;  %v474_v19 = vshll.u32 %v434_v4, 16 }
  0x97   : > { %3133 = vmatpush1.bf16.msra.mxu1 %v5222_v8  ;;  %3385 = vmatprep.mubr.bf16.mxu0 %v1195_v38  ;;  %v5237_v51 = vld [vmem:[%s7295_s1 + $0x660] ss:$8 sps:$4 sm:$0xff]   ;;  %v829_v7 = vsel %vm6014_vm4, %v824_v62, %v828_v53  ;;  %v460_v8 = vshll.u32 %v432_v0, 16  ;;  %v5265_v35 = vld [vmem:[%s7295_s1 + $0x6a4] ss:$8 sps:$4 sm:$0xff]  }
  0x98   : > { %3425 = vmatpush1.bf16.msra.mxu0 %v5225_v13  ;;  %3134 = vmatprep.subr.bf16.mxu1 %v5230_v17  ;;  %v6264_v13 = vld [vmem:[%s5769_s12 + $0x20] sm:$0xff]  ;;  %v453_v17 = vrot.slane %v451_v5, 4  ;;  %v4390_v22 = vcombine.high %v829_v7, %v843_v16  ;;  %v4389_v23 = vcombine.low %v829_v7, %v843_v16  ;;  %v476_v12 = vrot.slane %v474_v19, 5  ;;  %v5296_v5 = vld [vmem:[%s7295_s1 + $0x2f4] ss:$8 sps:$4 sm:$0xff]  }
  0x99   : > { %3426 = vmatprep.subr.bf16.mxu0 %v5233_v18  ;;  %3386 = vmatmul.mubr.bf16.gmra.mrb[4].mxu0 %v4385_v1  ;;  %v5248_v1 = vld [vmem:[%s7295_s1 + $0x284] ss:$8 sps:$4 sm:$0xff]   ;;  %v456_v18 = vrot.slane %v454_v6, 5  ;;  %v4400_v33 = vcombine.high %v6256_v3, %v6264_v13  ;;  %v4399_v24 = vcombine.low %v6256_v3, %v6264_v13  ;;  %v5263_v45 = vld [vmem:[%s7295_s1 + $0x6a0] ss:$8 sps:$4 sm:$0xff]   ;;  %v479_v57 = vshrl.u32 %v6264_v13, 16 }
  0x9a   : > { %3113 = vmatprep.mubr.bf16.mxu1 %v1223_v61  ;;  %883 = vst.msk [vmem:[#allocation2 + $0x208] sm:$0xff] %vm366_vm1, %v4390_v22  ;;  %v5279_v52 = vld [vmem:[%s7295_s1 + $0x6c4] ss:$8 sps:$4 sm:$0xff]   ;;  %v5274_v53 = vld [vmem:[%s7295_s1 + $0x2c0] ss:$8 sps:$4 sm:$0xff]   ;;  %v482_v58 = vshll.u32 %v6264_v13, 16 }
  0x9b   : > { %3135 = vmatpush1.bf16.msra.mxu1 %v5228_v26  ;;  %v5246_v26 = vld [vmem:[%s7295_s1 + $0x280] ss:$8 sps:$4 sm:$0xff]   ;;  %v457_v28 = vor.u32 %v456_v18, %v453_v17  ;;  %934 = vst.msk [vmem:[#allocation2 + $0x68] sm:$0xff] %vm366_vm1, %v4400_v33  ;;  %v5283_v61 = vld [vmem:[%s7295_s1 + $0x6d0] ss:$8 sps:$4 sm:$0xff]   ;;  %v481_v63 = vrot.slane %v479_v57, 4 }
  0x9c   : > { %3427 = vmatpush1.bf16.msra.mxu0 %v5231_v27  ;;  %3136 = vmatprep.subr.bf16.mxu1 %v5236_v30  ;;  %v1213_v20 = vld [vmem:[#allocation2 + $0x178] sm:$0xff]  ;;  %v5249_v27 = vld [vmem:[%s7295_s1 + $0x680] ss:$8 sps:$4 sm:$0xff]   ;;  %v462_v30 = vrot.slane %v460_v8, 5  ;;  %v5290_v62 = vld [vmem:[%s7295_s1 + $0x2e4] ss:$8 sps:$4 sm:$0xff]  }
  0x9d   : > { %3428 = vmatprep.subr.bf16.mxu0 %v5239_v31  ;;  %3395 = vmatprep.mubr.bf16.mxu0 %v1213_v20  ;;  %v470_v31 = vrot.slane %v468_v10, 5  ;;  %v458_v34 = vrot.slane %v457_v28, 4  ;;  %v484_v0 = vrot.slane %v482_v58, 5  ;;  %v5288_v2 = vld [vmem:[%s7295_s1 + $0x2e0] ss:$8 sps:$4 sm:$0xff]   ;;  %v493_v16 = vshrl.u32 %v6384_v9, 16 }
  0x9e   : > { %3114 = vmatmul.mubr.bf16.gmra.mrb[12].mxu1 %v4325_v29  ;;  %v5257_v29 = vld [vmem:[%s7295_s1 + $0x694] ss:$8 sps:$4 sm:$0xff]   ;;  %v5291_v4 = vld [vmem:[%s7295_s1 + $0x6e0] ss:$8 sps:$4 sm:$0xff]   ;;  %v496_v17 = vshll.u32 %v6384_v9, 16 }
  0x9f   : > { %3137 = vmatpush1.bf16.msra.mxu1 %v5234_v50  ;;  %v471_v11 = vor.u32 %v470_v31, %v467_v25  ;;  %v6303_v37 = vsel %vm6014_vm4, %v458_v34, %v462_v30  ;;  %v5269_v50 = vld [vmem:[%s7295_s1 + $0x6b0] ss:$8 sps:$4 sm:$0xff]   ;;  %v5299_v6 = vld [vmem:[%s7295_s1 + $0x6f4] ss:$8 sps:$4 sm:$0xff]   ;;  %v485_v7 = vor.u32 %v484_v0, %v481_v63  ;;  %v436_v8 = vld [vmem:[%s5769_s12 + $0x28] sm:$0x11] }
  0xa0   : > { %3429 = vmatpush1.bf16.msra.mxu0 %v5237_v51  ;;  %3138 = vmatprep.subr.bf16.mxu1 %v5242_v55  ;;  %v5276_v51 = vld [vmem:[%s7295_s1 + $0x2c4] ss:$8 sps:$4 sm:$0xff]   ;;  %v438_v10 = vld [vmem:[%s5769_s12 + $0x38] sm:$0x11]  ;;  %v5303_v34 = vld [vmem:[%s7295_s1 + $0x700] ss:$8 sps:$4 sm:$0xff]  }
  0xa1   : > { %3430 = vmatprep.subr.bf16.mxu0 %v5245_v56  ;;  %3396 = vmatmul.mubr.bf16.gmra.mrb[8].mxu0 %v4387_v40  ;;  %v472_v38 = vrot.slane %v471_v11, 4  ;;  %v1231_v42 = vld [vmem:[#allocation2 + $0x208] sm:$0xff]  ;;  %v5282_v56 = vld [vmem:[%s7295_s1 + $0x2d4] ss:$8 sps:$4 sm:$0xff]   ;;  %v502_v18 = vshll.u32 %v438_v10, 16  ;;  %v6396_v22 = vld [vmem:[%s5769_s12 + $0x40] sm:$0xff] }
  0xa2   : > { %3405 = vmatprep.mubr.bf16.mxu0 %v1231_v42  ;;  %v1179_v48 = vld [vmem:[#allocation2 + $0x68] sm:$0xff]  ;;  %v5294_v19 = vld [vmem:[%s7295_s1 + $0x2f0] ss:$8 sps:$4 sm:$0xff]   ;;  %v4402_v31 = vcombine.high %v6384_v9, %v6396_v22  ;;  %v4401_v33 = vcombine.low %v6384_v9, %v6396_v22  ;;  %v6461_v57 = vld [vmem:[%s5769_s12 + $0x60] sm:$0xff] }
  0xa3   : > { %3139 = vmatpush1.bf16.msra.mxu1 %v5240_v59  ;;  %v6313_v39 = vsel %vm6014_vm4, %v472_v38, %v476_v12  ;;  %v5285_v59 = vld [vmem:[%s7295_s1 + $0x6d4] ss:$8 sps:$4 sm:$0xff]   ;;  %v5297_v20 = vld [vmem:[%s7295_s1 + $0x6f0] ss:$8 sps:$4 sm:$0xff]   ;;  %v5302_v28 = vld [vmem:[%s7295_s1 + $0x304] ss:$8 sps:$4 sm:$0xff]  }
  0xa4   : > { %3431 = vmatpush1.bf16.msra.mxu0 %v5243_v60  ;;  %3140 = vmatprep.subr.bf16.mxu1 %v5248_v1  ;;  %v4328_v40 = vcombine.high %v6303_v37, %v6313_v39  ;;  %v4327_v41 = vcombine.low %v6303_v37, %v6313_v39  ;;  %v5280_v60 = vld [vmem:[%s7295_s1 + $0x2d0] ss:$8 sps:$4 sm:$0xff]   ;;  %v5293_v1 = vld [vmem:[%s7295_s1 + $0x6e4] ss:$8 sps:$4 sm:$0xff]   ;;  %v504_v12 = vrot.slane %v502_v18, 5  ;;  %936 = vst.msk [vmem:[#allocation2 + $0xf8] sm:$0xff] %vm366_vm1, %v4402_v31 }
  0xa5   : > { %3432 = vmatprep.subr.bf16.mxu0 %v5251_v15  ;;  %v488_v15 = vshll.u32 %v436_v8, 16  ;;  %v5305_v30 = vld [vmem:[%s7295_s1 + $0x704] ss:$8 sps:$4 sm:$0xff]  }
  0xa6   : > { %595 = vst.msk [vmem:[#allocation2 + $0x28] sm:$0xff] %vm366_vm1, %v4328_v40  ;;  %v440_v42 = vld [vmem:[%s5769_s12 + $0x48] sm:$0x11] }
  0xa7   : > { %3141 = vmatpush1.bf16.msra.mxu1 %v5246_v26  ;;  %v490_v25 = vrot.slane %v488_v15, 5  ;;  %v495_v26 = vrot.slane %v493_v16, 4  ;;  %v5314_v3 = vld [vmem:[%s7295_s1 + $0x324] ss:$8 sps:$4 sm:$0xff]   ;;  %v6500_v15 = vld [vmem:[%s5769_s12 + $0x70] sm:$0xff] }
  0xa8   : > { %3433 = vmatpush1.bf16.msra.mxu0 %v5249_v27  ;;  %3142 = vmatprep.subr.bf16.mxu1 %v5254_v21  ;;  %v498_v27 = vrot.slane %v496_v17, 5  ;;  %v507_v21 = vshrl.u32 %v6396_v22, 16  ;;  %v444_v10 = vld [vmem:[%s5769_s12 + $0x68] sm:$0x11]  ;;  %v446_v16 = vld [vmem:[%s5769_s12 + $0x78] sm:$0x11] }
  0xa9   : > { %3434 = vmatprep.subr.bf16.mxu0 %v5257_v29  ;;  %3406 = vmatmul.mubr.bf16.gmra.mrb[12].mxu0 %v4389_v23  ;;  %v6398_v23 = vrot.slane %v485_v7, 4  ;;  %v5300_v29 = vld [vmem:[%s7295_s1 + $0x300] ss:$8 sps:$4 sm:$0xff]   ;;  %v544_v18 = vshll.u32 %v444_v10, 16  ;;  %v5326_v9 = vld [vmem:[%s7295_s1 + $0x344] ss:$8 sps:$4 sm:$0xff]  }
  0xaa   : > { %3448 = vmatprep.mubr.bf16.mxu0 %v1179_v48  ;;  %v499_v11 = vor.u32 %v498_v27, %v495_v26  ;;  %v509_v38 = vrot.slane %v507_v21, 4  ;;  %v558_v27 = vshll.u32 %v446_v16, 16  ;;  %v6629_v10 = vld [vmem:[%s5769_s12 + $0x160] sm:$0xff] }
  0xab   : > { %3143 = vmatpush1.bf16.msra.mxu1 %v5252_v14  ;;  %v510_v14 = vshll.u32 %v6396_v22, 16  ;;  %v1197_v63 = vld [vmem:[#allocation2 + $0xf8] sm:$0xff]  ;;  %v5329_v22 = vld [vmem:[%s7295_s1 + $0x744] ss:$8 sps:$4 sm:$0xff]  }
  0xac   : > { %3435 = vmatpush1.bf16.msra.mxu0 %v5255_v36  ;;  %3144 = vmatprep.subr.bf16.mxu1 %v5262_v32  ;;  %v5308_v36 = vld [vmem:[%s7295_s1 + $0x314] ss:$8 sps:$4 sm:$0xff]   ;;  %v6430_v40 = vrot.slane %v499_v11, 4  ;;  %v546_v11 = vrot.slane %v544_v18, 5 }
  0xad   : > { %3436 = vmatprep.subr.bf16.mxu0 %v5265_v35  ;;  %v1171_v55 = vld [vmem:[#allocation2 + $0x28] sm:$0xff]  ;;  %v5311_v32 = vld [vmem:[%s7295_s1 + $0x714] ss:$8 sps:$4 sm:$0xff]   ;;  %v6428_v35 = vsel %vm6014_vm4, %v6398_v23, %v490_v25  ;;  %v5318_v25 = vld [vmem:[%s7295_s1 + $0x330] ss:$8 sps:$4 sm:$0xff]  }
  0xae   : > { %3156 = vmatprep.mubr.bf16.mxu1 %v1171_v55 }
  0xaf   : > { %3145 = vmatpush1.bf16.msra.mxu1 %v5260_v44  ;;  %v6434_v44 = vld [vmem:[%s5769_s12 + $0x50] sm:$0xff] }
  0xb0   : > { %3437 = vmatpush1.bf16.msra.mxu0 %v5263_v45  ;;  %3146 = vmatprep.subr.bf16.mxu1 %v5268_v46  ;;  %v442_v45 = vld [vmem:[%s5769_s12 + $0x58] sm:$0x11]  ;;  %v512_v46 = vrot.slane %v510_v14, 5  ;;  %v521_v48 = vshrl.u32 %v6434_v44, 16  ;;  %v4404_v39 = vcombine.high %v6434_v44, %v6461_v57 }
  0xb1   : > { %3438 = vmatprep.subr.bf16.mxu0 %v5271_v47  ;;  %v516_v47 = vshll.u32 %v440_v42, 16  ;;  %v5324_v42 = vld [vmem:[%s7295_s1 + $0x340] ss:$8 sps:$4 sm:$0xff]  }
  0xb2   : > { %938 = vst.msk [vmem:[#allocation2 + $0x188] sm:$0xff] %vm366_vm1, %v4404_v39  ;;  %v5333_v39 = vld [vmem:[%s7295_s1 + $0x750] ss:$8 sps:$4 sm:$0xff]  }
  0xb3   : > { %3147 = vmatpush1.bf16.msra.mxu1 %v5266_v49  ;;  %v524_v49 = vshll.u32 %v6434_v44, 16  ;;  %v518_v13 = vrot.slane %v516_v47, 5  ;;  %v560_v47 = vrot.slane %v558_v27, 5  ;;  %v5348_v27 = vld [vmem:[%s7295_s1 + $0x380] ss:$8 sps:$4 sm:$0xff]  }
  0xb4   : > { %3439 = vmatpush1.bf16.msra.mxu0 %v5269_v50  ;;  %3148 = vmatprep.subr.bf16.mxu1 %v5276_v51  ;;  %v5306_v50 = vld [vmem:[%s7295_s1 + $0x310] ss:$8 sps:$4 sm:$0xff]   ;;  %v6445_v51 = vsel %vm6014_vm4, %v6430_v40, %v504_v12 }
  0xb5   : > { %3440 = vmatprep.subr.bf16.mxu0 %v5279_v52  ;;  %v530_v52 = vshll.u32 %v442_v45, 16  ;;  %v4329_v55 = vcombine.low %v6428_v35, %v6445_v51  ;;  %v526_v37 = vrot.slane %v524_v49, 5  ;;  %v5327_v45 = vld [vmem:[%s7295_s1 + $0x740] ss:$8 sps:$4 sm:$0xff]   ;;  %v5335_v49 = vld [vmem:[%s7295_s1 + $0x754] ss:$8 sps:$4 sm:$0xff]  }
  0xb7   : > { %3149 = vmatpush1.bf16.msra.mxu1 %v5274_v53  ;;  %v5309_v53 = vld [vmem:[%s7295_s1 + $0x710] ss:$8 sps:$4 sm:$0xff]  }
  0xb8   : > { %3441 = vmatpush1.bf16.msra.mxu0 %v5277_v54  ;;  %3150 = vmatprep.subr.bf16.mxu1 %v5282_v56  ;;  %v4330_v54 = vcombine.high %v6428_v35, %v6445_v51  ;;  %v513_v56 = vor.u32 %v512_v46, %v509_v38  ;;  %v5396_v35 = vld [vmem:[%s5769_s12 + $0x124] ss:$16 sps:$4 sm:$0xff]  }
  0xb9   : > { %3442 = vmatprep.subr.bf16.mxu0 %v5285_v59  ;;  %v4403_v59 = vcombine.low %v6434_v44, %v6461_v57  ;;  %652 = vst.msk [vmem:[#allocation2 + $0x38] sm:$0xff] %vm366_vm1, %v5396_v35  ;;  %v5341_v44 = vld [vmem:[%s7295_s1 + $0x764] ss:$8 sps:$4 sm:$0xff]  }
  0xba   : > { %597 = vst.msk [vmem:[#allocation2 + $0xb8] sm:$0xff] %vm366_vm1, %v4330_v54  ;;  %v6472_v58 = vrot.slane %v513_v56, 4  ;;  %v6566_v54 = vld [vmem:[%s5769_s12 + $0x130] sm:$0xff] }
  0xbb   : > { %3151 = vmatpush1.bf16.msra.mxu1 %v5280_v60  ;;  %v535_v60 = vshrl.u32 %v6461_v57, 16  ;;  %v6575_v56 = vld [vmem:[%s5769_s12 + $0xb0] sm:$0xff] }
  0xbc   : > { %3443 = vmatpush1.bf16.msra.mxu0 %v5283_v61  ;;  %3152 = vmatprep.subr.bf16.mxu1 %v5290_v62  ;;  %v5312_v61 = vld [vmem:[%s7295_s1 + $0x320] ss:$8 sps:$4 sm:$0xff]   ;;  %v6494_v7 = vsel %vm6014_vm4, %v6472_v58, %v518_v13  ;;  %v5398_v13 = vld [vmem:[%s5769_s12 + $0xa4] ss:$16 sps:$4 sm:$0xff]  }
  0xbd   : > { %3444 = vmatprep.subr.bf16.mxu0 %v5293_v1  ;;  %v5315_v62 = vld [vmem:[%s7295_s1 + $0x720] ss:$8 sps:$4 sm:$0xff]   ;;  %v532_v1 = vrot.slane %v530_v52, 5  ;;  %991 = vst.msk [vmem:[#allocation2 + $0x78] sm:$0xff] %vm366_vm1, %v5398_v13 }
  0xbf   : > { %3153 = vmatpush1.bf16.msra.mxu1 %v5288_v2  ;;  %v538_v2 = vshll.u32 %v6461_v57, 16 }
  0xc0   : > { %3445 = vmatpush1.bf16.msra.mxu0 %v5291_v4  ;;  %3154 = vmatprep.subr.bf16.mxu1 %v5296_v5  ;;  %v5320_v4 = vld [vmem:[%s7295_s1 + $0x334] ss:$8 sps:$4 sm:$0xff]   ;;  %v537_v5 = vrot.slane %v535_v60, 4 }
  0xc1   : > { %3446 = vmatprep.subr.bf16.mxu0 %v5299_v6  ;;  %v5323_v6 = vld [vmem:[%s7295_s1 + $0x734] ss:$8 sps:$4 sm:$0xff]   ;;  %v540_v17 = vrot.slane %v538_v2, 5  ;;  %v5339_v2 = vld [vmem:[%s7295_s1 + $0x760] ss:$8 sps:$4 sm:$0xff]  }
  0xc3   : > { %3155 = vmatpush1.bf16.msra.mxu1 %v5294_v19  ;;  %v549_v19 = vshrl.u32 %v6500_v15, 16  ;;  %v541_v21 = vor.u32 %v540_v17, %v537_v5  ;;  %v5344_v5 = vld [vmem:[%s7295_s1 + $0x374] ss:$8 sps:$4 sm:$0xff]   ;;  %v5342_v17 = vld [vmem:[%s7295_s1 + $0x370] ss:$8 sps:$4 sm:$0xff]  }
  0xc4   : > { %3447 = vmatpush1.bf16.msra.mxu0 %v5297_v20  ;;  %3197 = vmatprep.subr.bf16.mxu1 %v5302_v28  ;;  %v552_v20 = vshll.u32 %v6500_v15, 16  ;;  %v5321_v28 = vld [vmem:[%s7295_s1 + $0x730] ss:$8 sps:$4 sm:$0xff]  }
  0xc5   : > { %3489 = vmatprep.subr.bf16.mxu0 %v5305_v30  ;;  %v551_v12 = vrot.slane %v549_v19, 4  ;;  %v6535_v38 = vrot.slane %v541_v21, 4  ;;  %v1181_v18 = vld [vmem:[#allocation2 + $0x78] sm:$0xff] }
  0xc6   : > { %3157 = vmatmul.mubr.bf16.vlgmr.msra.gmra.mrb[0].mxu1 %v4327_v41  ;;  %v5317_v41 = vld [vmem:[%s7295_s1 + $0x724] ss:$8 sps:$4 sm:$0xff]   ;;  %v554_v14 = vrot.slane %v552_v20, 5  ;;  %v5345_v19 = vld [vmem:[%s7295_s1 + $0x770] ss:$8 sps:$4 sm:$0xff]  }
  0xc7   : > { %3449 = vmatmul.mubr.bf16.vlgmr.msra.gmra.mrb[0].mxu0 %v4399_v24  ;;  %3198 = vmatpush1.bf16.msra.mxu1 %v5300_v29  ;;  %v523_v24 = vrot.slane %v521_v48, 4  ;;  %v6524_v29 = vld [vmem:[%s5769_s12 + $0x80] sm:$0xff]  ;;  %v5332_v48 = vld [vmem:[%s7295_s1 + $0x354] ss:$8 sps:$4 sm:$0xff]  }
  0xc8   : > { %3490 = vmatpush1.bf16.msra.mxu0 %v5303_v34  ;;  %3199 = vmatprep.subr.bf16.mxu1 %v5308_v36  ;;  %v1189_v34 = vld [vmem:[#allocation2 + $0xb8] sm:$0xff]  ;;  %v4406_v36 = vcombine.high %v6500_v15, %v6524_v29  ;;  %v555_v46 = vor.u32 %v554_v14, %v551_v12  ;;  %v5362_v12 = vld [vmem:[%s7295_s1 + $0x3a4] ss:$8 sps:$4 sm:$0xff]  }
  0xc9   : > { %3491 = vmatprep.subr.bf16.mxu0 %v5311_v32  ;;  %v527_v0 = vor.u32 %v526_v37, %v523_v24  ;;  %3458 = vmatprep.mubr.bf16.mxu0 %v1197_v63  ;;  %v4405_v32 = vcombine.low %v6500_v15, %v6524_v29  ;;  %v5330_v37 = vld [vmem:[%s7295_s1 + $0x350] ss:$8 sps:$4 sm:$0xff]   ;;  %v5414_v15 = vld [vmem:[%s5769_s12 + $0x164] ss:$16 sps:$4 sm:$0xff]  }
  0xca   : > { %3166 = vmatprep.mubr.bf16.mxu1 %v1189_v34  ;;  %940 = vst.msk [vmem:[#allocation2 + $0x218] sm:$0xff] %vm366_vm1, %v4406_v36  ;;  %v6560_v52 = vrot.slane %v555_v46, 4  ;;  %v6607_v63 = vld [vmem:[%s5769_s12 + $0x150] sm:$0xff]  ;;  %656 = vst.msk [vmem:[#allocation2 + $0x158] sm:$0xff] %vm366_vm1, %v5414_v15  ;;  %v5365_v14 = vld [vmem:[%s7295_s1 + $0x7a4] ss:$8 sps:$4 sm:$0xff]  }
  0xcb   : > { %3200 = vmatpush1.bf16.msra.mxu1 %v5306_v50  ;;  %v6496_v8 = vrot.slane %v527_v0, 4  ;;  %v6558_v50 = vsel %vm6014_vm4, %v6535_v38, %v546_v11  ;;  %v5406_v0 = vld [vmem:[%s5769_s12 + $0x144] ss:$16 sps:$4 sm:$0xff]   ;;  %v5354_v34 = vld [vmem:[%s7295_s1 + $0x390] ss:$8 sps:$4 sm:$0xff]  }
  0xcc   : > { %3492 = vmatpush1.bf16.msra.mxu0 %v5309_v53  ;;  %3201 = vmatprep.subr.bf16.mxu1 %v5314_v3  ;;  %v6563_v53 = vld [vmem:[%s5769_s12 + $0x120] sm:$0xff]  ;;  %v561_v3 = vsel %vm6014_vm4, %v6560_v52, %v560_v47  ;;  %654 = vst.msk [vmem:[#allocation2 + $0xc8] sm:$0xff] %vm366_vm1, %v5406_v0  ;;  %v5359_v21 = vld [vmem:[%s7295_s1 + $0x794] ss:$8 sps:$4 sm:$0xff]   ;;  %v5357_v11 = vld [vmem:[%s7295_s1 + $0x790] ss:$8 sps:$4 sm:$0xff]  }
  0xcd   : > { %3493 = vmatprep.subr.bf16.mxu0 %v5317_v41  ;;  %v6511_v26 = vsel %vm6014_vm4, %v6496_v8, %v532_v1  ;;  %v4343_v51 = vcombine.low %v6563_v53, %v6566_v54  ;;  %v4334_v41 = vcombine.high %v6558_v50, %v561_v3  ;;  %v4333_v60 = vcombine.low %v6558_v50, %v561_v3  ;;  %v5336_v1 = vld [vmem:[%s7295_s1 + $0x360] ss:$8 sps:$4 sm:$0xff]   ;;  %v5368_v47 = vld [vmem:[%s7295_s1 + $0x3b4] ss:$8 sps:$4 sm:$0xff]  }
  0xce   : > { %v4332_v30 = vcombine.high %v6494_v7, %v6511_v26  ;;  %v4331_v31 = vcombine.low %v6494_v7, %v6511_v26  ;;  %3167 = vmatmul.mubr.bf16.gmra.mrb[4].mxu1 %v4329_v55  ;;  %v6572_v55 = vld [vmem:[%s5769_s12 + $0xa0] sm:$0xff]  ;;  %v6632_v7 = vld [vmem:[%s5769_s12 + $0x170] sm:$0xff] }
  0xcf   : > { %3459 = vmatmul.mubr.bf16.gmra.mrb[4].mxu0 %v4401_v33  ;;  %3202 = vmatpush1.bf16.msra.mxu1 %v5312_v61  ;;  %v1215_v33 = vld [vmem:[#allocation2 + $0x188] sm:$0xff]  ;;  %v4415_v24 = vcombine.low %v6572_v55, %v6575_v56  ;;  %601 = vst.msk [vmem:[#allocation2 + $0x1d8] sm:$0xff] %vm366_vm1, %v4334_v41  ;;  %v4347_v16 = vcombine.low %v6629_v10, %v6632_v7  ;;  %v6675_v36 = vld [vmem:[%s5769_s12 + $0xc0] sm:$0xff]  ;;  %v5371_v50 = vld [vmem:[%s7295_s1 + $0x7b4] ss:$8 sps:$4 sm:$0xff]  }
  0xd0   : > { %3494 = vmatpush1.bf16.msra.mxu0 %v5315_v62  ;;  %3203 = vmatprep.subr.bf16.mxu1 %v5320_v4  ;;  %599 = vst.msk [vmem:[#allocation2 + $0x148] sm:$0xff] %vm366_vm1, %v4332_v30  ;;  %v5338_v61 = vld [vmem:[%s7295_s1 + $0x364] ss:$8 sps:$4 sm:$0xff]   ;;  %v1173_v30 = vld [vmem:[#allocation2 + $0x38] sm:$0xff]  ;;  %v5363_v46 = vld [vmem:[%s7295_s1 + $0x7a0] ss:$8 sps:$4 sm:$0xff]  }
  0xd1   : > { %3495 = vmatprep.subr.bf16.mxu0 %v5323_v6  ;;  %3468 = vmatprep.mubr.bf16.mxu0 %v1215_v33  ;;  %v1233_v57 = vld [vmem:[#allocation2 + $0x218] sm:$0xff]  ;;  %v5353_v26 = vld [vmem:[%s7295_s1 + $0x784] ss:$8 sps:$4 sm:$0xff]   ;;  %v4423_v15 = vld [vmem:[%s5769_s12 + $0x10] sm:$0xff] }
  0xd2   : > { %v5347_v6 = vld [vmem:[%s7295_s1 + $0x774] ss:$8 sps:$4 sm:$0xff]   ;;  %v6715_v41 = vld [vmem:[%s5769_s12 + $0x100] sm:$0xff]  ;;  %v5411_v56 = vld [vmem:[%s7295_s1 + $0x830] ss:$8 sps:$4 sm:$0xff]  }
  0xd3   : > { %3204 = vmatpush1.bf16.msra.mxu1 %v5318_v25  ;;  %v5350_v25 = vld [vmem:[%s7295_s1 + $0x384] ss:$8 sps:$4 sm:$0xff]   ;;  %v5408_v53 = vld [vmem:[%s7295_s1 + $0x820] ss:$8 sps:$4 sm:$0xff]   ;;  %v5413_v54 = vld [vmem:[%s7295_s1 + $0x834] ss:$8 sps:$4 sm:$0xff]  }
  0xd4   : > { %3496 = vmatpush1.bf16.msra.mxu0 %v5321_v28  ;;  %3205 = vmatprep.subr.bf16.mxu1 %v5326_v9  ;;  %v5351_v28 = vld [vmem:[%s7295_s1 + $0x780] ss:$8 sps:$4 sm:$0xff]   ;;  %v6678_v9 = vld [vmem:[%s5769_s12 + $0xd0] sm:$0xff] }
  0xd5   : > { %3497 = vmatprep.subr.bf16.mxu0 %v5329_v22  ;;  %v5434_v22 = vld [vmem:[%s5769_s12 + $0xc4] ss:$16 sps:$4 sm:$0xff]   ;;  %v4417_v33 = vcombine.low %v6675_v36, %v6678_v9  ;;  %v5419_v9 = vld [vmem:[%s7295_s1 + $0x850] ss:$8 sps:$4 sm:$0xff]   ;;  %v5422_v10 = vld [vmem:[%s7295_s1 + $0x860] ss:$8 sps:$4 sm:$0xff]  }
  0xd6   : > { %v1225_v20 = vld [vmem:[#allocation2 + $0x1d8] sm:$0xff]  ;;  %993 = vst.msk [vmem:[#allocation2 + $0x108] sm:$0xff] %vm366_vm1, %v5434_v22  ;;  %v5389_v22 = vld [vmem:[%s7295_s1 + $0x7e4] ss:$8 sps:$4 sm:$0xff]  }
  0xd7   : > { %3469 = vmatmul.mubr.bf16.gmra.mrb[8].mxu0 %v4403_v59  ;;  %3206 = vmatpush1.bf16.msra.mxu1 %v5324_v42  ;;  %v1207_v62 = vld [vmem:[#allocation2 + $0x148] sm:$0xff]  ;;  %v6604_v59 = vld [vmem:[%s5769_s12 + $0x140] sm:$0xff]  ;;  %v1116_v42 = vshll.u32 %v6524_v29, 16  ;;  %v5427_v7 = vld [vmem:[%s7295_s1 + $0x874] ss:$8 sps:$4 sm:$0xff]  }
  0xd8   : > { %3498 = vmatpush1.bf16.msra.mxu0 %v5327_v45  ;;  %3207 = vmatprep.subr.bf16.mxu1 %v5332_v48  ;;  %v4345_v4 = vcombine.low %v6604_v59, %v6607_v63  ;;  %v5360_v45 = vld [vmem:[%s7295_s1 + $0x3a0] ss:$8 sps:$4 sm:$0xff]   ;;  %v5421_v63 = vld [vmem:[%s7295_s1 + $0x854] ss:$8 sps:$4 sm:$0xff]  }
  0xd9   : > { %3499 = vmatprep.subr.bf16.mxu0 %v5335_v49  ;;  %3176 = vmatprep.mubr.bf16.mxu1 %v1207_v62  ;;  %v6696_v48 = vld [vmem:[%s5769_s12 + $0xe0] sm:$0xff]  ;;  %v1118_v13 = vrot.slane %v1116_v42, 5 }
  0xda   : > { %3478 = vmatprep.mubr.bf16.mxu0 %v1233_v57  ;;  %3177 = vmatmul.mubr.bf16.gmra.mrb[8].mxu1 %v4331_v31  ;;  %v5356_v31 = vld [vmem:[%s7295_s1 + $0x394] ss:$8 sps:$4 sm:$0xff]   ;;  %v5374_v62 = vld [vmem:[%s7295_s1 + $0x3c4] ss:$8 sps:$4 sm:$0xff]   ;;  %v5416_v59 = vld [vmem:[%s7295_s1 + $0x840] ss:$8 sps:$4 sm:$0xff]  }
  0xdb   : > { %3208 = vmatpush1.bf16.msra.mxu1 %v5330_v37  ;;  %3186 = vmatprep.mubr.bf16.mxu1 %v1225_v20  ;;  %v5442_v49 = vld [vmem:[%s5769_s12 + $0xe4] ss:$16 sps:$4 sm:$0xff]   ;;  %v5366_v37 = vld [vmem:[%s7295_s1 + $0x3b0] ss:$8 sps:$4 sm:$0xff]   ;;  %v1018_v20 = vshll.u32 %v4423_v15, 16 }
  0xdc   : > { %3500 = vmatpush1.bf16.msra.mxu0 %v5333_v39  ;;  %3209 = vmatprep.subr.bf16.mxu1 %v5338_v61  ;;  %995 = vst.msk [vmem:[#allocation2 + $0x198] sm:$0xff] %vm366_vm1, %v5442_v49  ;;  %v5369_v39 = vld [vmem:[%s7295_s1 + $0x7b0] ss:$8 sps:$4 sm:$0xff]   ;;  %v5450_v61 = vld [vmem:[%s5769_s12 + $0x104] ss:$16 sps:$4 sm:$0xff]  }
  0xdd   : > { %3501 = vmatprep.subr.bf16.mxu0 %v5341_v44  ;;  %v5377_v44 = vld [vmem:[%s7295_s1 + $0x7c4] ss:$8 sps:$4 sm:$0xff]   ;;  %997 = vst.msk [vmem:[#allocation2 + $0x228] sm:$0xff] %vm366_vm1, %v5450_v61 }
  0xdf   : > { %3479 = vmatmul.mubr.bf16.gmra.mrb[12].mxu0 %v4405_v32  ;;  %3210 = vmatpush1.bf16.msra.mxu1 %v5336_v1  ;;  %v1113_v32 = vshrl.u32 %v6524_v29, 16  ;;  %v6699_v29 = vld [vmem:[%s5769_s12 + $0xf0] sm:$0xff]  ;;  %v5372_v1 = vld [vmem:[%s7295_s1 + $0x3c0] ss:$8 sps:$4 sm:$0xff]  }
  0xe0   : > { %3502 = vmatpush1.bf16.msra.mxu0 %v5339_v2  ;;  %3211 = vmatprep.subr.bf16.mxu1 %v5344_v5  ;;  %v4419_v35 = vcombine.low %v6696_v48, %v6699_v29  ;;  %v5375_v2 = vld [vmem:[%s7295_s1 + $0x7c0] ss:$8 sps:$4 sm:$0xff]   ;;  %v5380_v5 = vld [vmem:[%s7295_s1 + $0x3d4] ss:$8 sps:$4 sm:$0xff]   ;;  %v5425_v29 = vld [vmem:[%s7295_s1 + $0x870] ss:$8 sps:$4 sm:$0xff]  }
  0xe1   : > { %3503 = vmatprep.subr.bf16.mxu0 %v5347_v6  ;;  %3521 = vmatprep.mubr.bf16.mxu0 %v1181_v18  ;;  %v1115_v3 = vrot.slane %v1113_v32, 4  ;;  %v5383_v6 = vld [vmem:[%s7295_s1 + $0x7d4] ss:$8 sps:$4 sm:$0xff]   ;;  %v4426_v18 = vld [vmem:[%s5769_s12 + $0x28] sm:$0x11]  ;;  %v5530_v48 = vld [vmem:[#allocation2 + $0x1e0] sm:$0xff] }
  0xe2   : > { %3187 = vmatmul.mubr.bf16.gmra.mrb[12].mxu1 %v4333_v60  ;;  %v6718_v60 = vld [vmem:[%s5769_s12 + $0x110] sm:$0xff] }
  0xe3   : > { %3212 = vmatpush1.bf16.msra.mxu1 %v5342_v17  ;;  %3229 = vmatprep.mubr.bf16.mxu1 %v1173_v30  ;;  %v4421_v57 = vcombine.low %v6715_v41, %v6718_v60  ;;  %v1119_v0 = vor.u32 %v1118_v13, %v1115_v3  ;;  %v4424_v17 = vld [vmem:[%s5769_s12 + $0x18] sm:$0x11] }
  0xe4   : > { %3504 = vmatpush1.bf16.msra.mxu0 %v5345_v19  ;;  %3213 = vmatprep.subr.bf16.mxu1 %v5350_v25  ;;  %v1015_v19 = vshrl.u32 %v4423_v15, 16  ;;  %v1024_v25 = vshll.u32 %v4424_v17, 16  ;;  %v5378_v30 = vld [vmem:[%s7295_s1 + $0x3d0] ss:$8 sps:$4 sm:$0xff]   ;;  %v5392_v15 = vld [vmem:[%s7295_s1 + $0x3f4] ss:$8 sps:$4 sm:$0xff]  }
  0xe5   : > { %3505 = vmatprep.subr.bf16.mxu0 %v5353_v26  ;;  %v1038_v26 = vshll.u32 %v4426_v18, 16  ;;  %v4436_v13 = vld [vmem:[%s5769_s12 + $0x78] sm:$0x11]  ;;  %v1235_v36 = vld [vmem:[#allocation2 + $0x228] sm:$0xff] }
  0xe6   : > { %v1026_v32 = vrot.slane %v1024_v25, 5  ;;  %v5395_v17 = vld [vmem:[%s7295_s1 + $0x7f4] ss:$8 sps:$4 sm:$0xff]   ;;  %v5431_v60 = vld [vmem:[%s7295_s1 + $0x890] ss:$8 sps:$4 sm:$0xff]  }
  0xe7   : > { %3214 = vmatpush1.bf16.msra.mxu1 %v5348_v27  ;;  %v4428_v27 = vld [vmem:[%s5769_s12 + $0x38] sm:$0x11]  ;;  %v1040_v42 = vrot.slane %v1038_v26, 5 }
  0xe8   : > { %3506 = vmatpush1.bf16.msra.mxu0 %v5351_v28  ;;  %3215 = vmatprep.subr.bf16.mxu1 %v5356_v31  ;;  %v1120_v28 = vrot.slane %v1119_v0, 4  ;;  %v5381_v31 = vld [vmem:[%s7295_s1 + $0x7d0] ss:$8 sps:$4 sm:$0xff]   ;;  %v5384_v0 = vld [vmem:[%s7295_s1 + $0x3e0] ss:$8 sps:$4 sm:$0xff]  }
  0xe9   : > { %3507 = vmatprep.subr.bf16.mxu0 %v5359_v21  ;;  %v1017_v21 = vrot.slane %v1015_v19, 4  ;;  %v1217_v55 = vld [vmem:[#allocation2 + $0x198] sm:$0xff] }
  0xea   : > { %v5433_v41 = vld [vmem:[%s7295_s1 + $0x894] ss:$8 sps:$4 sm:$0xff]  }
  0xeb   : > { %3216 = vmatpush1.bf16.msra.mxu1 %v5354_v34  ;;  %v1020_v34 = vrot.slane %v1018_v20, 5 }
  0xec   : > { %3508 = vmatpush1.bf16.msra.mxu0 %v5357_v11  ;;  %3217 = vmatprep.subr.bf16.mxu1 %v5362_v12  ;;  %v4430_v11 = vld [vmem:[%s5769_s12 + $0x48] sm:$0x11]  ;;  %v1052_v12 = vshll.u32 %v4428_v27, 16 }
  0xed   : > { %3509 = vmatprep.subr.bf16.mxu0 %v5365_v14  ;;  %v5386_v14 = vld [vmem:[%s7295_s1 + $0x3e4] ss:$8 sps:$4 sm:$0xff]  }
  0xee   : > { %v1054_v49 = vrot.slane %v1052_v12, 5 }
  0xef   : > { %3218 = vmatpush1.bf16.msra.mxu1 %v5360_v45  ;;  %v1066_v45 = vshll.u32 %v4430_v11, 16 }
  0xf0   : > { %3510 = vmatpush1.bf16.msra.mxu0 %v5363_v46  ;;  %3219 = vmatprep.subr.bf16.mxu1 %v5368_v47  ;;  %v4432_v46 = vld [vmem:[%s5769_s12 + $0x58] sm:$0x11]  ;;  %v1021_v47 = vor.u32 %v1020_v34, %v1017_v21 }
  0xf1   : > { %3511 = vmatprep.subr.bf16.mxu0 %v5371_v50  ;;  %v4434_v50 = vld [vmem:[%s5769_s12 + $0x68] sm:$0x11]  ;;  %v1080_v3 = vshll.u32 %v4432_v46, 16  ;;  %v5390_v21 = vld [vmem:[%s7295_s1 + $0x3f0] ss:$8 sps:$4 sm:$0xff]  }
  0xf2   : > { %v1094_v61 = vshll.u32 %v4434_v50, 16  ;;  %v5393_v34 = vld [vmem:[%s7295_s1 + $0x7f0] ss:$8 sps:$4 sm:$0xff]   ;;  %v5436_v50 = vld [vmem:[%s7295_s1 + $0x8a0] ss:$8 sps:$4 sm:$0xff]  }
  0xf3   : > { %3220 = vmatpush1.bf16.msra.mxu1 %v5366_v37  ;;  %v6765_v37 = vsel %vm6014_vm4, %v6398_v23, %v1040_v42  ;;  %v1082_v23 = vrot.slane %v1080_v3, 5  ;;  %v1191_v42 = vld [vmem:[#allocation2 + $0xc8] sm:$0xff]  ;;  %v5403_v46 = vld [vmem:[%s7295_s1 + $0x810] ss:$8 sps:$4 sm:$0xff]   ;;  %v5441_v3 = vld [vmem:[%s7295_s1 + $0x8b4] ss:$8 sps:$4 sm:$0xff]  }
  0xf4   : > { %3512 = vmatpush1.bf16.msra.mxu0 %v5369_v39  ;;  %3221 = vmatprep.subr.bf16.mxu1 %v5374_v62  ;;  %v1068_v39 = vrot.slane %v1066_v45, 5  ;;  %v4438_v62 = vld [vmem:[%s5769_s12 + $0x88] sm:$0x11]  ;;  %v1096_v19 = vrot.slane %v1094_v61, 5 }
  0xf5   : > { %3513 = vmatprep.subr.bf16.mxu0 %v5377_v44  ;;  %v1108_v44 = vshll.u32 %v4436_v13, 16  ;;  %v1199_v45 = vld [vmem:[#allocation2 + $0x108] sm:$0xff]  ;;  %v5439_v13 = vld [vmem:[%s7295_s1 + $0x8b0] ss:$8 sps:$4 sm:$0xff]  }
  0xf6   : > { %v6788_v18 = vsel %vm6014_vm4, %v6472_v58, %v1068_v39  ;;  %v6817_v11 = vsel %vm6014_vm4, %v6535_v38, %v1096_v19  ;;  %v5446_v39 = vld [vmem:[%s7295_s1 + $0x8c4] ss:$8 sps:$4 sm:$0xff]   ;;  %v5444_v61 = vld [vmem:[%s7295_s1 + $0x8c0] ss:$8 sps:$4 sm:$0xff]   ;;  %v5463_v19 = vld [vmem:[%s7297_s3 + $0x14] ss:$8 sps:$4 sm:$0xff]  }
  0xf7   : > { %3222 = vmatpush1.bf16.msra.mxu1 %v5372_v1  ;;  %v5387_v1 = vld [vmem:[%s7295_s1 + $0x7e0] ss:$8 sps:$4 sm:$0xff]   ;;  %v1110_v20 = vrot.slane %v1108_v44, 5  ;;  %v5447_v44 = vld [vmem:[%s7295_s1 + $0x8d0] ss:$8 sps:$4 sm:$0xff]  }
  0xf8   : > { %3514 = vmatpush1.bf16.msra.mxu0 %v5375_v2  ;;  %3223 = vmatprep.subr.bf16.mxu1 %v5380_v5  ;;  %v1022_v2 = vrot.slane %v1021_v47, 4  ;;  %v6777_v5 = vsel %vm6014_vm4, %v6430_v40, %v1054_v49  ;;  %v5410_v47 = vld [vmem:[%s7295_s1 + $0x824] ss:$8 sps:$4 sm:$0xff]   ;;  %v5428_v49 = vld [vmem:[%s7295_s1 + $0x880] ss:$8 sps:$4 sm:$0xff]  }
  0xf9   : > { %3515 = vmatprep.subr.bf16.mxu0 %v5383_v6  ;;  %v1122_v6 = vshll.u32 %v4438_v62, 16  ;;  %v4442_v25 = vcombine.high %v6777_v5, %v6788_v18  ;;  %v4441_v26 = vcombine.low %v6777_v5, %v6788_v18  ;;  %v5449_v62 = vld [vmem:[%s7295_s1 + $0x8d4] ss:$8 sps:$4 sm:$0xff]   ;;  %v5458_v5 = vld [vmem:[%s7297_s3] ss:$8 sps:$4 sm:$0xff]  }
  0xfa   : > { %v6792_v40 = vsel %vm6014_vm4, %v1022_v2, %v1026_v32  ;;  %v5405_v32 = vld [vmem:[%s7295_s1 + $0x814] ss:$8 sps:$4 sm:$0xff]   ;;  %v5461_v18 = vld [vmem:[%s7297_s3 + $0x10] ss:$8 sps:$4 sm:$0xff]  }
  0xfb   : > { %3224 = vmatpush1.bf16.msra.mxu1 %v5378_v30  ;;  %v1124_v27 = vrot.slane %v1122_v6, 5  ;;  %v4440_v58 = vcombine.high %v6792_v40, %v6765_v37  ;;  %v4439_v30 = vcombine.low %v6792_v40, %v6765_v37  ;;  %1161 = vst.msk [vmem:[#allocation2 + $0x118] sm:$0xff] %vm366_vm1, %v4442_v25  ;;  %v5457_v2 = vld [vmem:[%s7295_s1 + $0x8f4] ss:$8 sps:$4 sm:$0xff]   ;;  %v5460_v37 = vld [vmem:[%s7297_s3 + $0x4] ss:$8 sps:$4 sm:$0xff]  }
  0xfc   : > { %3516 = vmatpush1.bf16.msra.mxu0 %v5381_v31  ;;  %3225 = vmatprep.subr.bf16.mxu1 %v5386_v14  ;;  %v6805_v31 = vsel %vm6014_vm4, %v6496_v8, %v1082_v23  ;;  %v6822_v8 = vsel %vm6014_vm4, %v6560_v52, %v1110_v20  ;;  %v5402_v14 = vld [vmem:[%s7295_s1 + $0x804] ss:$8 sps:$4 sm:$0xff]   ;;  %v5455_v23 = vld [vmem:[%s7295_s1 + $0x8f0] ss:$8 sps:$4 sm:$0xff]   ;;  %v5464_v40 = vld [vmem:[%s7297_s3 + $0x20] ss:$8 sps:$4 sm:$0xff]  }
  0xfd   : > { %3517 = vmatprep.subr.bf16.mxu0 %v5389_v22  ;;  %v6826_v12 = vsel %vm6014_vm4, %v1120_v28, %v1124_v27  ;;  %1159 = vst.msk [vmem:[#allocation2 + $0x88] sm:$0xff] %vm366_vm1, %v4440_v58  ;;  %v4444_v22 = vcombine.high %v6805_v31, %v6817_v11  ;;  %v4443_v38 = vcombine.low %v6805_v31, %v6817_v11  ;;  %v5400_v28 = vld [vmem:[%s7295_s1 + $0x800] ss:$8 sps:$4 sm:$0xff]   ;;  %v5466_v20 = vld [vmem:[%s7297_s3 + $0x24] ss:$8 sps:$4 sm:$0xff]  }
  0xfe   : > { %v4446_v52 = vcombine.high %v6822_v8, %v6826_v12  ;;  %v4445_v43 = vcombine.low %v6822_v8, %v6826_v12  ;;  %v5469_v25 = vld [vmem:[%s7297_s3 + $0x34] ss:$8 sps:$4 sm:$0xff]   ;;  %v5472_v27 = vld [vmem:[%s7297_s3 + $0x44] ss:$8 sps:$4 sm:$0xff]   ;;  %v5470_v58 = vld [vmem:[%s7297_s3 + $0x40] ss:$8 sps:$4 sm:$0xff]  }
  0xff   : > { %3226 = vmatpush1.bf16.msra.mxu1 %v5384_v0  ;;  %1163 = vst.msk [vmem:[#allocation2 + $0x1a8] sm:$0xff] %vm366_vm1, %v4444_v22  ;;  %v5454_v0 = vld [vmem:[%s7295_s1 + $0x8e4] ss:$8 sps:$4 sm:$0xff]   ;;  %v5473_v31 = vld [vmem:[%s7297_s3 + $0x50] ss:$8 sps:$4 sm:$0xff]  }
 0x100   : > { %3518 = vmatpush1.bf16.msra.mxu0 %v5387_v1  ;;  %3227 = vmatprep.subr.bf16.mxu1 %v5392_v15  ;;  %1165 = vst.msk [vmem:[#allocation2 + $0x238] sm:$0xff] %vm366_vm1, %v4446_v52  ;;  %v5452_v1 = vld [vmem:[%s7295_s1 + $0x8e0] ss:$8 sps:$4 sm:$0xff]   ;;  %v5481_v11 = vld [vmem:[%s7297_s3 + $0x74] ss:$8 sps:$4 sm:$0xff]  }
 0x101   : > { %3519 = vmatprep.subr.bf16.mxu0 %v5395_v17  ;;  %v5479_v8 = vld [vmem:[%s7297_s3 + $0x70] ss:$8 sps:$4 sm:$0xff]   ;;  %v5484_v12 = vld [vmem:[%s7297_s3 + $0x84] ss:$8 sps:$4 sm:$0xff]   ;;  %v5487_v22 = vld [vmem:[%s7297_s3 + $0x94] ss:$8 sps:$4 sm:$0xff]  }
 0x102   : > { %v1201_v6 = vld [vmem:[#allocation2 + $0x118] sm:$0xff]  ;;  %v5490_v52 = vld [vmem:[%s7297_s3 + $0xa4] ss:$8 sps:$4 sm:$0xff]  }
 0x103   : > { %3228 = vmatpush1.bf16.msra.mxu1 %v5390_v21  ;;  %v5478_v21 = vld [vmem:[%s7297_s3 + $0x64] ss:$8 sps:$4 sm:$0xff]  }
 0x104   : > { %3520 = vmatpush1.bf16.msra.mxu0 %v5393_v34  ;;  %3827 = vmatprep.subr.bf16.mxu1 %v5460_v37  ;;  %v5476_v34 = vld [vmem:[%s7297_s3 + $0x60] ss:$8 sps:$4 sm:$0xff]  }
 0x105   : > { %3562 = vmatprep.subr.bf16.mxu0 %v5402_v14  ;;  %v5482_v14 = vld [vmem:[%s7297_s3 + $0x80] ss:$8 sps:$4 sm:$0xff]  }
 0x106   : > { %3230 = vmatmul.mubr.bf16.vlgmr.msra.gmra.mrb[0].mxu1 %v4343_v51  ;;  %v1209_v51 = vld [vmem:[#allocation2 + $0x158] sm:$0xff]  ;;  %v1219_v15 = vld [vmem:[#allocation2 + $0x1a8] sm:$0xff] }
 0x107   : > { %3522 = vmatmul.mubr.bf16.vlgmr.msra.gmra.mrb[0].mxu0 %v4415_v24  ;;  %3239 = vmatprep.mubr.bf16.mxu1 %v1191_v42  ;;  %v5418_v24 = vld [vmem:[%s7295_s1 + $0x844] ss:$8 sps:$4 sm:$0xff]   ;;  %v1237_v17 = vld [vmem:[#allocation2 + $0x238] sm:$0xff]  ;;  %v7043_v42 = vld [vmem:[%s7299_s5] ss:$8 sps:$4 sm:$0xff]  }
 0x108   : > { %3563 = vmatpush1.bf16.msra.mxu0 %v5400_v28  ;;  %3531 = vmatprep.mubr.bf16.mxu0 %v1199_v45  ;;  %v5493_v28 = vld [vmem:[%s7297_s3 + $0xb4] ss:$8 sps:$4 sm:$0xff]   ;;  %v5496_v45 = vld [vmem:[%s7299_s5 + $0x4] ss:$8 sps:$4 sm:$0xff]  }
 0x109   : > { %3564 = vmatprep.subr.bf16.mxu0 %v5405_v32  ;;  %3828 = vmatpush1.bf16.msra.mxu1 %v5458_v5  ;;  %v5491_v32 = vld [vmem:[%s7297_s3 + $0xb0] ss:$8 sps:$4 sm:$0xff]  }
 0x10a   : > { %3829 = vmatprep.subr.bf16.mxu1 %v5463_v19 }
 0x10c   : > { %3565 = vmatpush1.bf16.msra.mxu0 %v5403_v46  ;;  %v7051_v46 = vld [vmem:[%s7299_s5 + $0x14] ss:$8 sps:$4 sm:$0xff]  }
 0x10d   : > { %3566 = vmatprep.subr.bf16.mxu0 %v5410_v47  ;;  %3830 = vmatpush1.bf16.msra.mxu1 %v5461_v18  ;;  %v7057_v47 = vld [vmem:[%s7299_s5 + $0x10] ss:$8 sps:$4 sm:$0xff]  }
 0x10e   : > { %3240 = vmatmul.mubr.bf16.gmra.mrb[4].mxu1 %v4345_v4  ;;  %v1227_v4 = vld [vmem:[#allocation2 + $0x1e8] sm:$0xff]  ;;  %3831 = vmatprep.subr.bf16.mxu1 %v5466_v20 }
 0x10f   : > { %3532 = vmatmul.mubr.bf16.gmra.mrb[4].mxu0 %v4417_v33  ;;  %3249 = vmatprep.mubr.bf16.mxu1 %v1209_v51  ;;  %v5424_v33 = vld [vmem:[%s7295_s1 + $0x864] ss:$8 sps:$4 sm:$0xff]   ;;  %v7075_v51 = vld [vmem:[%s7299_s5 + $0x34] ss:$8 sps:$4 sm:$0xff]  }
 0x110   : > { %3567 = vmatpush1.bf16.msra.mxu0 %v5408_v53  ;;  %3541 = vmatprep.mubr.bf16.mxu0 %v1217_v55  ;;  %v7063_v53 = vld [vmem:[%s7299_s5 + $0x24] ss:$8 sps:$4 sm:$0xff]   ;;  %v7081_v55 = vld [vmem:[%s7299_s5 + $0x30] ss:$8 sps:$4 sm:$0xff]  }
 0x111   : > { %3568 = vmatprep.subr.bf16.mxu0 %v5413_v54  ;;  %3832 = vmatpush1.bf16.msra.mxu1 %v5464_v40  ;;  %v7069_v54 = vld [vmem:[%s7299_s5 + $0x20] ss:$8 sps:$4 sm:$0xff]  }
 0x112   : > { %3833 = vmatprep.subr.bf16.mxu1 %v5469_v25 }
 0x114   : > { %3569 = vmatpush1.bf16.msra.mxu0 %v5411_v56  ;;  %v7087_v56 = vld [vmem:[%s7299_s5 + $0x44] ss:$8 sps:$4 sm:$0xff]  }
 0x115   : > { %3570 = vmatprep.subr.bf16.mxu0 %v5418_v24  ;;  %v7093_v24 = vld [vmem:[%s7299_s5 + $0x40] ss:$8 sps:$4 sm:$0xff]  }
 0x116   : > { %3250 = vmatmul.mubr.bf16.gmra.mrb[8].mxu1 %v4347_v16  ;;  %v1183_v16 = vld [vmem:[#allocation2 + $0x88] sm:$0xff] }
 0x117   : > { %3542 = vmatmul.mubr.bf16.gmra.mrb[8].mxu0 %v4419_v35  ;;  %3259 = vmatprep.mubr.bf16.mxu1 %v1227_v4  ;;  %v5430_v35 = vld [vmem:[%s7295_s1 + $0x884] ss:$8 sps:$4 sm:$0xff]  }
 0x118   : > { %3571 = vmatpush1.bf16.msra.mxu0 %v5416_v59  ;;  %3551 = vmatprep.mubr.bf16.mxu0 %v1235_v36  ;;  %v7099_v59 = vld [vmem:[%s7299_s5 + $0x54] ss:$8 sps:$4 sm:$0xff]   ;;  %v7111_v4 = vld [vmem:[%s7299_s5 + $0x64] ss:$8 sps:$4 sm:$0xff]   ;;  %v7117_v36 = vld [vmem:[%s7299_s5 + $0x60] ss:$8 sps:$4 sm:$0xff]  }
 0x119   : > { %3572 = vmatprep.subr.bf16.mxu0 %v5421_v63  ;;  %v7105_v63 = vld [vmem:[%s7299_s5 + $0x50] ss:$8 sps:$4 sm:$0xff]  }
 0x11c   : > { %3573 = vmatpush1.bf16.msra.mxu0 %v5419_v9  ;;  %v7123_v9 = vld [vmem:[%s7299_s5 + $0x74] ss:$8 sps:$4 sm:$0xff]  }
 0x11d   : > { %3574 = vmatprep.subr.bf16.mxu0 %v5424_v33  ;;  %v7129_v33 = vld [vmem:[%s7299_s5 + $0x70] ss:$8 sps:$4 sm:$0xff]  }
 0x11e   : > { %3260 = vmatmul.mubr.bf16.gmra.mrb[12].mxu1 %v5530_v48 }
 0x11f   : > { %3552 = vmatmul.mubr.bf16.gmra.mrb[12].mxu0 %v4421_v57  ;;  %v5438_v57 = vld [vmem:[%s7295_s1 + $0x8a4] ss:$8 sps:$4 sm:$0xff]  }
 0x120   : > { %3575 = vmatpush1.bf16.msra.mxu0 %v5422_v10  ;;  %3594 = vmatprep.mubr.bf16.mxu0 %v1183_v16  ;;  %v7135_v10 = vld [vmem:[%s7299_s5 + $0x84] ss:$8 sps:$4 sm:$0xff]  }
 0x121   : > { %3576 = vmatprep.subr.bf16.mxu0 %v5427_v7 }
 0x124   : > { %3577 = vmatpush1.bf16.msra.mxu0 %v5425_v29  ;;  %v7141_v29 = vld [vmem:[%s7299_s5 + $0x80] ss:$8 sps:$4 sm:$0xff]  }
 0x125   : > { %3578 = vmatprep.subr.bf16.mxu0 %v5430_v35 }
 0x128   : > { %3579 = vmatpush1.bf16.msra.mxu0 %v5428_v49  ;;  %v7147_v49 = vld [vmem:[%s7299_s5 + $0x94] ss:$8 sps:$4 sm:$0xff]  }
 0x129   : > { %3580 = vmatprep.subr.bf16.mxu0 %v5433_v41  ;;  %v7153_v41 = vld [vmem:[%s7299_s5 + $0x90] ss:$8 sps:$4 sm:$0xff]  }
 0x12c   : > { %3581 = vmatpush1.bf16.msra.mxu0 %v5431_v60 }
 0x12d   : > { %3582 = vmatprep.subr.bf16.mxu0 %v5438_v57 }
 0x130   : > { %3583 = vmatpush1.bf16.msra.mxu0 %v5436_v50 }
 0x131   : > { %3584 = vmatprep.subr.bf16.mxu0 %v5441_v3 }
 0x134   : > { %3585 = vmatpush1.bf16.msra.mxu0 %v5439_v13 }
 0x135   : > { %3586 = vmatprep.subr.bf16.mxu0 %v5446_v39 }
 0x138   : > { %3587 = vmatpush1.bf16.msra.mxu0 %v5444_v61 }
 0x139   : > { %3588 = vmatprep.subr.bf16.mxu0 %v5449_v62 }
 0x13c   : > { %3589 = vmatpush1.bf16.msra.mxu0 %v5447_v44 }
 0x13d   : > { %3590 = vmatprep.subr.bf16.mxu0 %v5454_v0 }
 0x140   : > { %3591 = vmatpush1.bf16.msra.mxu0 %v5452_v1 }
 0x141   : > { %3592 = vmatprep.subr.bf16.mxu0 %v5457_v2 }
 0x144   : > { %3593 = vmatpush1.bf16.msra.mxu0 %v5455_v23  ;;  %v1528_v23 = vlaneseq }
 0x145   : > { %4092 = vmatprep.subr.bf16.mxu0 %v5496_v45 }
 0x147   : > { %3595 = vmatmul.mubr.bf16.vlgmr.msra.gmra.mrb[0].mxu0 %v4439_v30  ;;  %v5475_v30 = vld [vmem:[%s7297_s3 + $0x54] ss:$8 sps:$4 sm:$0xff]  }
 0x148   : > { %3604 = vmatprep.mubr.bf16.mxu0 %v1201_v6  ;;  %4093 = vmatpush1.bf16.msra.mxu0 %v7043_v42  ;;  %v1529_v6 = vshrl.u32 %v1528_v23, 7 }
 0x149   : > { %4094 = vmatprep.subr.bf16.mxu0 %v7051_v46 }
 0x14a   : > { %v7170_v37 = vsub.s32 1, %v1529_v6 }
 0x14c   : > { %4095 = vmatpush1.bf16.msra.mxu0 %v7057_v47 }
 0x14d   : > { %4096 = vmatprep.subr.bf16.mxu0 %v7063_v53 }
 0x14f   : > { %3605 = vmatmul.mubr.bf16.gmra.mrb[4].mxu0 %v4441_v26  ;;  %v5467_v26 = vld [vmem:[%s7297_s3 + $0x30] ss:$8 sps:$4 sm:$0xff]  }
 0x150   : > { %3614 = vmatprep.mubr.bf16.mxu0 %v1219_v15  ;;  %3834 = vmatpush1.bf16.msra.mxu1 %v5467_v26  ;;  %v7165_v15 = vsub.s32 0, %v1529_v6 }
 0x151   : > { %3835 = vmatprep.subr.bf16.mxu1 %v5472_v27  ;;  %4097 = vmatpush1.bf16.msra.mxu0 %v7069_v54 }
 0x152   : > { %4098 = vmatprep.subr.bf16.mxu0 %v7075_v51 }
 0x154   : > { %3836 = vmatpush1.bf16.msra.mxu1 %v5470_v58 }
 0x155   : > { %3837 = vmatprep.subr.bf16.mxu1 %v5475_v30  ;;  %4099 = vmatpush1.bf16.msra.mxu0 %v7081_v55 }
 0x156   : > { %4100 = vmatprep.subr.bf16.mxu0 %v7087_v56 }
 0x157   : > { %3615 = vmatmul.mubr.bf16.gmra.mrb[8].mxu0 %v4443_v38  ;;  %v5485_v38 = vld [vmem:[%s7297_s3 + $0x90] ss:$8 sps:$4 sm:$0xff]  }
 0x158   : > { %3624 = vmatprep.mubr.bf16.mxu0 %v1237_v17  ;;  %3838 = vmatpush1.bf16.msra.mxu1 %v5473_v31  ;;  %v1526_v17 = vld [vmem:[%s7296_s2] sm:$0x3] }
 0x159   : > { %3839 = vmatprep.subr.bf16.mxu1 %v5478_v21  ;;  %4101 = vmatpush1.bf16.msra.mxu0 %v7093_v24  ;;  %v7173_v5 = vrot.slane %v1526_v17, %v7165_v15  ;;  %v7176_v18 = vrot.slane %v1526_v17, %v7170_v37 }
 0x15a   : > { %4102 = vmatprep.subr.bf16.mxu0 %v7099_v59 }
 0x15c   : > { %3840 = vmatpush1.bf16.msra.mxu1 %v5476_v34 }
 0x15d   : > { %3841 = vmatprep.subr.bf16.mxu1 %v5481_v11  ;;  %4103 = vmatpush1.bf16.msra.mxu0 %v7105_v63 }
 0x15e   : > { %4104 = vmatprep.subr.bf16.mxu0 %v7111_v4 }
 0x15f   : > { %3625 = vmatmul.mubr.bf16.gmra.mrb[12].mxu0 %v4445_v43  ;;  %v5488_v43 = vld [vmem:[%s7297_s3 + $0xa0] ss:$8 sps:$4 sm:$0xff]  }
 0x160   : > { %3842 = vmatpush1.bf16.msra.mxu1 %v5479_v8 }
 0x161   : > { %3843 = vmatprep.subr.bf16.mxu1 %v5484_v12  ;;  %4105 = vmatpush1.bf16.msra.mxu0 %v7117_v36 }
 0x162   : > { %4106 = vmatprep.subr.bf16.mxu0 %v7123_v9 }
 0x164   : > { %3844 = vmatpush1.bf16.msra.mxu1 %v5482_v14 }
 0x165   : > { %3845 = vmatprep.subr.bf16.mxu1 %v5487_v22  ;;  %4107 = vmatpush1.bf16.msra.mxu0 %v7129_v33 }
 0x166   : > { %4108 = vmatprep.subr.bf16.mxu0 %v7135_v10 }
 0x168   : > { %3846 = vmatpush1.bf16.msra.mxu1 %v5485_v38 }
 0x169   : > { %3847 = vmatprep.subr.bf16.mxu1 %v5490_v52  ;;  %4109 = vmatpush1.bf16.msra.mxu0 %v7141_v29 }
 0x16a   : > { %4110 = vmatprep.subr.bf16.mxu0 %v7147_v49 }
 0x16c   : > { %3848 = vmatpush1.bf16.msra.mxu1 %v5488_v43 }
 0x16d   : > { %3849 = vmatprep.subr.bf16.mxu1 %v5493_v28  ;;  %4111 = vmatpush1.bf16.msra.mxu0 %v7153_v41 }
 0x170   : > { %3850 = vmatpush1.bf16.msra.mxu1 %v5491_v32 }
 0x171   : > { %4810 = vmatprep.subr.bf16.mxu1 %v5496_v45 }
 0x1d9   : > { %v3231_v7 = vpop.f32.mrb[0].mxu1 }
 0x1da   : > { %v3233_v16 = vpop.f32.mrb[1].mxu1  ;;  %v4834_v19 = vadd.f32 %v3231_v7, %v7173_v5 }
 0x1db   : > { %v3235_v48 = vpop.f32.mrb[2].mxu1  ;;  %v4836_v20 = vadd.f32 %v3233_v16, %v7176_v18 }
 0x1dc   : > { %v3237_v35 = vpop.f32.mrb[3].mxu1  ;;  %v4838_v25 = vadd.f32 %v3235_v48, %v7173_v5 }
 0x1dd   : > { %v4840_v58 = vadd.f32 %v3237_v35, %v7176_v18 }
 0x1e1   : > { %v3241_v60 = vpop.f32.mrb[4].mxu1 }
 0x1e2   : > { %v3243_v57 = vpop.f32.mrb[5].mxu1  ;;  %v4842_v38 = vadd.f32 %v3241_v60, %v7173_v5 }
 0x1e3   : > { %v3245_v50 = vpop.f32.mrb[6].mxu1  ;;  %v4844_v43 = vadd.f32 %v3243_v57, %v7176_v18 }
 0x1e4   : > { %v3247_v3 = vpop.f32.mrb[7].mxu1  ;;  %v4846_v45 = vadd.f32 %v3245_v50, %v7173_v5 }
 0x1e5   : > { %v4848_v48 = vadd.f32 %v3247_v3, %v7176_v18 }
 0x1e9   : > { %v3251_v13 = vpop.f32.mrb[8].mxu1 }
 0x1ea   : > { %v3253_v39 = vpop.f32.mrb[9].mxu1 }
 0x1eb   : > { %v3255_v61 = vpop.f32.mrb[10].mxu1  ;;  %v4852_v3 = vadd.f32 %v3253_v39, %v7176_v18 }
 0x1ec   : > { %v3257_v62 = vpop.f32.mrb[11].mxu1 }
 0x1f1   : > { %v7157_v44 = vpop.f32.mrb[12].mxu1 }
 0x1f2   : > { %v7159_v0 = vpop.f32.mrb[13].mxu1 }
 0x1f3   : > { %v7161_v1 = vpop.f32.mrb[14].mxu1 }
 0x1f4   : > { %v7163_v2 = vpop.f32.mrb[15].mxu1 }
 0x21a   : > { %v3596_v40 = vpop.f32.mrb[0].mxu0 }
 0x21b   : > { %v4835_v26 = vadd.f32 %v4834_v19, %v3596_v40  ;;  %v3598_v27 = vpop.f32.mrb[1].mxu0  ;;  %v4850_v40 = vadd.f32 %v3251_v13, %v7173_v5 }
 0x21c   : > { %v4837_v30 = vadd.f32 %v4836_v20, %v3598_v27  ;;  %v3600_v31 = vpop.f32.mrb[2].mxu0 }
 0x21d   : > { %v4839_v21 = vadd.f32 %v4838_v25, %v3600_v31  ;;  %v3602_v34 = vpop.f32.mrb[3].mxu0  ;;  %v3635_v8 = vmax.f32 %v4835_v26, 0.0 }
 0x21e   : > { %v4841_v11 = vadd.f32 %v4840_v58, %v3602_v34  ;;  %v3636_v14 = vmax.f32 %v4837_v30, 0.0  ;;  %v4854_v58 = vadd.f32 %v3255_v61, %v7173_v5 }
 0x21f   : > { %v3637_v12 = vmax.f32 %v4839_v21, 0.0 }
 0x220   : > { %v3638_v22 = vmax.f32 %v4841_v11, 0.0 }
 0x221   : > { %v3651_v52 = vpack.c.bf16 %v3637_v12, %v3635_v8  ;;  %v4860_v12 = vadd.f32 %v7159_v0, %v7176_v18 }
 0x222   : > { %v3652_v28 = vpack.c.bf16 %v3638_v22, %v3636_v14  ;;  %v3606_v32 = vpop.f32.mrb[4].mxu0 }
 0x223   : > { %v4843_v7 = vadd.f32 %v4842_v38, %v3606_v32  ;;  %v3608_v16 = vpop.f32.mrb[5].mxu0 }
 0x224   : > { %v4845_v35 = vadd.f32 %v4844_v43, %v3608_v16  ;;  %v3610_v23 = vpop.f32.mrb[6].mxu0  ;;  %4759 = vmatprep.mubr.msk.bf16.mxu1 %vm366_vm1, %v3652_v28 }
 0x225   : > { %v4847_v6 = vadd.f32 %v4846_v45, %v3610_v23  ;;  %v3612_v17 = vpop.f32.mrb[7].mxu0  ;;  %3860 = vmatmul.mubr.bf16.vlgmr.msra.gmra.mrb[16].mxu1 %v3651_v52  ;;  %v3639_v60 = vmax.f32 %v4843_v7, 0.0 }
 0x226   : > { %v4849_v19 = vadd.f32 %v4848_v48, %v3612_v17  ;;  %4822 = vmatpush1.bf16.msra.mxu1 %v7043_v42  ;;  %v3640_v20 = vmax.f32 %v4845_v35, 0.0  ;;  %v4856_v42 = vadd.f32 %v3257_v62, %v7176_v18 }
 0x227   : > { %v3641_v57 = vmax.f32 %v4847_v6, 0.0  ;;  %4811 = vmatprep.subr.bf16.mxu1 %v7051_v46 }
 0x228   : > { %v3642_v50 = vmax.f32 %v4849_v19, 0.0 }
 0x229   : > { %v3653_v25 = vpack.c.bf16 %v3641_v57, %v3639_v60 }
 0x22a   : > { %v3654_v26 = vpack.c.bf16 %v3642_v50, %v3640_v20  ;;  %v3616_v27 = vpop.f32.mrb[8].mxu0  ;;  %4823 = vmatpush1.bf16.msra.mxu1 %v7057_v47 }
 0x22b   : > { %v4851_v30 = vadd.f32 %v4850_v40, %v3616_v27  ;;  %v3618_v31 = vpop.f32.mrb[9].mxu0  ;;  %4812 = vmatprep.subr.bf16.mxu1 %v7063_v53  ;;  %v4858_v53 = vadd.f32 %v7157_v44, %v7173_v5 }
 0x22c   : > { %v4853_v46 = vadd.f32 %v4852_v3, %v3618_v31  ;;  %v3620_v21 = vpop.f32.mrb[10].mxu0  ;;  %4760 = vmatprep.mubr.msk.bf16.mxu1 %vm366_vm1, %v3654_v26 }
 0x22d   : > { %v4855_v13 = vadd.f32 %v4854_v58, %v3620_v21  ;;  %v3622_v34 = vpop.f32.mrb[11].mxu0  ;;  %3870 = vmatmul.mubr.bf16.gmra.mrb[20].mxu1 %v3653_v25  ;;  %v3643_v11 = vmax.f32 %v4851_v30, 0.0 }
 0x22e   : > { %v4857_v39 = vadd.f32 %v4856_v42, %v3622_v34  ;;  %4824 = vmatpush1.bf16.msra.mxu1 %v7069_v54  ;;  %v3644_v61 = vmax.f32 %v4853_v46, 0.0  ;;  %v4862_v54 = vadd.f32 %v7161_v1, %v7173_v5 }
 0x22f   : > { %v3645_v47 = vmax.f32 %v4855_v13, 0.0  ;;  %4813 = vmatprep.subr.bf16.mxu1 %v7075_v51  ;;  %v4864_v51 = vadd.f32 %v7163_v2, %v7176_v18 }
 0x230   : > { %v3646_v8 = vmax.f32 %v4857_v39, 0.0 }
 0x231   : > { %v3655_v62 = vpack.c.bf16 %v3645_v47, %v3643_v11 }
 0x232   : > { %v3656_v14 = vpack.c.bf16 %v3646_v8, %v3644_v61  ;;  %v3626_v22 = vpop.f32.mrb[12].mxu0  ;;  %4825 = vmatpush1.bf16.msra.mxu1 %v7081_v55 }
 0x233   : > { %v4859_v38 = vadd.f32 %v4858_v53, %v3626_v22  ;;  %v3628_v52 = vpop.f32.mrb[13].mxu0  ;;  %4814 = vmatprep.subr.bf16.mxu1 %v7087_v56 }
 0x234   : > { %v4861_v43 = vadd.f32 %v4860_v12, %v3628_v52  ;;  %v3630_v44 = vpop.f32.mrb[14].mxu0  ;;  %4761 = vmatprep.mubr.msk.bf16.mxu1 %vm366_vm1, %v3656_v14 }
 0x235   : > { %v4863_v28 = vadd.f32 %v4862_v54, %v3630_v44  ;;  %v3632_v0 = vpop.f32.mrb[15].mxu0  ;;  %3880 = vmatmul.mubr.bf16.gmra.mrb[24].mxu1 %v3655_v62  ;;  %v3647_v55 = vmax.f32 %v4859_v38, 0.0 }
 0x236   : > { %v4865_v32 = vadd.f32 %v4864_v51, %v3632_v0  ;;  %4826 = vmatpush1.bf16.msra.mxu1 %v7093_v24  ;;  %v3648_v1 = vmax.f32 %v4861_v43, 0.0  ;;  %v5526_v24 = vld [vmem:[%s7299_s5 + $0xa4] ss:$8 sps:$4 sm:$0xff]  }
 0x237   : > { %v3649_v45 = vmax.f32 %v4863_v28, 0.0  ;;  %4815 = vmatprep.subr.bf16.mxu1 %v7099_v59  ;;  %v5524_v59 = vld [vmem:[%s7299_s5 + $0xa0] ss:$8 sps:$4 sm:$0xff]   ;;  %4112 = vmatprep.subr.bf16.mxu0 %v5526_v24 }
 0x238   : > { %v3650_v5 = vmax.f32 %v4865_v32, 0.0  ;;  %4113 = vmatpush1.bf16.msra.mxu0 %v5524_v59 }
 0x239   : > { %v3657_v56 = vpack.c.bf16 %v3649_v45, %v3647_v55 }
 0x23a   : > { %v3658_v7 = vpack.c.bf16 %v3650_v5, %v3648_v1  ;;  %4827 = vmatpush1.bf16.msra.mxu1 %v7105_v63  ;;  %v5529_v63 = vld [vmem:[%s7299_s5 + $0xb4] ss:$8 sps:$4 sm:$0xff]  }
 0x23b   : > { %4816 = vmatprep.subr.bf16.mxu1 %v7111_v4  ;;  %v5527_v4 = vld [vmem:[%s7299_s5 + $0xb0] ss:$8 sps:$4 sm:$0xff]   ;;  %4114 = vmatprep.subr.bf16.mxu0 %v5529_v63 }
 0x23c   : > { %4762 = vmatprep.mubr.msk.bf16.mxu1 %vm366_vm1, %v3658_v7  ;;  %4115 = vmatpush1.bf16.msra.mxu0 %v5527_v4 }
 0x23d   : > { %3890 = vmatmul.mubr.bf16.gmra.mrb[28].mxu1 %v3657_v56 }
 0x23e   : > { %4828 = vmatpush1.bf16.msra.mxu1 %v7117_v36  ;;  %v3683_v36 = vld [vmem:[%s7298_s4] sm:$0x3] }
 0x23f   : > { %4817 = vmatprep.subr.bf16.mxu1 %v7123_v9  ;;  %v3688_v9 = vrot.slane %v3683_v36, %v7165_v15 }
 0x242   : > { %4829 = vmatpush1.bf16.msra.mxu1 %v7129_v33  ;;  %v3692_v33 = vrot.slane %v3683_v36, %v7170_v37 }
 0x243   : > { %4818 = vmatprep.subr.bf16.mxu1 %v7135_v10 }
 0x246   : > { %4830 = vmatpush1.bf16.msra.mxu1 %v7141_v29 }
 0x247   : > { %4819 = vmatprep.subr.bf16.mxu1 %v7147_v49 }
 0x24a   : > { %4831 = vmatpush1.bf16.msra.mxu1 %v7153_v41 }
 0x24b   : > { %4820 = vmatprep.subr.bf16.mxu1 %v5526_v24 }
 0x24e   : > { %4832 = vmatpush1.bf16.msra.mxu1 %v5524_v59  ;;  %v3948_v59 = vld [vmem:[%s7300_s6] sm:$0x3] }
 0x24f   : > { %4821 = vmatprep.subr.bf16.mxu1 %v5529_v63  ;;  %v3953_v63 = vrot.slane %v3948_v59, %v7165_v15 }
 0x252   : > { %4833 = vmatpush1.bf16.msra.mxu1 %v5527_v4  ;;  %v7247_v4 = vrot.slane %v3948_v59, %v7170_v37 }
 0x2f8   : > { %v3861_v10 = vpop.f32.mrb[16].mxu1 }
 0x2f9   : > { %v3862_v29 = vadd.f32 %v3861_v10, %v3688_v9  ;;  %v3863_v49 = vpop.f32.mrb[17].mxu1 }
 0x2fa   : > { %v3864_v41 = vadd.f32 %v3863_v49, %v3692_v33  ;;  %v3865_v2 = vpop.f32.mrb[18].mxu1 }
 0x2fb   : > { %v3866_v18 = vadd.f32 %v3865_v2, %v3688_v9  ;;  %v3867_v16 = vpop.f32.mrb[19].mxu1  ;;  %v3900_v35 = vmax.f32 %v3862_v29, 0.0 }
 0x2fc   : > { %v3868_v48 = vadd.f32 %v3867_v16, %v3692_v33  ;;  %v3901_v6 = vmax.f32 %v3864_v41, 0.0 }
 0x2fd   : > { %v3902_v23 = vmax.f32 %v3866_v18, 0.0 }
 0x2fe   : > { %v3903_v17 = vmax.f32 %v3868_v48, 0.0 }
 0x2ff   : > { %v3916_v19 = vpack.c.bf16 %v3902_v23, %v3900_v35 }
 0x300   : > { %v3917_v60 = vpack.c.bf16 %v3903_v17, %v3901_v6  ;;  %v3871_v57 = vpop.f32.mrb[20].mxu1 }
 0x301   : > { %v3872_v20 = vadd.f32 %v3871_v57, %v3688_v9  ;;  %v3873_v50 = vpop.f32.mrb[21].mxu1 }
 0x302   : > { %v3874_v40 = vadd.f32 %v3873_v50, %v3692_v33  ;;  %v3875_v25 = vpop.f32.mrb[22].mxu1  ;;  %4787 = vmatprep.mubr.msk.bf16.mxu0 %vm366_vm1, %v3917_v60 }
 0x303   : > { %v3876_v3 = vadd.f32 %v3875_v25, %v3688_v9  ;;  %v3877_v26 = vpop.f32.mrb[23].mxu1  ;;  %4125 = vmatmul.mubr.bf16.vlgmr.msra.gmra.mrb[16].mxu0 %v3916_v19  ;;  %v3904_v58 = vmax.f32 %v3872_v20, 0.0 }
 0x304   : > { %v3878_v27 = vadd.f32 %v3877_v26, %v3692_v33  ;;  %v3905_v31 = vmax.f32 %v3874_v40, 0.0 }
 0x305   : > { %v3906_v30 = vmax.f32 %v3876_v3, 0.0 }
 0x306   : > { %v3907_v42 = vmax.f32 %v3878_v27, 0.0 }
 0x307   : > { %v3918_v46 = vpack.c.bf16 %v3906_v30, %v3904_v58 }
 0x308   : > { %v3919_v21 = vpack.c.bf16 %v3907_v42, %v3905_v31  ;;  %v3881_v13 = vpop.f32.mrb[24].mxu1 }
 0x309   : > { %v3882_v34 = vadd.f32 %v3881_v13, %v3688_v9  ;;  %v3883_v39 = vpop.f32.mrb[25].mxu1 }
 0x30a   : > { %v3884_v11 = vadd.f32 %v3883_v39, %v3692_v33  ;;  %v3885_v47 = vpop.f32.mrb[26].mxu1  ;;  %4788 = vmatprep.mubr.msk.bf16.mxu1 %vm366_vm1, %v3919_v21 }
 0x30b   : > { %v3886_v61 = vadd.f32 %v3885_v47, %v3688_v9  ;;  %v3887_v8 = vpop.f32.mrb[27].mxu1  ;;  %4135 = vmatmul.mubr.bf16.vlgmr.msra.gmra.mrb[32].mxu1 %v3918_v46  ;;  %v3908_v62 = vmax.f32 %v3882_v34, 0.0 }
 0x30c   : > { %v3888_v53 = vadd.f32 %v3887_v8, %v3692_v33  ;;  %v3909_v14 = vmax.f32 %v3884_v11, 0.0 }
 0x30d   : > { %v3910_v12 = vmax.f32 %v3886_v61, 0.0 }
 0x30e   : > { %v3911_v22 = vmax.f32 %v3888_v53, 0.0 }
 0x30f   : > { %v3920_v54 = vpack.c.bf16 %v3910_v12, %v3908_v62 }
 0x310   : > { %v3921_v38 = vpack.c.bf16 %v3911_v22, %v3909_v14  ;;  %v3891_v52 = vpop.f32.mrb[28].mxu1 }
 0x311   : > { %v3892_v51 = vadd.f32 %v3891_v52, %v3688_v9  ;;  %v3893_v43 = vpop.f32.mrb[29].mxu1 }
 0x312   : > { %v3894_v44 = vadd.f32 %v3893_v43, %v3692_v33  ;;  %v3895_v28 = vpop.f32.mrb[30].mxu1  ;;  %4789 = vmatprep.mubr.msk.bf16.mxu1 %vm366_vm1, %v3921_v38 }
 0x313   : > { %v3896_v0 = vadd.f32 %v3895_v28, %v3688_v9  ;;  %v3897_v32 = vpop.f32.mrb[31].mxu1  ;;  %4145 = vmatmul.mubr.bf16.gmra.mrb[36].mxu1 %v3920_v54  ;;  %v3912_v45 = vmax.f32 %v3892_v51, 0.0 }
 0x314   : > { %v3898_v55 = vadd.f32 %v3897_v32, %v3692_v33  ;;  %v3913_v5 = vmax.f32 %v3894_v44, 0.0 }
 0x315   : > { %v3914_v1 = vmax.f32 %v3896_v0, 0.0 }
 0x316   : > { %v3915_v56 = vmax.f32 %v3898_v55, 0.0 }
 0x317   : > { %v3922_v7 = vpack.c.bf16 %v3914_v1, %v3912_v45 }
 0x318   : > { %v3923_v24 = vpack.c.bf16 %v3915_v56, %v3913_v5 }
 0x31a   : > { %4790 = vmatprep.mubr.msk.bf16.mxu1 %vm366_vm1, %v3923_v24 }
 0x31b   : > { %4155 = vmatmul.mubr.bf16.gmra.mrb[40].mxu1 %v3922_v7 }
 0x3d6   : > { %v4126_v36 = vpop.f32.mrb[16].mxu0 }
 0x3d7   : > { %v4127_v9 = vadd.f32 %v4126_v36, %v3953_v63  ;;  %v4128_v33 = vpop.f32.mrb[17].mxu0 }
 0x3d8   : > { %v4129_v10 = vadd.f32 %v4128_v33, %v7247_v4  ;;  %v4130_v29 = vpop.f32.mrb[18].mxu0 }
 0x3d9   : > { %v4165_v49 = vmax.f32 %v4127_v9, 0.0  ;;  %v4131_v41 = vadd.f32 %v4130_v29, %v3953_v63  ;;  %v4132_v2 = vpop.f32.mrb[19].mxu0 }
 0x3da   : > { %v4166_v18 = vmax.f32 %v4129_v10, 0.0  ;;  %v4133_v16 = vadd.f32 %v4132_v2, %v7247_v4 }
 0x3db   : > { %v4167_v37 = vmax.f32 %v4131_v41, 0.0 }
 0x3dc   : > { %v4802_v48 = vpack.c.bf16 %v4166_v18, %v4165_v49  ;;  %v4168_v35 = vmax.f32 %v4133_v16, 0.0 }
 0x3de   : > { %4232 = vst.msk [vmem:[%s7255_s15] sm:$0xff] %vm7257_vm7, %v4802_v48  ;;  %v4803_v23 = vpack.c.bf16 %v4168_v35, %v4167_v37  ;;  %v4136_v6 = vpop.f32.mrb[32].mxu1 }
 0x3df   : > { %v4137_v17 = vadd.f32 %v4136_v6, %v3953_v63  ;;  %v4138_v19 = vpop.f32.mrb[33].mxu1 }
 0x3e0   : > { %4233 = vst.msk [vmem:[%s7255_s15 + $0x8] sm:$0xff] %vm7257_vm7, %v4803_v23  ;;  %v4139_v60 = vadd.f32 %v4138_v19, %v7247_v4  ;;  %v4140_v57 = vpop.f32.mrb[34].mxu1 }
 0x3e1   : > { %v4169_v20 = vmax.f32 %v4137_v17, 0.0  ;;  %v4141_v50 = vadd.f32 %v4140_v57, %v3953_v63  ;;  %v4142_v40 = vpop.f32.mrb[35].mxu1 }
 0x3e2   : > { %v4170_v25 = vmax.f32 %v4139_v60, 0.0  ;;  %v4143_v3 = vadd.f32 %v4142_v40, %v7247_v4 }
 0x3e3   : > { %v4171_v26 = vmax.f32 %v4141_v50, 0.0 }
 0x3e4   : > { %v4804_v27 = vpack.c.bf16 %v4170_v25, %v4169_v20  ;;  %v4172_v58 = vmax.f32 %v4143_v3, 0.0 }
 0x3e6   : > { %4234 = vst.msk [vmem:[%s7255_s15 + $0x10] sm:$0xff] %vm7257_vm7, %v4804_v27  ;;  %v4805_v30 = vpack.c.bf16 %v4172_v58, %v4171_v26  ;;  %v4146_v31 = vpop.f32.mrb[36].mxu1 }
 0x3e7   : > { %v4147_v42 = vadd.f32 %v4146_v31, %v3953_v63  ;;  %v4148_v46 = vpop.f32.mrb[37].mxu1 }
 0x3e8   : > { %4235 = vst.msk [vmem:[%s7255_s15 + $0x18] sm:$0xff] %vm7257_vm7, %v4805_v30  ;;  %v4149_v21 = vadd.f32 %v4148_v46, %v7247_v4  ;;  %v4150_v13 = vpop.f32.mrb[38].mxu1 }
 0x3e9   : > { %v4173_v34 = vmax.f32 %v4147_v42, 0.0  ;;  %v4151_v39 = vadd.f32 %v4150_v13, %v3953_v63  ;;  %v4152_v11 = vpop.f32.mrb[39].mxu1 }
 0x3ea   : > { %v4174_v47 = vmax.f32 %v4149_v21, 0.0  ;;  %v4153_v61 = vadd.f32 %v4152_v11, %v7247_v4 }
 0x3eb   : > { %v4175_v8 = vmax.f32 %v4151_v39, 0.0 }
 0x3ec   : > { %v4806_v53 = vpack.c.bf16 %v4174_v47, %v4173_v34  ;;  %v4176_v62 = vmax.f32 %v4153_v61, 0.0 }
 0x3ee   : > { %4236 = vst.msk [vmem:[%s7255_s15 + $0x20] sm:$0xff] %vm7257_vm7, %v4806_v53  ;;  %v4807_v12 = vpack.c.bf16 %v4176_v62, %v4175_v8  ;;  %v4156_v14 = vpop.f32.mrb[40].mxu1 }
 0x3ef   : > { %v4157_v22 = vadd.f32 %v4156_v14, %v3953_v63  ;;  %v4158_v54 = vpop.f32.mrb[41].mxu1 }
 0x3f0   : > { %4237 = vst.msk [vmem:[%s7255_s15 + $0x28] sm:$0xff] %vm7257_vm7, %v4807_v12  ;;  %v4159_v38 = vadd.f32 %v4158_v54, %v7247_v4  ;;  %v4160_v52 = vpop.f32.mrb[42].mxu1 }
 0x3f1   : > { %v4177_v51 = vmax.f32 %v4157_v22, 0.0  ;;  %v4161_v43 = vadd.f32 %v4160_v52, %v3953_v63  ;;  %v4162_v44 = vpop.f32.mrb[43].mxu1 }
 0x3f2   : > { %v4178_v28 = vmax.f32 %v4159_v38, 0.0  ;;  %v4163_v0 = vadd.f32 %v4162_v44, %v7247_v4 }
 0x3f3   : > { %v4179_v32 = vmax.f32 %v4161_v43, 0.0 }
 0x3f4   : > { %v4808_v55 = vpack.c.bf16 %v4178_v28, %v4177_v51  ;;  %v4180_v45 = vmax.f32 %v4163_v0, 0.0 }
 0x3f6   : > { %4238 = vst.msk [vmem:[%s7255_s15 + $0x30] sm:$0xff] %vm7257_vm7, %v4808_v55  ;;  %v4809_v1 = vpack.c.bf16 %v4180_v45, %v4179_v32 }
 0x3f8   : > { %4239 = vst.msk [vmem:[%s7255_s15 + $0x38] sm:$0xff] %vm7257_vm7, %v4809_v1 }
 0x3f9 PF: > { %s17_s24 = sadd.s32 1, %s5537_s24  }
 0x3fa   : > { %p14_p4 = scmp.ge.s32.totalorder %s17_s24, 4  }
 0x3fc   :  { %16 = sbr.rel (!%p14_p4) target bundleno = 1 (0x1), region = 83 }

// kernel: nin_forward.3
= control target key start
LH: loop header
LB: loop body
LE: loop exit
PB: predicated region body
PF: predicated region fallthrough
CT: control target
= control target key end

     0   :  { %14 = vsyncpa [#allocation4], 0  ;;  %s6396_s0 = inlined_call_operand.vmem [shape: bf16[2,4,5,5,192], index: 0, kind: input, shape index: {}]   ;;  %s6397_s1 = inlined_call_operand.vmem [shape: bf16[2304,192], index: 1, kind: input, shape index: {}]   ;;  %s6398_s2 = inlined_call_operand.vmem [shape: f32[1,192], index: 2, kind: input, shape index: {}]   ;;  %s6399_s3 = inlined_call_operand.vmem [shape: bf16[192,192], index: 3, kind: input, shape index: {}]   ;;  %s6400_s4 = inlined_call_operand.vmem [shape: f32[1,192], index: 4, kind: input, shape index: {}]   ;;  %s6401_s5 = inlined_call_operand.vmem [shape: bf16[192,192], index: 5, kind: input, shape index: {}]   ;;  %s6402_s6 = inlined_call_operand.vmem [shape: f32[1,192], index: 6, kind: input, shape index: {}]   ;;  %s6403_s7 = inlined_call_operand.vmem [shape: bf16[192,8], index: 7, kind: input, shape index: {}]   ;;  %s6404_s8 = inlined_call_operand.vmem [shape: f32[1,8], index: 8, kind: input, shape index: {}]   ;;  %s6405_s9 = inlined_call_operand.hbm [shape: f32[2,1,8], index: 9, kind: output, shape index: {}]  }
   0x1   :  { %16 = vsyncpa [#allocation4 + $0x1], 0  ;;  %s4985_s30 = smov 0   ;;  %s4987_s10 = smov 0  }
   0x2   :  { %s4989_s11 = smov 0   ;;  %s4991_s12 = smov 0  }
   0x3 LB: > { %s5006_s13 = sadd.s32 4294967295, %s4930_s12   ;;  %s3852_s14 = sadd.s32 4294967294, %s4930_s12   ;;  %s4930_s12 = sphi %s4991_s12, %s6417_s12   ;;  %s4926_s11 = sphi %s4989_s11, %s6416_s11   ;;  %s4922_s10 = sphi %s4987_s10, %s6415_s10   ;;  %s4918_s30 = sphi %s4985_s30, %s6414_s30  }
   0x4   : > { %s5010_s15 = sadd.s32 1, %s4930_s12   ;;  %s223_s16 = sadd.s32 1, %s4926_s11 }
   0x5   : > { %s220_s17 = ssub.s32 %s4930_s12, %s5010_s15  ;;  %p233_p0 = scmp.ne.s32.totalorder %s4926_s11, %s4922_s10 }
   0x6   : > { %p221_p1 = scmp.eq.s32.totalorder %s220_s17, 0  ;;  %p234_p2 = scmp.eq.s32.totalorder %s5006_s13, 1 }
   0x7   : > { %p239_p3 = scmp.ne.s32.totalorder %s4922_s10, %s4918_s30  ;;  %p240_p4 = scmp.eq.s32.totalorder %s3852_s14, 1 }
   0x8   : > { %s5021_s18 = scalar_select %p221_p1, %s4926_s11, %s223_s16  }
   0x9   : > { %p5023_p5 = por %p234_p2, %p233_p0  ;;  %p5027_p6 = por %p240_p4, %p239_p3 }
   0xa   : > { %p3855_p7 = scmp.ge.s32.totalorder %s4930_s12, 1  ;;  %p290_p8 = scmp.lt.s32.totalorder %s4930_s12, 3 }
   0xc   : > { %p291_p9 = pnand %p3855_p7, %p290_p8 }
   0xd   : > { %v4353_v0 = vld [vmem:[%s6397_s1 + $0x304] ss:$8 sps:$4 sm:$0xff] (!%p291_p9)   ;;  %vm331_vm0 = vcmask (!%p291_p9), 1048064   ;;  %v4355_v1 = vld [vmem:[%s6397_s1 + $0x300] ss:$8 sps:$4 sm:$0xff] (!%p291_p9)   ;;  %v4932_v3 = vmov (!%p291_p9), 0   ;;  %v382_v14 = vlaneseq (!%p291_p9) }
   0xe   : > { %294 = sbr.rel (%p291_p9) target bundleno = 1309 (0x51d), region = 56  ;;  %2943 = vmatprep.subr.bf16.mxu0 (!%p291_p9), %v4353_v0  ;;  %v4356_v2 = vld [vmem:[%s6397_s1 + $0x314] ss:$8 sps:$4 sm:$0xff] (!%p291_p9)   ;;  %335 = vst.msk [vmem:[#allocation2 + $0x38] sm:$0xff] (!%p291_p9), %vm331_vm0, %v4932_v3  ;;  %332 = vst.msk [vmem:[#allocation2 + $0x8] sm:$0xff] (!%p291_p9), %vm331_vm0, %v4932_v3  ;;  %p325_p10 = scmp.lt.s32.totalorder (!%p291_p9), %s5006_s13, 1 }
   0xf   : > { %333 = vst.msk [vmem:[#allocation2 + $0x18] sm:$0xff] (!%p291_p9), %vm331_vm0, %v4932_v3  ;;  %334 = vst.msk [vmem:[#allocation2 + $0x28] sm:$0xff] (!%p291_p9), %vm331_vm0, %v4932_v3  ;;  %2944 = vmatpush1.bf16.msra.mxu0 (!%p291_p9), %v4355_v1  ;;  %v4358_v4 = vld [vmem:[%s6397_s1 + $0x310] ss:$8 sps:$4 sm:$0xff] (!%p291_p9)   ;;  %v4359_v5 = vld [vmem:[%s6397_s1 + $0x324] ss:$8 sps:$4 sm:$0xff] (!%p291_p9)  }
  0x10   : > { %336 = vst.msk [vmem:[#allocation2 + $0x48] sm:$0xff] (!%p291_p9), %vm331_vm0, %v4932_v3  ;;  %337 = vst.msk [vmem:[#allocation2 + $0x58] sm:$0xff] (!%p291_p9), %vm331_vm0, %v4932_v3  ;;  %2945 = vmatprep.subr.bf16.mxu0 (!%p291_p9), %v4356_v2  ;;  %v4361_v6 = vld [vmem:[%s6397_s1 + $0x320] ss:$8 sps:$4 sm:$0xff] (!%p291_p9)   ;;  %v4362_v7 = vld [vmem:[%s6397_s1 + $0x334] ss:$8 sps:$4 sm:$0xff] (!%p291_p9)  }
  0x11   : > { %338 = vst.msk [vmem:[#allocation2 + $0x68] sm:$0xff] (!%p291_p9), %vm331_vm0, %v4932_v3  ;;  %339 = vst.msk [vmem:[#allocation2 + $0x78] sm:$0xff] (!%p291_p9), %vm331_vm0, %v4932_v3  ;;  %v4364_v8 = vld [vmem:[%s6397_s1 + $0x330] ss:$8 sps:$4 sm:$0xff] (!%p291_p9)   ;;  %v4365_v9 = vld [vmem:[%s6397_s1 + $0x344] ss:$8 sps:$4 sm:$0xff] (!%p291_p9)  }
  0x12   : > { %340 = vst.msk [vmem:[#allocation2 + $0x88] sm:$0xff] (!%p291_p9), %vm331_vm0, %v4932_v3  ;;  %v4367_v10 = vld [vmem:[%s6397_s1 + $0x340] ss:$8 sps:$4 sm:$0xff] (!%p291_p9)   ;;  %v4368_v11 = vld [vmem:[%s6397_s1 + $0x354] ss:$8 sps:$4 sm:$0xff] (!%p291_p9)   ;;  %v5086_v19 = vshrl.u32 (!%p291_p9), %v382_v14, 7 }
  0x13   : > { %2946 = vmatpush1.bf16.msra.mxu0 (!%p291_p9), %v4358_v4  ;;  %v4933_v12 = vmov (!%p291_p9), 1983009808   ;;  %v4370_v15 = vld [vmem:[%s6397_s1 + $0x350] ss:$8 sps:$4 sm:$0xff] (!%p291_p9)   ;;  %v4371_v16 = vld [vmem:[%s6397_s1 + $0x364] ss:$8 sps:$4 sm:$0xff] (!%p291_p9)  }
  0x14   : > { %2947 = vmatprep.subr.bf16.mxu0 (!%p291_p9), %v4359_v5  ;;  %v380_v13 = vunpack.c.l.s4 (!%p291_p9), %v4933_v12  ;;  %v4398_v17 = vld [vmem:[%s6397_s1 + $0x4] ss:$8 sps:$4 sm:$0xff] (!%p291_p9)   ;;  %v4373_v20 = vld [vmem:[%s6397_s1 + $0x360] ss:$8 sps:$4 sm:$0xff] (!%p291_p9)   ;;  %v4374_v21 = vld [vmem:[%s6397_s1 + $0x374] ss:$8 sps:$4 sm:$0xff] (!%p291_p9)  }
  0x15   : > { %s326_s27 = scalar_select %p325_p10, %s5006_s13, 1  ;;  %2814 = vmatprep.subr.bf16.mxu1 %v4398_v17  ;;  %v4402_v22 = vld [vmem:[%s6397_s1] ss:$8 sps:$4 sm:$0xff]   ;;  %v1076_v23 = vld [vmem:[%s6397_s1 + $0x10] sm:$0xff]  ;;  %v1077_v24 = vld [vmem:[%s6397_s1 + $0x18] sm:$0xff]  ;;  %vm398_vm1 = vcmask 523264  }
  0x16   : > { %v381_v18 = vunpack.c.0.s8 %v380_v13  ;;  %v4404_v25 = vld [vmem:[%s6397_s1 + $0x14] ss:$8 sps:$4 sm:$0xff]   ;;  %2815 = vmatpush1.bf16.msra.mxu1 %v4402_v22  ;;  %v3923_v28 = vcombine.low %v1076_v23, %v1077_v24  ;;  %v4376_v30 = vld [vmem:[%s6397_s1 + $0x370] ss:$8 sps:$4 sm:$0xff]   ;;  %v4377_v34 = vld [vmem:[%s6397_s1 + $0x384] ss:$8 sps:$4 sm:$0xff]  }
  0x17   : > { %2948 = vmatpush1.bf16.msra.mxu0 %v4361_v6  ;;  %s4311_s17 = smul.u32 160, %s326_s27  ;;  %2816 = vmatprep.subr.bf16.mxu1 %v4404_v25  ;;  %v4409_v37 = vld [vmem:[%s6397_s1 + $0x24] ss:$8 sps:$4 sm:$0xff]   ;;  %v4414_v38 = vld [vmem:[%s6397_s1 + $0x20] ss:$8 sps:$4 sm:$0xff]   ;;  %s323_s23 = sand.u32 1, %s4922_s10  }
  0x18   : > { %2949 = vmatprep.subr.bf16.mxu0 %v4362_v7  ;;  %v5112_v26 = vsub.s32 %v381_v18, %v5086_v19  ;;  %v4415_v40 = vld [vmem:[%s6397_s1 + $0x34] ss:$8 sps:$4 sm:$0xff]   ;;  %v4379_v41 = vld [vmem:[%s6397_s1 + $0x380] ss:$8 sps:$4 sm:$0xff]   ;;  %v4420_v45 = vld [vmem:[%s6397_s1 + $0x30] ss:$8 sps:$4 sm:$0xff]  }
  0x19   : > { %s5094_s16 = scalar_lea.vmem %s6396_s0, %s4311_s17  ;;  %v4380_v42 = vld [vmem:[%s6397_s1 + $0x394] ss:$8 sps:$4 sm:$0xff]   ;;  %v4421_v46 = vld [vmem:[%s6397_s1 + $0x44] ss:$8 sps:$4 sm:$0xff]   ;;  %v4382_v47 = vld [vmem:[%s6397_s1 + $0x390] ss:$8 sps:$4 sm:$0xff]  }
  0x1a   : > { %v3877_v27 = vld.sshfl [vmem:[%s5094_s16 + $0x50] sm:$0xf pattern:$0x76325410]  ;;  %2817 = vmatpush1.bf16.msra.mxu1 %v3923_v28  ;;  %v4383_v48 = vld [vmem:[%s6397_s1 + $0x3a4] ss:$8 sps:$4 sm:$0xff]  }
  0x1b   : > { %2950 = vmatpush1.bf16.msra.mxu0 %v4364_v8  ;;  %v3878_v29 = vld.sshfl [vmem:[%s5094_s16 + $0x58] sm:$0xf pattern:$0x76325410]  ;;  %2818 = vmatprep.subr.bf16.mxu1 %v4409_v37  ;;  %v4426_v49 = vld [vmem:[%s6397_s1 + $0x40] ss:$8 sps:$4 sm:$0xff]  }
  0x1c   : > { %2951 = vmatprep.subr.bf16.mxu0 %v4365_v9  ;;  %v3879_v31 = vld.sshfl [vmem:[%s5094_s16 + $0x60] sm:$0xf pattern:$0x76325410]  ;;  %v621_v32 = vcombine.low %v3877_v27, %v3878_v29  ;;  %v4427_v50 = vld [vmem:[%s6397_s1 + $0x54] ss:$8 sps:$4 sm:$0xff]  }
  0x1d   : > { %v3880_v33 = vld.sshfl [vmem:[%s5094_s16 + $0x68] sm:$0xf pattern:$0x76325410]  ;;  %v4386_v52 = vld [vmem:[%s6397_s1 + $0x3b4] ss:$8 sps:$4 sm:$0xff]  }
  0x1e   : > { %v622_v35 = vcombine.low %v3879_v31, %v3880_v33  ;;  %v5125_v36 = vrot.slane %v621_v32, %v5112_v26  ;;  %2819 = vmatpush1.bf16.msra.mxu1 %v4414_v38  ;;  %v4385_v51 = vld [vmem:[%s6397_s1 + $0x3a0] ss:$8 sps:$4 sm:$0xff]   ;;  %v4432_v53 = vld [vmem:[%s6397_s1 + $0x50] ss:$8 sps:$4 sm:$0xff]   ;;  %v4433_v55 = vld [vmem:[%s6397_s1 + $0x64] ss:$8 sps:$4 sm:$0xff]  }
  0x1f   : > { %2952 = vmatpush1.bf16.msra.mxu0 %v4367_v10  ;;  %2820 = vmatprep.subr.bf16.mxu1 %v4415_v40  ;;  %v4388_v56 = vld [vmem:[%s6397_s1 + $0x3b0] ss:$8 sps:$4 sm:$0xff]   ;;  %v4389_v57 = vld [vmem:[%s6397_s1 + $0x3c4] ss:$8 sps:$4 sm:$0xff]   ;;  %v4438_v58 = vld [vmem:[%s6397_s1 + $0x60] ss:$8 sps:$4 sm:$0xff]  }
  0x20   : > { %2953 = vmatprep.subr.bf16.mxu0 %v4368_v11  ;;  %v5134_v39 = vrot.slane %v622_v35, %v5112_v26  ;;  %v4439_v59 = vld [vmem:[%s6397_s1 + $0x74] ss:$8 sps:$4 sm:$0xff]   ;;  %v4391_v60 = vld [vmem:[%s6397_s1 + $0x3c0] ss:$8 sps:$4 sm:$0xff]   ;;  %v4444_v62 = vld [vmem:[%s6397_s1 + $0x70] ss:$8 sps:$4 sm:$0xff]  }
  0x21   : > { %v4392_v61 = vld [vmem:[%s6397_s1 + $0x3d4] ss:$8 sps:$4 sm:$0xff]   ;;  %v4445_v63 = vld [vmem:[%s6397_s1 + $0x84] ss:$8 sps:$4 sm:$0xff]   ;;  %v4394_v0 = vld [vmem:[%s6397_s1 + $0x3d0] ss:$8 sps:$4 sm:$0xff]  }
  0x22   : > { %v638_v43 = vcombine.high %v5125_v36, %v5134_v39  ;;  %v637_v44 = vcombine.low %v5125_v36, %v5134_v39  ;;  %2821 = vmatpush1.bf16.msra.mxu1 %v4420_v45  ;;  %v4395_v1 = vld [vmem:[%s6397_s1 + $0x3e4] ss:$8 sps:$4 sm:$0xff]   ;;  %v4450_v2 = vld [vmem:[%s6397_s1 + $0x80] ss:$8 sps:$4 sm:$0xff]   ;;  %v4451_v4 = vld [vmem:[%s6397_s1 + $0x94] ss:$8 sps:$4 sm:$0xff]  }
  0x23   : > { %2954 = vmatpush1.bf16.msra.mxu0 %v4370_v15  ;;  %2822 = vmatprep.subr.bf16.mxu1 %v4421_v46  ;;  %v4397_v5 = vld [vmem:[%s6397_s1 + $0x3e0] ss:$8 sps:$4 sm:$0xff]   ;;  %v4400_v6 = vld [vmem:[%s6397_s1 + $0x3f4] ss:$8 sps:$4 sm:$0xff]   ;;  %v4456_v7 = vld [vmem:[%s6397_s1 + $0x90] ss:$8 sps:$4 sm:$0xff]  }
  0x24   : > { %2955 = vmatprep.subr.bf16.mxu0 %v4371_v16  ;;  %642 = vst.msk [vmem:[#allocation2 + $0x38] sm:$0xff] %vm398_vm1, %v638_v43  ;;  %v4457_v8 = vld [vmem:[%s6397_s1 + $0xa4] ss:$8 sps:$4 sm:$0xff]   ;;  %v4403_v9 = vld [vmem:[%s6397_s1 + $0x3f0] ss:$8 sps:$4 sm:$0xff]   ;;  %s4272_s26 = sshll.u32 %s5006_s13, 4 }
  0x25   : > { %v4408_v10 = vld [vmem:[%s6397_s1 + $0x404] ss:$8 sps:$4 sm:$0xff]   ;;  %v4462_v11 = vld [vmem:[%s6397_s1 + $0xa0] ss:$8 sps:$4 sm:$0xff]   ;;  %v4463_v12 = vld [vmem:[%s6397_s1 + $0xb4] ss:$8 sps:$4 sm:$0xff]   ;;  %s6354_s14 = scalar_lea.hbm %s6405_s9, %s4272_s26 }
  0x26   : > { %2823 = vmatpush1.bf16.msra.mxu1 %v4426_v49  ;;  %v4406_v13 = vld [vmem:[%s6397_s1 + $0x400] ss:$8 sps:$4 sm:$0xff]   ;;  %v4413_v14 = vld [vmem:[%s6397_s1 + $0x414] ss:$8 sps:$4 sm:$0xff]   ;;  %v4468_v15 = vld [vmem:[%s6397_s1 + $0xb0] ss:$8 sps:$4 sm:$0xff]  }
  0x27   : > { %2956 = vmatpush1.bf16.msra.mxu0 %v4373_v20  ;;  %2824 = vmatprep.subr.bf16.mxu1 %v4427_v50  ;;  %v4469_v16 = vld [vmem:[%s6397_s1 + $0xc4] ss:$8 sps:$4 sm:$0xff]   ;;  %v4411_v17 = vld [vmem:[%s6397_s1 + $0x410] ss:$8 sps:$4 sm:$0xff]   ;;  %v4474_v22 = vld [vmem:[%s6397_s1 + $0xc0] ss:$8 sps:$4 sm:$0xff]  }
  0x28   : > { %2957 = vmatprep.subr.bf16.mxu0 %v4374_v21  ;;  %v3857_v18 = vld.sshfl [vmem:[%s5094_s16] sm:$0xf pattern:$0x76325410]  ;;  %v4475_v27 = vld [vmem:[%s6397_s1 + $0xd4] ss:$8 sps:$4 sm:$0xff]  }
  0x29   : > { %v4419_v20 = vld [vmem:[%s6397_s1 + $0x424] ss:$8 sps:$4 sm:$0xff]   ;;  %v3859_v23 = vld.sshfl [vmem:[%s5094_s16 + $0x10] sm:$0xf pattern:$0x76325410] }
  0x2a   : > { %2825 = vmatpush1.bf16.msra.mxu1 %v4432_v53  ;;  %v3858_v21 = vld.sshfl [vmem:[%s5094_s16 + $0x8] sm:$0xf pattern:$0x76325410]  ;;  %v4425_v31 = vld [vmem:[%s6397_s1 + $0x434] ss:$8 sps:$4 sm:$0xff]  }
  0x2b   : > { %2958 = vmatpush1.bf16.msra.mxu0 %v4376_v30  ;;  %v1063_v54 = vld [vmem:[#allocation2 + $0x38] sm:$0xff]  ;;  %2826 = vmatprep.subr.bf16.mxu1 %v4433_v55  ;;  %v377_v24 = vcombine.low %v3857_v18, %v3858_v21  ;;  %v4417_v30 = vld [vmem:[%s6397_s1 + $0x420] ss:$8 sps:$4 sm:$0xff]   ;;  %v4481_v36 = vld [vmem:[%s6397_s1 + $0xe4] ss:$8 sps:$4 sm:$0xff]   ;;  %s324_s17 = scalar_lea.vmem [#allocation3], %s323_s23 }
  0x2c   : > { %2959 = vmatprep.subr.bf16.mxu0 %v4377_v34  ;;  %2975 = vmatprep.mubr.bf16.mxu0 %v1063_v54  ;;  %v3860_v25 = vld.sshfl [vmem:[%s5094_s16 + $0x18] sm:$0xf pattern:$0x76325410]  ;;  %v4431_v45 = vld [vmem:[%s6397_s1 + $0x444] ss:$8 sps:$4 sm:$0xff]  }
  0x2d   : > { %v378_v28 = vcombine.low %v3859_v23, %v3860_v25  ;;  %v385_v29 = vrot.slane %v377_v24, %v5112_v26  ;;  %v3885_v33 = vld.sshfl [vmem:[%s5094_s16 + $0x78] sm:$0xf pattern:$0x76325410]  ;;  %v4486_v46 = vld [vmem:[%s6397_s1 + $0xe0] ss:$8 sps:$4 sm:$0xff]  }
  0x2e   : > { %2827 = vmatpush1.bf16.msra.mxu1 %v4438_v58  ;;  %v4480_v34 = vld [vmem:[%s6397_s1 + $0xd0] ss:$8 sps:$4 sm:$0xff]   ;;  %v3886_v35 = vld.sshfl [vmem:[%s5094_s16 + $0x80] sm:$0xf pattern:$0x76325410] }
  0x2f   : > { %2960 = vmatpush1.bf16.msra.mxu0 %v4379_v41  ;;  %2828 = vmatprep.subr.bf16.mxu1 %v4439_v59  ;;  %v392_v32 = vrot.slane %v378_v28, %v5112_v26  ;;  %v3887_v39 = vld.sshfl [vmem:[%s5094_s16 + $0x88] sm:$0xf pattern:$0x76325410]  ;;  %v680_v40 = vcombine.low %v3885_v33, %v3886_v35  ;;  %v4492_v53 = vld [vmem:[%s6397_s1 + $0xf0] ss:$8 sps:$4 sm:$0xff]  }
  0x30   : > { %2961 = vmatprep.subr.bf16.mxu0 %v4380_v42  ;;  %v3888_v41 = vld.sshfl [vmem:[%s5094_s16 + $0x90] sm:$0xf pattern:$0x76325410]  ;;  %v4429_v49 = vld [vmem:[%s6397_s1 + $0x440] ss:$8 sps:$4 sm:$0xff]  }
  0x31   : > { %v394_v37 = vcombine.high %v385_v29, %v392_v32  ;;  %v393_v38 = vcombine.low %v385_v29, %v392_v32  ;;  %v4423_v42 = vld [vmem:[%s6397_s1 + $0x430] ss:$8 sps:$4 sm:$0xff]   ;;  %v681_v43 = vcombine.low %v3887_v39, %v3888_v41  ;;  %v4495_v54 = vld [vmem:[%s6397_s1 + $0x104] ss:$8 sps:$4 sm:$0xff]   ;;  %v4493_v58 = vld [vmem:[%s6397_s1 + $0x100] ss:$8 sps:$4 sm:$0xff]  }
  0x32   : > { %2829 = vmatpush1.bf16.msra.mxu1 %v4444_v62  ;;  %v4501_v59 = vld [vmem:[%s6397_s1 + $0x114] ss:$8 sps:$4 sm:$0xff]   ;;  %v4499_v62 = vld [vmem:[%s6397_s1 + $0x110] ss:$8 sps:$4 sm:$0xff]   ;;  %v4529_v21 = vld [vmem:[%s6397_s1 + $0x160] ss:$8 sps:$4 sm:$0xff]  }
  0x33   : > { %2962 = vmatpush1.bf16.msra.mxu0 %v4382_v47  ;;  %2830 = vmatprep.subr.bf16.mxu1 %v4445_v63  ;;  %399 = vst.msk [vmem:[#allocation2 + $0x8] sm:$0xff] %vm398_vm1, %v394_v37  ;;  %v4487_v47 = vld [vmem:[%s6397_s1 + $0xf4] ss:$8 sps:$4 sm:$0xff]   ;;  %v4471_v18 = vld [vmem:[%s6397_s1 + $0x4b0] ss:$8 sps:$4 sm:$0xff]   ;;  %s3797_s28 = sshll.u32 %s324_s17, 4  ;;  %s6356_s28 = int_to_ptr.vmem [resolvable:$true] %s3797_s28 }
  0x34   : > { %2963 = vmatprep.subr.bf16.mxu0 %v4383_v48  ;;  %v5306_v48 = vrot.slane %v681_v43, %v5112_v26  ;;  %vm499_vm2 = vsmask.f32 1280  ;;  %v4477_v23 = vld [vmem:[%s6397_s1 + $0x4c0] ss:$8 sps:$4 sm:$0xff]   ;;  %vm500_vm3 = vsmask.f32 3336 }
  0x35   : > { %v4485_v24 = vld [vmem:[%s6397_s1 + $0x4d4] ss:$8 sps:$4 sm:$0xff]   ;;  %v4535_v25 = vld [vmem:[%s6397_s1 + $0x170] ss:$8 sps:$4 sm:$0xff]   ;;  %vm502_vm4 = vsmask.f32 5392  ;;  %vm5467_vm6 = vmor %vm499_vm2, %vm500_vm3 }
  0x36   : > { %2831 = vmatpush1.bf16.msra.mxu1 %v4450_v2  ;;  %v4455_v2 = vld [vmem:[%s6397_s1 + $0x484] ss:$8 sps:$4 sm:$0xff]   ;;  %v5423_v29 = vld.sshfl [vmem:[%s5094_s16 + $0x30] sm:$0xf pattern:$0x76325410]  ;;  %vm5485_vm7 = vmor %vm5467_vm6, %vm502_vm4 }
  0x37   : > { %2964 = vmatpush1.bf16.msra.mxu0 %v4385_v51  ;;  %2832 = vmatprep.subr.bf16.mxu1 %v4451_v4  ;;  %v4505_v4 = vld [vmem:[%s6397_s1 + $0x120] ss:$8 sps:$4 sm:$0xff]   ;;  %v4543_v28 = vld [vmem:[%s6397_s1 + $0x184] ss:$8 sps:$4 sm:$0xff]   ;;  %vm504_vm5 = vsmask.f32 7448 }
  0x38   : > { %2965 = vmatprep.subr.bf16.mxu0 %v4386_v52  ;;  %v4437_v52 = vld [vmem:[%s6397_s1 + $0x454] ss:$8 sps:$4 sm:$0xff]   ;;  %v5433_v33 = vld.sshfl [vmem:[%s5094_s16 + $0x40] sm:$0xf pattern:$0x76325410]  ;;  %vm5504_vm8 = vmor %vm5485_vm7, %vm504_vm5 }
  0x39   : > { %v4541_v35 = vld [vmem:[%s6397_s1 + $0x180] ss:$8 sps:$4 sm:$0xff]   ;;  %v4549_v39 = vld [vmem:[%s6397_s1 + $0x194] ss:$8 sps:$4 sm:$0xff]   ;;  %v4547_v41 = vld [vmem:[%s6397_s1 + $0x190] ss:$8 sps:$4 sm:$0xff]  }
  0x3a   : > { %2833 = vmatpush1.bf16.msra.mxu1 %v4456_v7  ;;  %v1057_v55 = vld [vmem:[#allocation2 + $0x8] sm:$0xff]  ;;  %v4461_v7 = vld [vmem:[%s6397_s1 + $0x494] ss:$8 sps:$4 sm:$0xff]   ;;  %vm3782_vm9 = vcmask 57344   ;;  %s3785_s13 = scalar_lea.sflag [#allocation4], %s323_s23  ;;  %s4934_s21 = smov [#allocation3]  }
  0x3b   : > { %2966 = vmatpush1.bf16.msra.mxu0 %v4388_v56  ;;  %2834 = vmatprep.subr.bf16.mxu1 %v4457_v8  ;;  %v4435_v56 = vld [vmem:[%s6397_s1 + $0x450] ss:$8 sps:$4 sm:$0xff]   ;;  %s4872_s22 = sshll.u32 %s4934_s21, 4  ;;  %s4873_s22 = int_to_ptr.vmem [resolvable:$false] %s4872_s22 }
  0x3c   : > { %2967 = vmatprep.subr.bf16.mxu0 %v4389_v57  ;;  %2846 = vmatprep.mubr.bf16.mxu1 %v1057_v55  ;;  %v4443_v57 = vld [vmem:[%s6397_s1 + $0x464] ss:$8 sps:$4 sm:$0xff]   ;;  %v4511_v8 = vld [vmem:[%s6397_s1 + $0x130] ss:$8 sps:$4 sm:$0xff]   ;;  %s4874_s24 = scalar_lea.vmem %s4873_s22, 32  ;;  %p4875_p0 = scmp.lt.s32.totalorder %s6356_s28, %s4873_s22 }
  0x3d   : > { %v3893_v43 = vld.sshfl [vmem:[%s5094_s16 + $0x50] sm:$0x5f pattern:$0x76325410] }
  0x3e   : > { %2835 = vmatpush1.bf16.msra.mxu1 %v4462_v11  ;;  %v4467_v11 = vld [vmem:[%s6397_s1 + $0x4a4] ss:$8 sps:$4 sm:$0xff]  }
  0x3f   : > { %2968 = vmatpush1.bf16.msra.mxu0 %v4391_v60  ;;  %2836 = vmatprep.subr.bf16.mxu1 %v4463_v12  ;;  %v4441_v60 = vld [vmem:[%s6397_s1 + $0x460] ss:$8 sps:$4 sm:$0xff]  }
  0x40   : > { %2969 = vmatprep.subr.bf16.mxu0 %v4392_v61  ;;  %v4449_v61 = vld [vmem:[%s6397_s1 + $0x474] ss:$8 sps:$4 sm:$0xff]   ;;  %v4517_v12 = vld [vmem:[%s6397_s1 + $0x140] ss:$8 sps:$4 sm:$0xff]  }
  0x41   : > { %v3895_v55 = vld.sshfl [vmem:[%s5094_s16 + $0x60] sm:$0x5f pattern:$0x76325410] }
  0x42   : > { %2837 = vmatpush1.bf16.msra.mxu1 %v4468_v15  ;;  %v4473_v15 = vld [vmem:[%s6397_s1 + $0x4b4] ss:$8 sps:$4 sm:$0xff]  }
  0x43   : > { %2970 = vmatpush1.bf16.msra.mxu0 %v4394_v0  ;;  %2838 = vmatprep.subr.bf16.mxu1 %v4469_v16  ;;  %v4507_v0 = vld [vmem:[%s6397_s1 + $0x124] ss:$8 sps:$4 sm:$0xff]   ;;  %v4523_v16 = vld [vmem:[%s6397_s1 + $0x150] ss:$8 sps:$4 sm:$0xff]  }
  0x44   : > { %2971 = vmatprep.subr.bf16.mxu0 %v4395_v1  ;;  %v4447_v1 = vld [vmem:[%s6397_s1 + $0x470] ss:$8 sps:$4 sm:$0xff]  }
  0x46   : > { %2839 = vmatpush1.bf16.msra.mxu1 %v4474_v22  ;;  %v4537_v22 = vld [vmem:[%s6397_s1 + $0x174] ss:$8 sps:$4 sm:$0xff]  }
  0x47   : > { %2972 = vmatpush1.bf16.msra.mxu0 %v4397_v5  ;;  %2840 = vmatprep.subr.bf16.mxu1 %v4475_v27  ;;  %v4513_v5 = vld [vmem:[%s6397_s1 + $0x134] ss:$8 sps:$4 sm:$0xff]   ;;  %v3865_v27 = vld.sshfl [vmem:[%s5094_s16 + $0x28] sm:$0xf pattern:$0x76325410] }
  0x48   : > { %2973 = vmatprep.subr.bf16.mxu0 %v4400_v6  ;;  %v4453_v6 = vld [vmem:[%s6397_s1 + $0x480] ss:$8 sps:$4 sm:$0xff]   ;;  %v437_v32 = vcombine.low %v3865_v27, %v5423_v29 }
  0x4a   : > { %2841 = vmatpush1.bf16.msra.mxu1 %v4480_v34  ;;  %v4491_v34 = vld [vmem:[%s6397_s1 + $0x4e4] ss:$8 sps:$4 sm:$0xff]   ;;  %v5444_v37 = vrot.slane %v437_v32, %v5112_v26 }
  0x4b   : > { %2974 = vmatpush1.bf16.msra.mxu0 %v4403_v9  ;;  %2842 = vmatprep.subr.bf16.mxu1 %v4481_v36  ;;  %v4519_v9 = vld [vmem:[%s6397_s1 + $0x144] ss:$8 sps:$4 sm:$0xff]  }
  0x4c   : > { %2986 = vmatprep.subr.bf16.mxu0 %v4408_v10  ;;  %v4459_v10 = vld [vmem:[%s6397_s1 + $0x490] ss:$8 sps:$4 sm:$0xff]  }
  0x4e   : > { %2976 = vmatmul.mubr.bf16.vlgmr.msra.gmra.mrb[0].mxu0 %v637_v44  ;;  %v5294_v44 = vrot.slane %v680_v40, %v5112_v26  ;;  %2843 = vmatpush1.bf16.msra.mxu1 %v4486_v46  ;;  %v4498_v40 = vld [vmem:[%s6397_s1 + $0x4f4] ss:$8 sps:$4 sm:$0xff]  }
  0x4f   : > { %2987 = vmatpush1.bf16.msra.mxu0 %v4406_v13  ;;  %2844 = vmatprep.subr.bf16.mxu1 %v4487_v47  ;;  %v4525_v13 = vld [vmem:[%s6397_s1 + $0x154] ss:$8 sps:$4 sm:$0xff]  }
  0x50   : > { %2988 = vmatprep.subr.bf16.mxu0 %v4413_v14  ;;  %v697_v50 = vcombine.high %v5294_v44, %v5306_v48  ;;  %v696_v51 = vcombine.low %v5294_v44, %v5306_v48  ;;  %v4465_v14 = vld [vmem:[%s6397_s1 + $0x4a0] ss:$8 sps:$4 sm:$0xff]   ;;  %v3894_v47 = vld.sshfl [vmem:[%s5094_s16 + $0x58] sm:$0x5f pattern:$0x76325410] }
  0x51   : > { %v4565_v44 = vld [vmem:[%s6397_s1 + $0x1c0] ss:$8 sps:$4 sm:$0xff]  }
  0x52   : > { %701 = vst.msk [vmem:[#allocation2 + $0x48] sm:$0xff] %vm398_vm1, %v697_v50  ;;  %2845 = vmatpush1.bf16.msra.mxu1 %v4492_v53  ;;  %v743_v50 = vshrl.u32 %v3893_v43, 16 }
  0x53   : > { %2989 = vmatpush1.bf16.msra.mxu0 %v4411_v17  ;;  %2857 = vmatprep.subr.bf16.mxu1 %v4495_v54  ;;  %v4531_v17 = vld [vmem:[%s6397_s1 + $0x164] ss:$8 sps:$4 sm:$0xff]  }
  0x54   : > { %2990 = vmatprep.subr.bf16.mxu0 %v4419_v20  ;;  %v4479_v20 = vld [vmem:[%s6397_s1 + $0x4c4] ss:$8 sps:$4 sm:$0xff]  }
  0x55   : > { %2847 = vmatmul.mubr.bf16.vlgmr.msra.gmra.mrb[0].mxu1 %v393_v38  ;;  %v4489_v38 = vld [vmem:[%s6397_s1 + $0x4e0] ss:$8 sps:$4 sm:$0xff]  }
  0x56   : > { %2858 = vmatpush1.bf16.msra.mxu1 %v4493_v58  ;;  %v3896_v58 = vld.sshfl [vmem:[%s5094_s16 + $0x68] sm:$0x5f pattern:$0x76325410] }
  0x57   : > { %2991 = vmatpush1.bf16.msra.mxu0 %v4417_v30  ;;  %2859 = vmatprep.subr.bf16.mxu1 %v4501_v59  ;;  %v4483_v30 = vld [vmem:[%s6397_s1 + $0x4d0] ss:$8 sps:$4 sm:$0xff]   ;;  %v733_v59 = vcombine.high %v3895_v55, %v3895_v55  ;;  %v788_v27 = vshll.u32 %v3896_v58, 16 }
  0x58   : > { %2992 = vmatprep.subr.bf16.mxu0 %v4425_v31  ;;  %v5429_v31 = vld.sshfl [vmem:[%s5094_s16 + $0x38] sm:$0xf pattern:$0x76325410] }
  0x59   : > { %v1065_v63 = vld [vmem:[#allocation2 + $0x48] sm:$0xff]  ;;  %v438_v36 = vcombine.low %v5429_v31, %v5433_v33 }
  0x5a   : > { %3018 = vmatprep.mubr.bf16.mxu0 %v1065_v63  ;;  %2860 = vmatpush1.bf16.msra.mxu1 %v4499_v62  ;;  %v4496_v62 = vld [vmem:[%s6397_s1 + $0x4f0] ss:$8 sps:$4 sm:$0xff]   ;;  %v4528_v63 = vld [vmem:[%s6397_s1 + $0x544] ss:$8 sps:$4 sm:$0xff]  }
  0x5b   : > { %2993 = vmatpush1.bf16.msra.mxu0 %v4423_v42  ;;  %2861 = vmatprep.subr.bf16.mxu1 %v4507_v0  ;;  %v5459_v42 = vrot.slane %v438_v36, %v5112_v26  ;;  %v741_v0 = vcombine.high %v3896_v58, %v3896_v58 }
  0x5c   : > { %2994 = vmatprep.subr.bf16.mxu0 %v4431_v45  ;;  %v4555_v45 = vld [vmem:[%s6397_s1 + $0x1a4] ss:$8 sps:$4 sm:$0xff]  }
  0x5d   : > { %v454_v53 = vcombine.high %v5444_v37, %v5459_v42  ;;  %v453_v54 = vcombine.low %v5444_v37, %v5459_v42  ;;  %v794_v32 = vshll.u32 %v741_v0, 16  ;;  %v4552_v37 = vld [vmem:[%s6397_s1 + $0x584] ss:$8 sps:$4 sm:$0xff]   ;;  %v4601_v42 = vld [vmem:[%s6397_s1 + $0x220] ss:$8 sps:$4 sm:$0xff]  }
  0x5e   : > { %2862 = vmatpush1.bf16.msra.mxu1 %v4505_v4  ;;  %v760_v4 = vshll.u32 %v3894_v47, 16 }
  0x5f   : > { %2995 = vmatpush1.bf16.msra.mxu0 %v4429_v49  ;;  %2863 = vmatprep.subr.bf16.mxu1 %v4513_v5  ;;  %v717_v49 = vcombine.high %v3893_v43, %v3893_v43  ;;  %458 = vst.msk [vmem:[#allocation2 + $0x18] sm:$0xff] %vm398_vm1, %v454_v53  ;;  %v4504_v5 = vld [vmem:[%s6397_s1 + $0x504] ss:$8 sps:$4 sm:$0xff]   ;;  %v796_v46 = vrot.slane %v794_v32, 7 }
  0x60   : > { %2996 = vmatprep.subr.bf16.mxu0 %v4437_v52  ;;  %v746_v52 = vshll.u32 %v3893_v43, 16  ;;  %v3869_v32 = vld.sshfl [vmem:[%s5094_s16] sm:$0x5f pattern:$0x76325410] }
  0x62   : > { %2864 = vmatpush1.bf16.msra.mxu1 %v4511_v8  ;;  %v771_v8 = vshrl.u32 %v3895_v55, 16 }
  0x63   : > { %2997 = vmatpush1.bf16.msra.mxu0 %v4435_v56  ;;  %2865 = vmatprep.subr.bf16.mxu1 %v4519_v9  ;;  %v725_v56 = vcombine.high %v3894_v47, %v3894_v47  ;;  %v774_v9 = vshll.u32 %v3895_v55, 16  ;;  %v4514_v55 = vld [vmem:[%s6397_s1 + $0x520] ss:$8 sps:$4 sm:$0xff]  }
  0x64   : > { %2998 = vmatprep.subr.bf16.mxu0 %v4443_v57  ;;  %v757_v57 = vshrl.u32 %v3894_v47, 16  ;;  %v4508_v47 = vld [vmem:[%s6397_s1 + $0x510] ss:$8 sps:$4 sm:$0xff]  }
  0x66   : > { %2866 = vmatpush1.bf16.msra.mxu1 %v4517_v12  ;;  %v762_v12 = vrot.slane %v760_v4, 7  ;;  %v4585_v4 = vld [vmem:[%s6397_s1 + $0x1f4] ss:$8 sps:$4 sm:$0xff]  }
  0x67   : > { %2999 = vmatpush1.bf16.msra.mxu0 %v4441_v60  ;;  %2867 = vmatprep.subr.bf16.mxu1 %v4525_v13  ;;  %v745_v60 = vrot.slane %v743_v50, 6  ;;  %v780_v13 = vshll.u32 %v733_v59, 16  ;;  %v4571_v59 = vld [vmem:[%s6397_s1 + $0x1d0] ss:$8 sps:$4 sm:$0xff]  }
  0x68   : > { %3000 = vmatprep.subr.bf16.mxu0 %v4449_v61  ;;  %v748_v61 = vrot.slane %v746_v52, 7  ;;  %v4573_v52 = vld [vmem:[%s6397_s1 + $0x1d4] ss:$8 sps:$4 sm:$0xff]  }
  0x6a   : > { %2868 = vmatpush1.bf16.msra.mxu1 %v4523_v16  ;;  %v4561_v16 = vld [vmem:[%s6397_s1 + $0x1b4] ss:$8 sps:$4 sm:$0xff]  }
  0x6b   : > { %3001 = vmatpush1.bf16.msra.mxu0 %v4447_v1  ;;  %2869 = vmatprep.subr.bf16.mxu1 %v4531_v17  ;;  %v752_v1 = vshll.u32 %v717_v49, 16  ;;  %v4516_v49 = vld [vmem:[%s6397_s1 + $0x524] ss:$8 sps:$4 sm:$0xff]  }
  0x6c   : > { %3002 = vmatprep.subr.bf16.mxu0 %v4455_v2  ;;  %v759_v2 = vrot.slane %v757_v57, 6 }
  0x6e   : > { %2870 = vmatpush1.bf16.msra.mxu1 %v4529_v21  ;;  %v776_v21 = vrot.slane %v774_v9, 7  ;;  %v4532_v9 = vld [vmem:[%s6397_s1 + $0x550] ss:$8 sps:$4 sm:$0xff]  }
  0x6f   : > { %3003 = vmatpush1.bf16.msra.mxu0 %v4453_v6  ;;  %2871 = vmatprep.subr.bf16.mxu1 %v4537_v22  ;;  %v749_v6 = vor.u32 %v748_v61, %v745_v60  ;;  %v4510_v22 = vld [vmem:[%s6397_s1 + $0x514] ss:$8 sps:$4 sm:$0xff]   ;;  %v4579_v60 = vld [vmem:[%s6397_s1 + $0x1e4] ss:$8 sps:$4 sm:$0xff]  }
  0x70   : > { %3004 = vmatprep.subr.bf16.mxu0 %v4461_v7  ;;  %v766_v7 = vshll.u32 %v725_v56, 16  ;;  %v4522_v56 = vld [vmem:[%s6397_s1 + $0x534] ss:$8 sps:$4 sm:$0xff]  }
  0x72   : > { %2872 = vmatpush1.bf16.msra.mxu1 %v4535_v25 }
  0x73   : > { %3005 = vmatpush1.bf16.msra.mxu0 %v4459_v10  ;;  %2873 = vmatprep.subr.bf16.mxu1 %v4543_v28  ;;  %v4553_v10 = vld [vmem:[%s6397_s1 + $0x1a0] ss:$8 sps:$4 sm:$0xff]   ;;  %v4559_v28 = vld [vmem:[%s6397_s1 + $0x1b0] ss:$8 sps:$4 sm:$0xff]  }
  0x74   : > { %3006 = vmatprep.subr.bf16.mxu0 %v4467_v11  ;;  %v754_v11 = vrot.slane %v752_v1, 7 }
  0x76   : > { %2874 = vmatpush1.bf16.msra.mxu1 %v4541_v35 }
  0x77   : > { %3007 = vmatpush1.bf16.msra.mxu0 %v4465_v14  ;;  %2875 = vmatprep.subr.bf16.mxu1 %v4549_v39  ;;  %v785_v14 = vshrl.u32 %v3896_v58, 16  ;;  %v790_v39 = vrot.slane %v788_v27, 7  ;;  %v4564_v27 = vld [vmem:[%s6397_s1 + $0x5a4] ss:$8 sps:$4 sm:$0xff]  }
  0x78   : > { %3008 = vmatprep.subr.bf16.mxu0 %v4473_v15  ;;  %v4502_v15 = vld [vmem:[%s6397_s1 + $0x500] ss:$8 sps:$4 sm:$0xff]  }
  0x79   : > { %v787_v25 = vrot.slane %v785_v14, 6  ;;  %v4538_v14 = vld [vmem:[%s6397_s1 + $0x560] ss:$8 sps:$4 sm:$0xff]  }
  0x7a   : > { %2876 = vmatpush1.bf16.msra.mxu1 %v4547_v41 }
  0x7b   : > { %3009 = vmatpush1.bf16.msra.mxu0 %v4471_v18  ;;  %2877 = vmatprep.subr.bf16.mxu1 %v4555_v45  ;;  %v750_v18 = vrot.slane %v749_v6, 2  ;;  %v791_v45 = vor.u32 %v790_v39, %v787_v25  ;;  %v4534_v6 = vld [vmem:[%s6397_s1 + $0x554] ss:$8 sps:$4 sm:$0xff]   ;;  %v4615_v25 = vld [vmem:[%s6397_s1 + $0x244] ss:$8 sps:$4 sm:$0xff]  }
  0x7c   : > { %3010 = vmatprep.subr.bf16.mxu0 %v4479_v20  ;;  %v773_v20 = vrot.slane %v771_v8, 6  ;;  %v4591_v8 = vld [vmem:[%s6397_s1 + $0x204] ss:$8 sps:$4 sm:$0xff]   ;;  %v4562_v39 = vld [vmem:[%s6397_s1 + $0x5a0] ss:$8 sps:$4 sm:$0xff]  }
  0x7d   : > { %v755_v35 = vsel %vm5504_vm8, %v750_v18, %v754_v11  ;;  %v4589_v11 = vld [vmem:[%s6397_s1 + $0x200] ss:$8 sps:$4 sm:$0xff]   ;;  %v4603_v18 = vld [vmem:[%s6397_s1 + $0x224] ss:$8 sps:$4 sm:$0xff]  }
  0x7e   : > { %2878 = vmatpush1.bf16.msra.mxu1 %v4553_v10  ;;  %v4540_v10 = vld [vmem:[%s6397_s1 + $0x564] ss:$8 sps:$4 sm:$0xff]  }
  0x7f   : > { %3011 = vmatpush1.bf16.msra.mxu0 %v4477_v23  ;;  %v763_v23 = vor.u32 %v762_v12, %v759_v2  ;;  %2879 = vmatprep.subr.bf16.mxu1 %v4561_v16  ;;  %v4577_v2 = vld [vmem:[%s6397_s1 + $0x1e0] ss:$8 sps:$4 sm:$0xff]   ;;  %v4595_v16 = vld [vmem:[%s6397_s1 + $0x210] ss:$8 sps:$4 sm:$0xff]  }
  0x80   : > { %3012 = vmatprep.subr.bf16.mxu0 %v4485_v24  ;;  %v768_v24 = vrot.slane %v766_v7, 7  ;;  %v4583_v7 = vld [vmem:[%s6397_s1 + $0x1f0] ss:$8 sps:$4 sm:$0xff]  }
  0x81   : > { %v764_v36 = vrot.slane %v763_v23, 2  ;;  %v4607_v23 = vld [vmem:[%s6397_s1 + $0x230] ss:$8 sps:$4 sm:$0xff]  }
  0x82   : > { %2880 = vmatpush1.bf16.msra.mxu1 %v4559_v28  ;;  %v4613_v28 = vld [vmem:[%s6397_s1 + $0x240] ss:$8 sps:$4 sm:$0xff]  }
  0x83   : > { %3013 = vmatpush1.bf16.msra.mxu0 %v4483_v30  ;;  %v777_v30 = vor.u32 %v776_v21, %v773_v20  ;;  %v769_v43 = vsel %vm5504_vm8, %v764_v36, %v768_v24  ;;  %v4544_v20 = vld [vmem:[%s6397_s1 + $0x570] ss:$8 sps:$4 sm:$0xff]   ;;  %v4550_v21 = vld [vmem:[%s6397_s1 + $0x580] ss:$8 sps:$4 sm:$0xff]   ;;  %v507_v36 = vshrl.u32 %v3869_v32, 16 }
  0x84   : > { %3014 = vmatprep.subr.bf16.mxu0 %v4491_v34  ;;  %v4567_v34 = vld [vmem:[%s6397_s1 + $0x1c4] ss:$8 sps:$4 sm:$0xff]   ;;  %v798_v50 = vcombine.low %v755_v35, %v769_v43  ;;  %v4556_v24 = vld [vmem:[%s6397_s1 + $0x590] ss:$8 sps:$4 sm:$0xff]   ;;  %v474_v35 = vcombine.high %v3869_v32, %v3869_v32 }
  0x85   : > { %v778_v41 = vrot.slane %v777_v30, 2  ;;  %2881 = vmatprep.subr.bf16.mxu1 %v4567_v34  ;;  %v4621_v30 = vld [vmem:[%s6397_s1 + $0x254] ss:$8 sps:$4 sm:$0xff]  }
  0x86   : > { %v5547_v58 = vrot.slane %v798_v50, %v5112_v26  ;;  %2882 = vmatpush1.bf16.msra.mxu1 %v4565_v44  ;;  %v3870_v34 = vld.sshfl [vmem:[%s5094_s16 + $0x8] sm:$0x5f pattern:$0x76325410]  ;;  %v4570_v44 = vld [vmem:[%s6397_s1 + $0x5b4] ss:$8 sps:$4 sm:$0xff]  }
  0x87   : > { %3015 = vmatpush1.bf16.msra.mxu0 %v4489_v38  ;;  %v782_v38 = vrot.slane %v780_v13, 7  ;;  %2883 = vmatprep.subr.bf16.mxu1 %v4573_v52  ;;  %v4597_v13 = vld [vmem:[%s6397_s1 + $0x214] ss:$8 sps:$4 sm:$0xff]   ;;  %v521_v43 = vshrl.u32 %v3870_v34, 16 }
  0x88   : > { %3016 = vmatprep.subr.bf16.mxu0 %v4498_v40  ;;  %v1059_v40 = vld [vmem:[#allocation2 + $0x18] sm:$0xff] }
  0x89   : > { %2889 = vmatprep.mubr.bf16.mxu1 %v1059_v40  ;;  %v783_v48 = vsel %vm5504_vm8, %v778_v41, %v782_v38  ;;  %v510_v38 = vshll.u32 %v3869_v32, 16  ;;  %v3871_v40 = vld.sshfl [vmem:[%s5094_s16 + $0x10] sm:$0x5f pattern:$0x76325410]  ;;  %v482_v41 = vcombine.high %v3870_v34, %v3870_v34  ;;  %v523_v52 = vrot.slane %v521_v43, 6 }
  0x8a   : > { %2884 = vmatpush1.bf16.msra.mxu1 %v4571_v59  ;;  %v535_v59 = vshrl.u32 %v3871_v40, 16 }
  0x8b   : > { %3017 = vmatpush1.bf16.msra.mxu0 %v4496_v62  ;;  %v4520_v62 = vld [vmem:[%s6397_s1 + $0x530] ss:$8 sps:$4 sm:$0xff]   ;;  %2885 = vmatprep.subr.bf16.mxu1 %v4579_v60  ;;  %v512_v50 = vrot.slane %v510_v38, 7  ;;  %v538_v60 = vshll.u32 %v3871_v40, 16 }
  0x8c   : > { %3029 = vmatprep.subr.bf16.mxu0 %v4504_v5  ;;  %v4526_v5 = vld [vmem:[%s6397_s1 + $0x540] ss:$8 sps:$4 sm:$0xff]  }
  0x8e   : > { %3019 = vmatmul.mubr.bf16.vlgmr.msra.gmra.mrb[0].mxu0 %v696_v51  ;;  %v792_v51 = vrot.slane %v791_v45, 2  ;;  %2886 = vmatpush1.bf16.msra.mxu1 %v4577_v2  ;;  %v524_v45 = vshll.u32 %v3870_v34, 16  ;;  %v3904_v34 = vld.sshfl [vmem:[%s5094_s16 + $0x20] sm:$0xf pattern:$0x76325410] }
  0x8f   : > { %3030 = vmatpush1.bf16.msra.mxu0 %v4502_v15  ;;  %2887 = vmatprep.subr.bf16.mxu1 %v4585_v4  ;;  %v4546_v15 = vld [vmem:[%s6397_s1 + $0x574] ss:$8 sps:$4 sm:$0xff]  }
  0x90   : > { %3031 = vmatprep.subr.bf16.mxu0 %v4510_v22  ;;  %v797_v53 = vsel %vm5504_vm8, %v792_v51, %v796_v46  ;;  %v4558_v22 = vld [vmem:[%s6397_s1 + $0x594] ss:$8 sps:$4 sm:$0xff]   ;;  %v516_v51 = vshll.u32 %v474_v35, 16 }
  0x91   : > { %v799_v57 = vcombine.low %v783_v48, %v797_v53  ;;  %v3872_v46 = vld.sshfl [vmem:[%s5094_s16 + $0x18] sm:$0x5f pattern:$0x76325410]  ;;  %v526_v53 = vrot.slane %v524_v45, 7 }
  0x92   : > { %2888 = vmatpush1.bf16.msra.mxu1 %v4583_v7  ;;  %v498_v48 = vcombine.high %v3872_v46, %v3872_v46  ;;  %v4625_v7 = vld [vmem:[%s6397_s1 + $0x260] ss:$8 sps:$4 sm:$0xff]   ;;  %v4582_v35 = vld [vmem:[%s6397_s1 + $0x5d4] ss:$8 sps:$4 sm:$0xff]  }
  0x93   : > { %3032 = vmatpush1.bf16.msra.mxu0 %v4508_v47  ;;  %v5556_v61 = vrot.slane %v799_v57, %v5112_v26  ;;  %2900 = vmatprep.subr.bf16.mxu1 %v4591_v8  ;;  %v490_v47 = vcombine.high %v3871_v40, %v3871_v40  ;;  %v530_v57 = vshll.u32 %v482_v41, 16  ;;  %v527_v2 = vor.u32 %v526_v53, %v523_v52  ;;  %v4645_v53 = vld [vmem:[%s6397_s1 + $0x294] ss:$8 sps:$4 sm:$0xff]  }
  0x94   : > { %3033 = vmatprep.subr.bf16.mxu0 %v4516_v49  ;;  %v509_v49 = vrot.slane %v507_v36, 6  ;;  %v4631_v36 = vld [vmem:[%s6397_s1 + $0x270] ss:$8 sps:$4 sm:$0xff]  }
  0x95   : > { %v815_v0 = vcombine.high %v5547_v58, %v5556_v61  ;;  %v814_v1 = vcombine.low %v5547_v58, %v5556_v61  ;;  %2890 = vmatmul.mubr.bf16.vlgmr.msra.gmra.mrb[0].mxu1 %v453_v54  ;;  %v4609_v54 = vld [vmem:[%s6397_s1 + $0x234] ss:$8 sps:$4 sm:$0xff]   ;;  %v544_v4 = vshll.u32 %v490_v47, 16  ;;  %v4610_v61 = vld [vmem:[%s6397_s1 + $0x620] ss:$8 sps:$4 sm:$0xff]  }
  0x96   : > { %2901 = vmatpush1.bf16.msra.mxu1 %v4589_v11  ;;  %v540_v11 = vrot.slane %v538_v60, 7 }
  0x97   : > { %3034 = vmatpush1.bf16.msra.mxu0 %v4514_v55  ;;  %819 = vst.msk [vmem:[#allocation2 + $0x58] sm:$0xff] %vm398_vm1, %v815_v0  ;;  %2902 = vmatprep.subr.bf16.mxu1 %v4597_v13  ;;  %v4619_v55 = vld [vmem:[%s6397_s1 + $0x250] ss:$8 sps:$4 sm:$0xff]   ;;  %v518_v0 = vrot.slane %v516_v51, 7  ;;  %v528_v13 = vrot.slane %v527_v2, 2 }
  0x98   : > { %3035 = vmatprep.subr.bf16.mxu0 %v4522_v56  ;;  %v513_v56 = vor.u32 %v512_v50, %v509_v49  ;;  %v4588_v50 = vld [vmem:[%s6397_s1 + $0x5e4] ss:$8 sps:$4 sm:$0xff]  }
  0x99   : > { %v4600_v2 = vld [vmem:[%s6397_s1 + $0x604] ss:$8 sps:$4 sm:$0xff]  }
  0x9a   : > { %2903 = vmatpush1.bf16.msra.mxu1 %v4595_v16  ;;  %v514_v8 = vrot.slane %v513_v56, 2  ;;  %v552_v16 = vshll.u32 %v3872_v46, 16  ;;  %v4586_v56 = vld [vmem:[%s6397_s1 + $0x5e0] ss:$8 sps:$4 sm:$0xff]  }
  0x9b   : > { %3036 = vmatpush1.bf16.msra.mxu0 %v4520_v62  ;;  %2904 = vmatprep.subr.bf16.mxu1 %v4603_v18  ;;  %v4568_v62 = vld [vmem:[%s6397_s1 + $0x5b0] ss:$8 sps:$4 sm:$0xff]  }
  0x9c   : > { %3037 = vmatprep.subr.bf16.mxu0 %v4528_v63  ;;  %v4627_v63 = vld [vmem:[%s6397_s1 + $0x264] ss:$8 sps:$4 sm:$0xff]   ;;  %v519_v18 = vsel %vm5504_vm8, %v514_v8, %v518_v0  ;;  %v4592_v0 = vld [vmem:[%s6397_s1 + $0x5f0] ss:$8 sps:$4 sm:$0xff]  }
  0x9d   : > { %v4655_v8 = vld [vmem:[%s6397_s1 + $0x2b0] ss:$8 sps:$4 sm:$0xff]  }
  0x9e   : > { %v1067_v12 = vld [vmem:[#allocation2 + $0x58] sm:$0xff]  ;;  %2905 = vmatpush1.bf16.msra.mxu1 %v4601_v42  ;;  %v3901_v42 = vld.sshfl [vmem:[%s5094_s16 + $0x8] sm:$0xf pattern:$0x76325410] }
  0x9f   : > { %3038 = vmatpush1.bf16.msra.mxu0 %v4526_v5  ;;  %3061 = vmatprep.mubr.bf16.mxu0 %v1067_v12  ;;  %v549_v5 = vshrl.u32 %v3872_v46, 16  ;;  %v4633_v12 = vld [vmem:[%s6397_s1 + $0x274] ss:$8 sps:$4 sm:$0xff]   ;;  %v4580_v46 = vld [vmem:[%s6397_s1 + $0x5d0] ss:$8 sps:$4 sm:$0xff]  }
  0xa0   : > { %3039 = vmatprep.subr.bf16.mxu0 %v4534_v6  ;;  %2906 = vmatprep.subr.bf16.mxu1 %v4609_v54  ;;  %v4576_v6 = vld [vmem:[%s6397_s1 + $0x5c4] ss:$8 sps:$4 sm:$0xff]   ;;  %v4574_v54 = vld [vmem:[%s6397_s1 + $0x5c0] ss:$8 sps:$4 sm:$0xff]  }
  0xa2   : > { %2907 = vmatpush1.bf16.msra.mxu1 %v4607_v23  ;;  %v3902_v23 = vld.sshfl [vmem:[%s5094_s16 + $0x10] sm:$0xf pattern:$0x76325410] }
  0xa3   : > { %3040 = vmatpush1.bf16.msra.mxu0 %v4532_v9  ;;  %2908 = vmatprep.subr.bf16.mxu1 %v4615_v25  ;;  %v532_v9 = vrot.slane %v530_v57, 7  ;;  %v3903_v25 = vld.sshfl [vmem:[%s5094_s16 + $0x18] sm:$0xf pattern:$0x76325410] }
  0xa4   : > { %3041 = vmatprep.subr.bf16.mxu0 %v4540_v10  ;;  %v537_v10 = vrot.slane %v535_v59, 6  ;;  %v858_v38 = vcombine.low %v3903_v25, %v3904_v34  ;;  %v4594_v57 = vld [vmem:[%s6397_s1 + $0x5f4] ss:$8 sps:$4 sm:$0xff]   ;;  %v4643_v59 = vld [vmem:[%s6397_s1 + $0x290] ss:$8 sps:$4 sm:$0xff]  }
  0xa5   : > { %v4622_v25 = vld [vmem:[%s6397_s1 + $0x640] ss:$8 sps:$4 sm:$0xff]  }
  0xa6   : > { %2909 = vmatpush1.bf16.msra.mxu1 %v4613_v28  ;;  %v5709_v45 = vrot.slane %v858_v38, %v5112_v26  ;;  %v4634_v34 = vld [vmem:[%s6397_s1 + $0x660] ss:$8 sps:$4 sm:$0xff]   ;;  %v4648_v38 = vld [vmem:[%s6397_s1 + $0x684] ss:$8 sps:$4 sm:$0xff]  }
  0xa7   : > { %3042 = vmatpush1.bf16.msra.mxu0 %v4538_v14  ;;  %2910 = vmatprep.subr.bf16.mxu1 %v4621_v30  ;;  %v546_v14 = vrot.slane %v544_v4, 7  ;;  %v4649_v4 = vld [vmem:[%s6397_s1 + $0x2a0] ss:$8 sps:$4 sm:$0xff]  }
  0xa8   : > { %3043 = vmatprep.subr.bf16.mxu0 %v4546_v15  ;;  %v551_v15 = vrot.slane %v549_v5, 6  ;;  %v4657_v5 = vld [vmem:[%s6397_s1 + $0x2b4] ss:$8 sps:$4 sm:$0xff]  }
  0xaa   : > { %2911 = vmatpush1.bf16.msra.mxu1 %v4619_v55 }
  0xab   : > { %3044 = vmatpush1.bf16.msra.mxu0 %v4544_v20  ;;  %v541_v20 = vor.u32 %v540_v11, %v537_v10  ;;  %2912 = vmatprep.subr.bf16.mxu1 %v4627_v63  ;;  %v4651_v63 = vld [vmem:[%s6397_s1 + $0x2a4] ss:$8 sps:$4 sm:$0xff]   ;;  %v916_v11 = vcombine.low %v5423_v29, %v5429_v31  ;;  %v4661_v29 = vld [vmem:[%s6397_s1 + $0x2c0] ss:$8 sps:$4 sm:$0xff]  }
  0xac   : > { %3045 = vmatprep.subr.bf16.mxu0 %v4552_v37  ;;  %v558_v37 = vshll.u32 %v498_v48, 16 }
  0xad   : > { %v5798_v58 = vrot.slane %v916_v11, %v5112_v26 }
  0xae   : > { %v560_v30 = vrot.slane %v558_v37, 7  ;;  %2913 = vmatpush1.bf16.msra.mxu1 %v4625_v7  ;;  %v4606_v7 = vld [vmem:[%s6397_s1 + $0x614] ss:$8 sps:$4 sm:$0xff]  }
  0xaf   : > { %3046 = vmatpush1.bf16.msra.mxu0 %v4550_v21  ;;  %v5686_v21 = vsel %vm5504_vm8, %v528_v13, %v532_v9  ;;  %2914 = vmatprep.subr.bf16.mxu1 %v4633_v12  ;;  %v4663_v9 = vld [vmem:[%s6397_s1 + $0x2c4] ss:$8 sps:$4 sm:$0xff]   ;;  %v4604_v13 = vld [vmem:[%s6397_s1 + $0x610] ss:$8 sps:$4 sm:$0xff]  }
  0xb0   : > { %3047 = vmatprep.subr.bf16.mxu0 %v4558_v22  ;;  %v554_v22 = vrot.slane %v552_v16, 7  ;;  %v562_v32 = vcombine.low %v519_v18, %v5686_v21  ;;  %v4618_v16 = vld [vmem:[%s6397_s1 + $0x634] ss:$8 sps:$4 sm:$0xff]  }
  0xb2   : > { %v555_v28 = vor.u32 %v554_v22, %v551_v15  ;;  %v5719_v49 = vrot.slane %v562_v32, %v5112_v26  ;;  %2915 = vmatpush1.bf16.msra.mxu1 %v4631_v36  ;;  %v4612_v15 = vld [vmem:[%s6397_s1 + $0x624] ss:$8 sps:$4 sm:$0xff]   ;;  %v4640_v36 = vld [vmem:[%s6397_s1 + $0x670] ss:$8 sps:$4 sm:$0xff]  }
  0xb3   : > { %3048 = vmatpush1.bf16.msra.mxu0 %v4556_v24  ;;  %v542_v24 = vrot.slane %v541_v20, 2  ;;  %v4675_v20 = vld [vmem:[%s6397_s1 + $0x2e4] ss:$8 sps:$4 sm:$0xff]  }
  0xb4   : > { %3049 = vmatprep.subr.bf16.mxu0 %v4564_v27  ;;  %v857_v27 = vcombine.low %v3901_v42, %v3902_v23  ;;  %v556_v41 = vrot.slane %v555_v28, 2  ;;  %v4624_v22 = vld [vmem:[%s6397_s1 + $0x644] ss:$8 sps:$4 sm:$0xff]   ;;  %v4673_v23 = vld [vmem:[%s6397_s1 + $0x2e0] ss:$8 sps:$4 sm:$0xff]  }
  0xb5   : > { %v5703_v40 = vsel %vm5504_vm8, %v542_v24, %v546_v14  ;;  %v3912_v14 = vld.sshfl [vmem:[%s5094_s16 + $0x48] sm:$0xf pattern:$0x76325410]  ;;  %v4681_v24 = vld [vmem:[%s6397_s1 + $0x2f4] ss:$8 sps:$4 sm:$0xff]  }
  0xb6   : > { %v5706_v43 = vrot.slane %v857_v27, %v5112_v26  ;;  %v5716_v47 = vsel %vm5504_vm8, %v556_v41, %v560_v30  ;;  %v917_v31 = vcombine.low %v5433_v33, %v3912_v14  ;;  %v4667_v33 = vld [vmem:[%s6397_s1 + $0x2d0] ss:$8 sps:$4 sm:$0xff]   ;;  %v4630_v27 = vld [vmem:[%s6397_s1 + $0x654] ss:$8 sps:$4 sm:$0xff]   ;;  %v4636_v32 = vld [vmem:[%s6397_s1 + $0x664] ss:$8 sps:$4 sm:$0xff]  }
  0xb7   : > { %3050 = vmatpush1.bf16.msra.mxu0 %v4562_v39  ;;  %v4639_v39 = vld [vmem:[%s6397_s1 + $0x284] ss:$8 sps:$4 sm:$0xff]   ;;  %v563_v48 = vcombine.low %v5703_v40, %v5716_v47  ;;  %v4679_v28 = vld [vmem:[%s6397_s1 + $0x2f0] ss:$8 sps:$4 sm:$0xff]   ;;  %v4654_v41 = vld [vmem:[%s6397_s1 + $0x694] ss:$8 sps:$4 sm:$0xff]  }
  0xb8   : > { %3051 = vmatprep.subr.bf16.mxu0 %v4570_v44  ;;  %v4637_v44 = vld [vmem:[%s6397_s1 + $0x280] ss:$8 sps:$4 sm:$0xff]   ;;  %v874_v51 = vcombine.high %v5706_v43, %v5709_v45  ;;  %v873_v52 = vcombine.low %v5706_v43, %v5709_v45  ;;  %2916 = vmatprep.subr.bf16.mxu1 %v4639_v39  ;;  %v5810_v18 = vrot.slane %v917_v31, %v5112_v26  ;;  %v4628_v30 = vld [vmem:[%s6397_s1 + $0x650] ss:$8 sps:$4 sm:$0xff]   ;;  %v4699_v43 = vld [vmem:[%s6397_s1 + $0x734] ss:$8 sps:$4 sm:$0xff]  }
  0xb9   : > { %v5737_v55 = vrot.slane %v563_v48, %v5112_v26  ;;  %2917 = vmatpush1.bf16.msra.mxu1 %v4637_v44  ;;  %v4646_v39 = vld [vmem:[%s6397_s1 + $0x680] ss:$8 sps:$4 sm:$0xff]   ;;  %v4666_v44 = vld [vmem:[%s6397_s1 + $0x6b4] ss:$8 sps:$4 sm:$0xff]   ;;  %v4691_v31 = vld [vmem:[%s6397_s1 + $0x710] ss:$8 sps:$4 sm:$0xff]  }
  0xba   : > { %878 = vst.msk [vmem:[#allocation2 + $0x68] sm:$0xff] %vm398_vm1, %v874_v51  ;;  %2918 = vmatprep.subr.bf16.mxu1 %v4645_v53  ;;  %v933_v37 = vcombine.high %v5798_v58, %v5810_v18  ;;  %v932_v42 = vcombine.low %v5798_v58, %v5810_v18  ;;  %v3920_v48 = vld.sshfl [vmem:[%s5094_s16 + $0x20] sm:$0x5f pattern:$0x76325410]  ;;  %s4868_s16 = scalar_lea.vmem %s6356_s28, 16 }
  0xbb   : > { %3052 = vmatpush1.bf16.msra.mxu0 %v4568_v62  ;;  %v579_v60 = vcombine.high %v5719_v49, %v5737_v55  ;;  %v578_v62 = vcombine.low %v5719_v49, %v5737_v55  ;;  %v4660_v49 = vld [vmem:[%s6397_s1 + $0x6a4] ss:$8 sps:$4 sm:$0xff]   ;;  %v1021_v51 = vshrl.u32 %v3920_v48, 16  ;;  %v1024_v53 = vshll.u32 %v3920_v48, 16  ;;  %v4664_v55 = vld [vmem:[%s6397_s1 + $0x6b0] ss:$8 sps:$4 sm:$0xff]   ;;  %p4869_p11 = scmp.ne.s32.totalorder %s6356_s28, %s4868_s16  ;;  %p4876_p1 = scmp.lt.s32.totalorder %s4874_s24, %s4868_s16 }
  0xbc   : > { %3053 = vmatprep.subr.bf16.mxu0 %v4576_v6  ;;  %v4598_v6 = vld [vmem:[%s6397_s1 + $0x600] ss:$8 sps:$4 sm:$0xff]   ;;  %937 = vst.msk [vmem:[#allocation2 + $0x78] sm:$0xff] %vm398_vm1, %v933_v37  ;;  %v4697_v45 = vld [vmem:[%s6397_s1 + $0x730] ss:$8 sps:$4 sm:$0xff]  }
  0xbd   : > { %583 = vst.msk [vmem:[#allocation2 + $0x28] sm:$0xff] %vm398_vm1, %v579_v60  ;;  %2919 = vmatpush1.bf16.msra.mxu1 %v4643_v59  ;;  %v1023_v59 = vrot.slane %v1021_v51, 6  ;;  %v1026_v60 = vrot.slane %v1024_v53, 7  ;;  %v4708_v37 = vld [vmem:[%s6397_s1 + $0x764] ss:$8 sps:$4 sm:$0xff]   ;;  %p4870_p12 = pnand %p4869_p11, %p5023_p5  ;;  %p4877_p2 = por %p4876_p1, %p4875_p0 }
  0xbe   : > { %2920 = vmatprep.subr.bf16.mxu1 %v4651_v63  ;;  %v4732_v51 = vld [vmem:[%s6397_s1 + $0x7e4] ss:$8 sps:$4 sm:$0xff]   ;;  %v4790_v53 = vld [vmem:[%s6399_s3 + $0x20] ss:$8 sps:$4 sm:$0xff]   ;;  %v4807_v18 = vld [vmem:[%s6399_s3 + $0x74] ss:$8 sps:$4 sm:$0xff]  }
  0xbf   : > { %3054 = vmatpush1.bf16.msra.mxu0 %v4574_v54  ;;  %v4616_v54 = vld [vmem:[%s6397_s1 + $0x630] ss:$8 sps:$4 sm:$0xff]   ;;  %v4802_v58 = vld [vmem:[%s6399_s3 + $0x60] ss:$8 sps:$4 sm:$0xff]   ;;  %p4871_p13 = pneg %p4870_p12 }
  0xc0   : > { %3055 = vmatprep.subr.bf16.mxu0 %v4582_v35  ;;  %v4642_v35 = vld [vmem:[%s6397_s1 + $0x674] ss:$8 sps:$4 sm:$0xff]  }
  0xc1   : > { %2921 = vmatpush1.bf16.msra.mxu1 %v4649_v4  ;;  %v1069_v10 = vld [vmem:[#allocation2 + $0x68] sm:$0xff]  ;;  %p4878_p3 = pnand %p4877_p2, %p4871_p13 }
  0xc2   : > { %2922 = vmatprep.subr.bf16.mxu1 %v4657_v5 }
  0xc3   : > { %3056 = vmatpush1.bf16.msra.mxu0 %v4580_v46  ;;  %v4652_v46 = vld [vmem:[%s6397_s1 + $0x690] ss:$8 sps:$4 sm:$0xff]  }
  0xc4   : > { %3057 = vmatprep.subr.bf16.mxu0 %v4588_v50  ;;  %v1061_v12 = vld [vmem:[#allocation2 + $0x28] sm:$0xff] }
  0xc5   : > { %2932 = vmatprep.mubr.bf16.mxu1 %v1061_v12  ;;  %2923 = vmatpush1.bf16.msra.mxu1 %v4655_v8  ;;  %v4658_v50 = vld [vmem:[%s6397_s1 + $0x6a0] ss:$8 sps:$4 sm:$0xff]   ;;  %v1034_v8 = vcombine.low %v5686_v21, %v5703_v40  ;;  %v4687_v40 = vld [vmem:[%s6397_s1 + $0x6f4] ss:$8 sps:$4 sm:$0xff]  }
  0xc6   : > { %2924 = vmatprep.subr.bf16.mxu1 %v4663_v9  ;;  %v4682_v12 = vld [vmem:[%s6397_s1 + $0x6e0] ss:$8 sps:$4 sm:$0xff]  }
  0xc7   : > { %3058 = vmatpush1.bf16.msra.mxu0 %v4586_v56  ;;  %v4672_v56 = vld [vmem:[%s6397_s1 + $0x6c4] ss:$8 sps:$4 sm:$0xff]   ;;  %v5908_v11 = vrot.slane %v1034_v8, %v5112_v26 }
  0xc8   : > { %3059 = vmatprep.subr.bf16.mxu0 %v4594_v57  ;;  %v977_v57 = vcombine.high %v3920_v48, %v3920_v48  ;;  %v4727_v48 = vld [vmem:[%s6397_s1 + $0x7d0] ss:$8 sps:$4 sm:$0xff]   ;;  %v4804_v8 = vld [vmem:[%s6399_s3 + $0x64] ss:$8 sps:$4 sm:$0xff]  }
  0xc9   : > { %2925 = vmatpush1.bf16.msra.mxu1 %v4661_v29  ;;  %v1071_v29 = vld [vmem:[#allocation2 + $0x78] sm:$0xff] }
  0xca   : > { %v1030_v63 = vshll.u32 %v977_v57, 16  ;;  %v4735_v57 = vld [vmem:[%s6397_s1 + $0x7f4] ss:$8 sps:$4 sm:$0xff]  }
  0xcb   : > { %3060 = vmatpush1.bf16.msra.mxu0 %v4592_v0  ;;  %v4670_v0 = vld [vmem:[%s6397_s1 + $0x6c0] ss:$8 sps:$4 sm:$0xff]  }
  0xcc   : > { %3072 = vmatprep.subr.bf16.mxu0 %v4600_v2  ;;  %v4678_v2 = vld [vmem:[%s6397_s1 + $0x6d4] ss:$8 sps:$4 sm:$0xff]   ;;  %v1032_v5 = vrot.slane %v1030_v63, 7  ;;  %v4738_v63 = vld [vmem:[%s6397_s1 + $0x804] ss:$8 sps:$4 sm:$0xff]  }
  0xce   : > { %3062 = vmatmul.mubr.bf16.vlgmr.msra.gmra.mrb[0].mxu0 %v814_v1  ;;  %v4669_v1 = vld [vmem:[%s6397_s1 + $0x2d4] ss:$8 sps:$4 sm:$0xff]  }
  0xcf   : > { %3073 = vmatpush1.bf16.msra.mxu0 %v4598_v6  ;;  %3104 = vmatprep.mubr.bf16.mxu0 %v1069_v10  ;;  %v4684_v10 = vld [vmem:[%s6397_s1 + $0x6e4] ss:$8 sps:$4 sm:$0xff]  }
  0xd0   : > { %3074 = vmatprep.subr.bf16.mxu0 %v4606_v7  ;;  %2926 = vmatprep.subr.bf16.mxu1 %v4669_v1  ;;  %v4676_v7 = vld [vmem:[%s6397_s1 + $0x6d0] ss:$8 sps:$4 sm:$0xff]   ;;  %v4694_v1 = vld [vmem:[%s6397_s1 + $0x720] ss:$8 sps:$4 sm:$0xff]  }
  0xd1   : > { %2927 = vmatpush1.bf16.msra.mxu1 %v4667_v33  ;;  %v4705_v33 = vld [vmem:[%s6397_s1 + $0x754] ss:$8 sps:$4 sm:$0xff]  }
  0xd2   : > { %2928 = vmatprep.subr.bf16.mxu1 %v4675_v20  ;;  %v4703_v20 = vld [vmem:[%s6397_s1 + $0x750] ss:$8 sps:$4 sm:$0xff]  }
  0xd3   : > { %3075 = vmatpush1.bf16.msra.mxu0 %v4604_v13  ;;  %v4688_v13 = vld [vmem:[%s6397_s1 + $0x700] ss:$8 sps:$4 sm:$0xff]  }
  0xd4   : > { %3076 = vmatprep.subr.bf16.mxu0 %v4612_v15  ;;  %v4693_v15 = vld [vmem:[%s6397_s1 + $0x714] ss:$8 sps:$4 sm:$0xff]  }
  0xd5   : > { %2929 = vmatpush1.bf16.msra.mxu1 %v4673_v23  ;;  %v4709_v23 = vld [vmem:[%s6397_s1 + $0x770] ss:$8 sps:$4 sm:$0xff]  }
  0xd6   : > { %2930 = vmatprep.subr.bf16.mxu1 %v4681_v24  ;;  %v4714_v24 = vld [vmem:[%s6397_s1 + $0x784] ss:$8 sps:$4 sm:$0xff]  }
  0xd7   : > { %3077 = vmatpush1.bf16.msra.mxu0 %v4610_v61  ;;  %v4696_v61 = vld [vmem:[%s6397_s1 + $0x724] ss:$8 sps:$4 sm:$0xff]  }
  0xd8   : > { %3078 = vmatprep.subr.bf16.mxu0 %v4618_v16  ;;  %v4700_v16 = vld [vmem:[%s6397_s1 + $0x740] ss:$8 sps:$4 sm:$0xff]  }
  0xd9   : > { %2931 = vmatpush1.bf16.msra.mxu1 %v4679_v28  ;;  %v4715_v28 = vld [vmem:[%s6397_s1 + $0x790] ss:$8 sps:$4 sm:$0xff]  }
  0xdb   : > { %3079 = vmatpush1.bf16.msra.mxu0 %v4616_v54  ;;  %v4706_v54 = vld [vmem:[%s6397_s1 + $0x760] ss:$8 sps:$4 sm:$0xff]  }
  0xdc   : > { %3080 = vmatprep.subr.bf16.mxu0 %v4624_v22  ;;  %2933 = vmatmul.mubr.bf16.vlgmr.msra.gmra.mrb[0].mxu1 %v578_v62  ;;  %v1027_v62 = vor.u32 %v1026_v60, %v1023_v59  ;;  %v4711_v22 = vld [vmem:[%s6397_s1 + $0x774] ss:$8 sps:$4 sm:$0xff]   ;;  %v4793_v59 = vld [vmem:[%s6399_s3 + $0x30] ss:$8 sps:$4 sm:$0xff]   ;;  %v4798_v60 = vld [vmem:[%s6399_s3 + $0x44] ss:$8 sps:$4 sm:$0xff]  }
  0xde   : > { %v1028_v4 = vrot.slane %v1027_v62, 2  ;;  %v4733_v62 = vld [vmem:[%s6397_s1 + $0x7f0] ss:$8 sps:$4 sm:$0xff]  }
  0xdf   : > { %3081 = vmatpush1.bf16.msra.mxu0 %v4622_v25  ;;  %v4712_v25 = vld [vmem:[%s6397_s1 + $0x780] ss:$8 sps:$4 sm:$0xff]  }
  0xe0   : > { %3082 = vmatprep.subr.bf16.mxu0 %v4630_v27  ;;  %v1033_v6 = vsel %vm5504_vm8, %v1028_v4, %v1032_v5  ;;  %v4717_v27 = vld [vmem:[%s6397_s1 + $0x794] ss:$8 sps:$4 sm:$0xff]   ;;  %v4736_v4 = vld [vmem:[%s6397_s1 + $0x800] ss:$8 sps:$4 sm:$0xff]  }
  0xe1   : > { %v1035_v9 = vcombine.low %v5716_v47, %v1033_v6  ;;  %v4690_v47 = vld [vmem:[%s6397_s1 + $0x704] ss:$8 sps:$4 sm:$0xff]   ;;  %v4741_v5 = vld [vmem:[%s6397_s1 + $0x814] ss:$8 sps:$4 sm:$0xff]  }
  0xe3   : > { %3083 = vmatpush1.bf16.msra.mxu0 %v4628_v30  ;;  %v5911_v17 = vrot.slane %v1035_v9, %v5112_v26  ;;  %v4685_v26 = vld [vmem:[%s6397_s1 + $0x6f0] ss:$8 sps:$4 sm:$0xff]   ;;  %v4720_v30 = vld [vmem:[%s6397_s1 + $0x7a4] ss:$8 sps:$4 sm:$0xff]  }
  0xe4   : > { %3084 = vmatprep.subr.bf16.mxu0 %v4636_v32  ;;  %v4718_v32 = vld [vmem:[%s6397_s1 + $0x7a0] ss:$8 sps:$4 sm:$0xff]   ;;  %v4739_v9 = vld [vmem:[%s6397_s1 + $0x810] ss:$8 sps:$4 sm:$0xff]  }
  0xe5   : > { %v1051_v21 = vcombine.high %v5908_v11, %v5911_v17  ;;  %v1050_v14 = vcombine.low %v5908_v11, %v5911_v17  ;;  %v4817_v11 = vld [vmem:[%s6399_s3 + $0xb0] ss:$8 sps:$4 sm:$0xff]   ;;  %v4822_v17 = vld [vmem:[%s6401_s5 + $0x4] ss:$8 sps:$4 sm:$0xff]  }
  0xe7   : > { %3085 = vmatpush1.bf16.msra.mxu0 %v4634_v34  ;;  %1055 = vst.msk [vmem:[#allocation2 + $0x88] sm:$0xff] %vm398_vm1, %v1051_v21  ;;  %v4723_v34 = vld [vmem:[%s6397_s1 + $0x7b4] ss:$8 sps:$4 sm:$0xff]   ;;  %v4805_v21 = vld [vmem:[%s6399_s3 + $0x70] ss:$8 sps:$4 sm:$0xff]  }
  0xe8   : > { %3086 = vmatprep.subr.bf16.mxu0 %v4642_v35  ;;  %v4721_v35 = vld [vmem:[%s6397_s1 + $0x7b0] ss:$8 sps:$4 sm:$0xff]  }
  0xeb   : > { %3087 = vmatpush1.bf16.msra.mxu0 %v4640_v36  ;;  %v4726_v36 = vld [vmem:[%s6397_s1 + $0x7c4] ss:$8 sps:$4 sm:$0xff]  }
  0xec   : > { %3088 = vmatprep.subr.bf16.mxu0 %v4648_v38  ;;  %v4784_v38 = vld [vmem:[%s6399_s3] ss:$8 sps:$4 sm:$0xff]  }
  0xee   : > { %v1073_v6 = vld [vmem:[#allocation2 + $0x88] sm:$0xff] }
  0xef   : > { %3089 = vmatpush1.bf16.msra.mxu0 %v4646_v39  ;;  %v4786_v39 = vld [vmem:[%s6399_s3 + $0x4] ss:$8 sps:$4 sm:$0xff]  }
  0xf0   : > { %3090 = vmatprep.subr.bf16.mxu0 %v4654_v41  ;;  %v4724_v41 = vld [vmem:[%s6397_s1 + $0x7c0] ss:$8 sps:$4 sm:$0xff]   ;;  %3366 = vmatprep.subr.bf16.mxu1 %v4786_v39 }
  0xf1   : > { %3367 = vmatpush1.bf16.msra.mxu1 %v4784_v38  ;;  %v4781_v38 = vld [vmem:[%s6397_s1 + $0x8f0] ss:$8 sps:$4 sm:$0xff]  }
  0xf3   : > { %3091 = vmatpush1.bf16.msra.mxu0 %v4652_v46  ;;  %v4789_v46 = vld [vmem:[%s6399_s3 + $0x14] ss:$8 sps:$4 sm:$0xff]  }
  0xf4   : > { %3092 = vmatprep.subr.bf16.mxu0 %v4660_v49  ;;  %v4729_v49 = vld [vmem:[%s6397_s1 + $0x7d4] ss:$8 sps:$4 sm:$0xff]   ;;  %3368 = vmatprep.subr.bf16.mxu1 %v4789_v46 }
  0xf7   : > { %3093 = vmatpush1.bf16.msra.mxu0 %v4658_v50  ;;  %v4787_v50 = vld [vmem:[%s6399_s3 + $0x10] ss:$8 sps:$4 sm:$0xff]  }
  0xf8   : > { %3094 = vmatprep.subr.bf16.mxu0 %v4666_v44  ;;  %v4792_v44 = vld [vmem:[%s6399_s3 + $0x24] ss:$8 sps:$4 sm:$0xff]   ;;  %3369 = vmatpush1.bf16.msra.mxu1 %v4787_v50 }
  0xf9   : > { %3370 = vmatprep.subr.bf16.mxu1 %v4792_v44  ;;  %v4816_v50 = vld [vmem:[%s6399_s3 + $0xa4] ss:$8 sps:$4 sm:$0xff]   ;;  %v4814_v44 = vld [vmem:[%s6399_s3 + $0xa0] ss:$8 sps:$4 sm:$0xff]  }
  0xfb   : > { %3095 = vmatpush1.bf16.msra.mxu0 %v4664_v55  ;;  %v4795_v55 = vld [vmem:[%s6399_s3 + $0x34] ss:$8 sps:$4 sm:$0xff]  }
  0xfc   : > { %3096 = vmatprep.subr.bf16.mxu0 %v4672_v56  ;;  %v4730_v56 = vld [vmem:[%s6397_s1 + $0x7e0] ss:$8 sps:$4 sm:$0xff]   ;;  %3371 = vmatpush1.bf16.msra.mxu1 %v4790_v53  ;;  %v6210_v53 = vsub.s32 1, %v5086_v19 }
  0xfd   : > { %3372 = vmatprep.subr.bf16.mxu1 %v4795_v55 }
  0xff   : > { %3097 = vmatpush1.bf16.msra.mxu0 %v4670_v0  ;;  %v4796_v0 = vld [vmem:[%s6399_s3 + $0x40] ss:$8 sps:$4 sm:$0xff]  }
 0x100   : > { %3098 = vmatprep.subr.bf16.mxu0 %v4678_v2  ;;  %3373 = vmatpush1.bf16.msra.mxu1 %v4793_v59  ;;  %v4801_v2 = vld [vmem:[%s6399_s3 + $0x54] ss:$8 sps:$4 sm:$0xff]  }
 0x101   : > { %3374 = vmatprep.subr.bf16.mxu1 %v4798_v60 }
 0x103   : > { %3099 = vmatpush1.bf16.msra.mxu0 %v4676_v7  ;;  %v4799_v7 = vld [vmem:[%s6399_s3 + $0x50] ss:$8 sps:$4 sm:$0xff]  }
 0x104   : > { %3100 = vmatprep.subr.bf16.mxu0 %v4684_v10  ;;  %3375 = vmatpush1.bf16.msra.mxu1 %v4796_v0  ;;  %v4744_v10 = vld [vmem:[%s6397_s1 + $0x824] ss:$8 sps:$4 sm:$0xff]  }
 0x105   : > { %3376 = vmatprep.subr.bf16.mxu1 %v4801_v2 }
 0x107   : > { %3101 = vmatpush1.bf16.msra.mxu0 %v4682_v12  ;;  %v4747_v12 = vld [vmem:[%s6397_s1 + $0x834] ss:$8 sps:$4 sm:$0xff]  }
 0x108   : > { %3102 = vmatprep.subr.bf16.mxu0 %v4687_v40  ;;  %3377 = vmatpush1.bf16.msra.mxu1 %v4799_v7  ;;  %v4810_v40 = vld [vmem:[%s6399_s3 + $0x84] ss:$8 sps:$4 sm:$0xff]  }
 0x109   : > { %3378 = vmatprep.subr.bf16.mxu1 %v4804_v8 }
 0x10b   : > { %3103 = vmatpush1.bf16.msra.mxu0 %v4685_v26  ;;  %v4745_v26 = vld [vmem:[%s6397_s1 + $0x830] ss:$8 sps:$4 sm:$0xff]  }
 0x10c   : > { %3115 = vmatprep.subr.bf16.mxu0 %v4690_v47  ;;  %3379 = vmatpush1.bf16.msra.mxu1 %v4802_v58  ;;  %v4750_v47 = vld [vmem:[%s6397_s1 + $0x844] ss:$8 sps:$4 sm:$0xff]  }
 0x10d   : > { %3380 = vmatprep.subr.bf16.mxu1 %v4807_v18 }
 0x10e   : > { %3105 = vmatmul.mubr.bf16.vlgmr.msra.gmra.mrb[0].mxu0 %v873_v52  ;;  %v4702_v52 = vld [vmem:[%s6397_s1 + $0x744] ss:$8 sps:$4 sm:$0xff]  }
 0x10f   : > { %3116 = vmatpush1.bf16.msra.mxu0 %v4688_v13  ;;  %3147 = vmatprep.mubr.bf16.mxu0 %v1071_v29  ;;  %v4808_v13 = vld [vmem:[%s6399_s3 + $0x80] ss:$8 sps:$4 sm:$0xff]  }
 0x110   : > { %3117 = vmatprep.subr.bf16.mxu0 %v4693_v15  ;;  %3381 = vmatpush1.bf16.msra.mxu1 %v4805_v21  ;;  %v4813_v15 = vld [vmem:[%s6399_s3 + $0x94] ss:$8 sps:$4 sm:$0xff]   ;;  %v4748_v29 = vld [vmem:[%s6397_s1 + $0x840] ss:$8 sps:$4 sm:$0xff]  }
 0x111   : > { %3382 = vmatprep.subr.bf16.mxu1 %v4810_v40  ;;  %v4825_v21 = vld [vmem:[%s6401_s5 + $0x14] ss:$8 sps:$4 sm:$0xff]   ;;  %v4823_v40 = vld [vmem:[%s6401_s5 + $0x10] ss:$8 sps:$4 sm:$0xff]  }
 0x113   : > { %3118 = vmatpush1.bf16.msra.mxu0 %v4691_v31  ;;  %v4753_v31 = vld [vmem:[%s6397_s1 + $0x854] ss:$8 sps:$4 sm:$0xff]  }
 0x114   : > { %3119 = vmatprep.subr.bf16.mxu0 %v4696_v61  ;;  %3383 = vmatpush1.bf16.msra.mxu1 %v4808_v13  ;;  %v4811_v61 = vld [vmem:[%s6399_s3 + $0x90] ss:$8 sps:$4 sm:$0xff]   ;;  %v4831_v13 = vld [vmem:[%s6401_s5 + $0x34] ss:$8 sps:$4 sm:$0xff]  }
 0x115   : > { %3384 = vmatprep.subr.bf16.mxu1 %v4813_v15  ;;  %v4829_v15 = vld [vmem:[%s6401_s5 + $0x30] ss:$8 sps:$4 sm:$0xff]  }
 0x117   : > { %3120 = vmatpush1.bf16.msra.mxu0 %v4694_v1  ;;  %v4751_v1 = vld [vmem:[%s6397_s1 + $0x850] ss:$8 sps:$4 sm:$0xff]  }
 0x118   : > { %3121 = vmatprep.subr.bf16.mxu0 %v4699_v43  ;;  %v4756_v43 = vld [vmem:[%s6397_s1 + $0x864] ss:$8 sps:$4 sm:$0xff]   ;;  %3385 = vmatpush1.bf16.msra.mxu1 %v4811_v61  ;;  %v4837_v61 = vld [vmem:[%s6401_s5 + $0x54] ss:$8 sps:$4 sm:$0xff]  }
 0x119   : > { %3386 = vmatprep.subr.bf16.mxu1 %v4816_v50 }
 0x11b   : > { %3122 = vmatpush1.bf16.msra.mxu0 %v4697_v45  ;;  %v4754_v45 = vld [vmem:[%s6397_s1 + $0x860] ss:$8 sps:$4 sm:$0xff]  }
 0x11c   : > { %3123 = vmatprep.subr.bf16.mxu0 %v4702_v52  ;;  %v4759_v52 = vld [vmem:[%s6397_s1 + $0x874] ss:$8 sps:$4 sm:$0xff]   ;;  %3387 = vmatpush1.bf16.msra.mxu1 %v4814_v44 }
 0x11f   : > { %3124 = vmatpush1.bf16.msra.mxu0 %v4700_v16  ;;  %v4757_v16 = vld [vmem:[%s6397_s1 + $0x870] ss:$8 sps:$4 sm:$0xff]  }
 0x120   : > { %3125 = vmatprep.subr.bf16.mxu0 %v4705_v33  ;;  %v4762_v33 = vld [vmem:[%s6397_s1 + $0x884] ss:$8 sps:$4 sm:$0xff]  }
 0x123   : > { %3126 = vmatpush1.bf16.msra.mxu0 %v4703_v20  ;;  %v4760_v20 = vld [vmem:[%s6397_s1 + $0x880] ss:$8 sps:$4 sm:$0xff]  }
 0x124   : > { %3127 = vmatprep.subr.bf16.mxu0 %v4708_v37  ;;  %v4765_v37 = vld [vmem:[%s6397_s1 + $0x894] ss:$8 sps:$4 sm:$0xff]  }
 0x127   : > { %3128 = vmatpush1.bf16.msra.mxu0 %v4706_v54  ;;  %v4763_v54 = vld [vmem:[%s6397_s1 + $0x890] ss:$8 sps:$4 sm:$0xff]  }
 0x128   : > { %3129 = vmatprep.subr.bf16.mxu0 %v4711_v22  ;;  %v4768_v22 = vld [vmem:[%s6397_s1 + $0x8a4] ss:$8 sps:$4 sm:$0xff]  }
 0x12b   : > { %3130 = vmatpush1.bf16.msra.mxu0 %v4709_v23  ;;  %v4766_v23 = vld [vmem:[%s6397_s1 + $0x8a0] ss:$8 sps:$4 sm:$0xff]  }
 0x12c   : > { %3131 = vmatprep.subr.bf16.mxu0 %v4714_v24  ;;  %v4771_v24 = vld [vmem:[%s6397_s1 + $0x8b4] ss:$8 sps:$4 sm:$0xff]  }
 0x12f   : > { %3132 = vmatpush1.bf16.msra.mxu0 %v4712_v25  ;;  %v4769_v25 = vld [vmem:[%s6397_s1 + $0x8b0] ss:$8 sps:$4 sm:$0xff]  }
 0x130   : > { %3133 = vmatprep.subr.bf16.mxu0 %v4717_v27  ;;  %v4774_v27 = vld [vmem:[%s6397_s1 + $0x8c4] ss:$8 sps:$4 sm:$0xff]  }
 0x133   : > { %3134 = vmatpush1.bf16.msra.mxu0 %v4715_v28  ;;  %v4772_v28 = vld [vmem:[%s6397_s1 + $0x8c0] ss:$8 sps:$4 sm:$0xff]  }
 0x134   : > { %3135 = vmatprep.subr.bf16.mxu0 %v4720_v30  ;;  %v4777_v30 = vld [vmem:[%s6397_s1 + $0x8d4] ss:$8 sps:$4 sm:$0xff]  }
 0x137   : > { %3136 = vmatpush1.bf16.msra.mxu0 %v4718_v32  ;;  %v4775_v32 = vld [vmem:[%s6397_s1 + $0x8d0] ss:$8 sps:$4 sm:$0xff]  }
 0x138   : > { %3137 = vmatprep.subr.bf16.mxu0 %v4723_v34  ;;  %v4780_v34 = vld [vmem:[%s6397_s1 + $0x8e4] ss:$8 sps:$4 sm:$0xff]  }
 0x13b   : > { %3138 = vmatpush1.bf16.msra.mxu0 %v4721_v35  ;;  %v4778_v35 = vld [vmem:[%s6397_s1 + $0x8e0] ss:$8 sps:$4 sm:$0xff]  }
 0x13c   : > { %3139 = vmatprep.subr.bf16.mxu0 %v4726_v36  ;;  %v4783_v36 = vld [vmem:[%s6397_s1 + $0x8f4] ss:$8 sps:$4 sm:$0xff]  }
 0x13f   : > { %3140 = vmatpush1.bf16.msra.mxu0 %v4724_v41 }
 0x140   : > { %3141 = vmatprep.subr.bf16.mxu0 %v4729_v49 }
 0x143   : > { %3142 = vmatpush1.bf16.msra.mxu0 %v4727_v48  ;;  %v4819_v48 = vld [vmem:[%s6399_s3 + $0xb4] ss:$8 sps:$4 sm:$0xff]  }
 0x144   : > { %3143 = vmatprep.subr.bf16.mxu0 %v4732_v51  ;;  %3388 = vmatprep.subr.bf16.mxu1 %v4819_v48  ;;  %v1362_v51 = vld [vmem:[%s6398_s2] sm:$0x3] }
 0x145   : > { %3389 = vmatpush1.bf16.msra.mxu1 %v4817_v11 }
 0x146   : > { %3574 = vmatprep.subr.bf16.mxu1 %v4822_v17 }
 0x147   : > { %3144 = vmatpush1.bf16.msra.mxu0 %v4730_v56  ;;  %v1371_v56 = vrot.slane %v1362_v51, %v6210_v53 }
 0x148   : > { %3145 = vmatprep.subr.bf16.mxu0 %v4735_v57 }
 0x14b   : > { %3146 = vmatpush1.bf16.msra.mxu0 %v4733_v62 }
 0x14c   : > { %3158 = vmatprep.subr.bf16.mxu0 %v4738_v63 }
 0x14e   : > { %3148 = vmatmul.mubr.bf16.vlgmr.msra.gmra.mrb[0].mxu0 %v932_v42  ;;  %v4742_v42 = vld [vmem:[%s6397_s1 + $0x820] ss:$8 sps:$4 sm:$0xff]  }
 0x14f   : > { %3159 = vmatpush1.bf16.msra.mxu0 %v4736_v4  ;;  %3190 = vmatprep.mubr.bf16.mxu0 %v1073_v6 }
 0x150   : > { %3160 = vmatprep.subr.bf16.mxu0 %v4741_v5 }
 0x153   : > { %3161 = vmatpush1.bf16.msra.mxu0 %v4739_v9 }
 0x154   : > { %3162 = vmatprep.subr.bf16.mxu0 %v4744_v10 }
 0x157   : > { %3163 = vmatpush1.bf16.msra.mxu0 %v4742_v42 }
 0x158   : > { %3164 = vmatprep.subr.bf16.mxu0 %v4747_v12  ;;  %v4820_v12 = vld [vmem:[%s6401_s5] ss:$8 sps:$4 sm:$0xff]  }
 0x15b   : > { %3165 = vmatpush1.bf16.msra.mxu0 %v4745_v26  ;;  %v4828_v26 = vld [vmem:[%s6401_s5 + $0x24] ss:$8 sps:$4 sm:$0xff]  }
 0x15c   : > { %3166 = vmatprep.subr.bf16.mxu0 %v4750_v47  ;;  %v4826_v47 = vld [vmem:[%s6401_s5 + $0x20] ss:$8 sps:$4 sm:$0xff]  }
 0x15f   : > { %3167 = vmatpush1.bf16.msra.mxu0 %v4748_v29  ;;  %v4834_v29 = vld [vmem:[%s6401_s5 + $0x44] ss:$8 sps:$4 sm:$0xff]  }
 0x160   : > { %3168 = vmatprep.subr.bf16.mxu0 %v4753_v31  ;;  %v4832_v31 = vld [vmem:[%s6401_s5 + $0x40] ss:$8 sps:$4 sm:$0xff]  }
 0x163   : > { %3169 = vmatpush1.bf16.msra.mxu0 %v4751_v1  ;;  %v4835_v1 = vld [vmem:[%s6401_s5 + $0x50] ss:$8 sps:$4 sm:$0xff]  }
 0x164   : > { %3170 = vmatprep.subr.bf16.mxu0 %v4756_v43  ;;  %v4840_v43 = vld [vmem:[%s6401_s5 + $0x64] ss:$8 sps:$4 sm:$0xff]  }
 0x167   : > { %3171 = vmatpush1.bf16.msra.mxu0 %v4754_v45  ;;  %v4838_v45 = vld [vmem:[%s6401_s5 + $0x60] ss:$8 sps:$4 sm:$0xff]  }
 0x168   : > { %3172 = vmatprep.subr.bf16.mxu0 %v4759_v52  ;;  %v4843_v52 = vld [vmem:[%s6401_s5 + $0x74] ss:$8 sps:$4 sm:$0xff]  }
 0x16b   : > { %3173 = vmatpush1.bf16.msra.mxu0 %v4757_v16  ;;  %v4841_v16 = vld [vmem:[%s6401_s5 + $0x70] ss:$8 sps:$4 sm:$0xff]  }
 0x16c   : > { %3174 = vmatprep.subr.bf16.mxu0 %v4762_v33  ;;  %v4846_v33 = vld [vmem:[%s6401_s5 + $0x84] ss:$8 sps:$4 sm:$0xff]  }
 0x16f   : > { %3175 = vmatpush1.bf16.msra.mxu0 %v4760_v20  ;;  %v4844_v20 = vld [vmem:[%s6401_s5 + $0x80] ss:$8 sps:$4 sm:$0xff]  }
 0x170   : > { %3176 = vmatprep.subr.bf16.mxu0 %v4765_v37  ;;  %v4849_v37 = vld [vmem:[%s6401_s5 + $0x94] ss:$8 sps:$4 sm:$0xff]  }
 0x173   : > { %3177 = vmatpush1.bf16.msra.mxu0 %v4763_v54  ;;  %v4847_v54 = vld [vmem:[%s6401_s5 + $0x90] ss:$8 sps:$4 sm:$0xff]  }
 0x174   : > { %3178 = vmatprep.subr.bf16.mxu0 %v4768_v22  ;;  %v4852_v22 = vld [vmem:[%s6401_s5 + $0xa4] ss:$8 sps:$4 sm:$0xff]  }
 0x177   : > { %3179 = vmatpush1.bf16.msra.mxu0 %v4766_v23  ;;  %v4850_v23 = vld [vmem:[%s6401_s5 + $0xa0] ss:$8 sps:$4 sm:$0xff]  }
 0x178   : > { %3180 = vmatprep.subr.bf16.mxu0 %v4771_v24  ;;  %v4855_v24 = vld [vmem:[%s6401_s5 + $0xb4] ss:$8 sps:$4 sm:$0xff]  }
 0x17b   : > { %3181 = vmatpush1.bf16.msra.mxu0 %v4769_v25  ;;  %v4853_v25 = vld [vmem:[%s6401_s5 + $0xb0] ss:$8 sps:$4 sm:$0xff]  }
 0x17c   : > { %3182 = vmatprep.subr.bf16.mxu0 %v4774_v27  ;;  %v3231_v27 = vld [vmem:[%s6400_s4] sm:$0x3] }
 0x17f   : > { %3183 = vmatpush1.bf16.msra.mxu0 %v4772_v28 }
 0x180   : > { %3184 = vmatprep.subr.bf16.mxu0 %v4777_v30  ;;  %v3240_v30 = vrot.slane %v3231_v27, %v6210_v53 }
 0x183   : > { %3185 = vmatpush1.bf16.msra.mxu0 %v4775_v32 }
 0x184   : > { %3186 = vmatprep.subr.bf16.mxu0 %v4780_v34 }
 0x187   : > { %3187 = vmatpush1.bf16.msra.mxu0 %v4778_v35 }
 0x188   : > { %3188 = vmatprep.subr.bf16.mxu0 %v4783_v36 }
 0x18b   : > { %3189 = vmatpush1.bf16.msra.mxu0 %v4781_v38 }
 0x18e   : > { %3191 = vmatmul.mubr.bf16.vlgmr.msra.gmra.mrb[0].mxu0 %v1050_v14  ;;  %v6204_v14 = vsub.s32 0, %v5086_v19 }
 0x190   : > { %v1367_v55 = vrot.slane %v1362_v51, %v6204_v14  ;;  %v3236_v28 = vrot.slane %v3231_v27, %v6204_v14  ;;  %v4856_v51 = vld [vmem:[%s6403_s7] sm:$0xff]  }
 0x191   : > { %v3666_v27 = vld [vmem:[%s6404_s8] sm:$0x1] }
 0x1af   : > { %v2934_v39 = vpop.f32.mrb[0].mxu1 }
 0x1b0   : > { %v2936_v41 = vpop.f32.mrb[1].mxu1  ;;  %v4275_v57 = vadd.f32 %v2934_v39, %v1367_v55 }
 0x1b1   : > { %v2938_v46 = vpop.f32.mrb[2].mxu1  ;;  %v4277_v59 = vadd.f32 %v2936_v41, %v1371_v56 }
 0x1b2   : > { %v2940_v49 = vpop.f32.mrb[3].mxu1  ;;  %v4279_v62 = vadd.f32 %v2938_v46, %v1367_v55  ;;  %v4857_v55 = vld [vmem:[%s6403_s7 + $0x8] sm:$0xff]  }
 0x1b3   : > { %v4281_v2 = vadd.f32 %v2940_v49, %v1371_v56  ;;  %v4858_v56 = vld [vmem:[%s6403_s7 + $0x10] sm:$0xff]  }
 0x261   : > { %v3192_v60 = vpop.f32.mrb[0].mxu0 }
 0x262   : > { %v4276_v63 = vadd.f32 %v4275_v57, %v3192_v60  ;;  %v3194_v0 = vpop.f32.mrb[1].mxu0  ;;  %v4859_v57 = vld [vmem:[%s6403_s7 + $0x18] sm:$0xff]   ;;  %v4861_v60 = vld [vmem:[%s6403_s7 + $0x28] sm:$0xff]  }
 0x263   : > { %v4278_v4 = vadd.f32 %v4277_v59, %v3194_v0  ;;  %v3196_v5 = vpop.f32.mrb[2].mxu0  ;;  %v4860_v59 = vld [vmem:[%s6403_s7 + $0x20] sm:$0xff]  }
 0x264   : > { %v4280_v6 = vadd.f32 %v4279_v62, %v3196_v5  ;;  %v3198_v7 = vpop.f32.mrb[3].mxu0  ;;  %v3201_v9 = vmax.f32 %v4276_v63, 0.0  ;;  %v4862_v62 = vld [vmem:[%s6403_s7 + $0x30] sm:$0xff]   ;;  %v4863_v63 = vld [vmem:[%s6403_s7 + $0x38] sm:$0xff]   ;;  %v4864_v0 = vld [vmem:[%s6403_s7 + $0x40] sm:$0xff]  }
 0x265   : > { %v4282_v8 = vadd.f32 %v4281_v2, %v3198_v7  ;;  %v3202_v19 = vmax.f32 %v4278_v4, 0.0  ;;  %v4865_v2 = vld [vmem:[%s6403_s7 + $0x48] sm:$0xff]   ;;  %v4866_v4 = vld [vmem:[%s6403_s7 + $0x50] sm:$0xff]   ;;  %v4867_v5 = vld [vmem:[%s6403_s7 + $0x58] sm:$0xff]  }
 0x266   : > { %v3203_v10 = vmax.f32 %v4280_v6, 0.0  ;;  %v3439_v6 = vld [vmem:[%s6402_s6] sm:$0x3] }
 0x267   : > { %v3204_v58 = vmax.f32 %v4282_v8, 0.0  ;;  %v3444_v7 = vrot.slane %v3439_v6, %v6204_v14  ;;  %v3448_v8 = vrot.slane %v3439_v6, %v6210_v53 }
 0x268   : > { %v3205_v18 = vpack.c.bf16 %v3203_v10, %v3201_v9 }
 0x269   : > { %v3206_v42 = vpack.c.bf16 %v3204_v58, %v3202_v19 }
 0x26b   : > { %4233 = vmatprep.mubr.msk.bf16.mxu1 %vm398_vm1, %v3206_v42 }
 0x26c   : > { %3399 = vmatmul.mubr.bf16.vlgmr.msra.gmra.mrb[4].mxu1 %v3205_v18 }
 0x26d   : > { %3575 = vmatpush1.bf16.msra.mxu1 %v4820_v12 }
 0x26e   : > { %3576 = vmatprep.subr.bf16.mxu1 %v4825_v21 }
 0x271   : > { %3577 = vmatpush1.bf16.msra.mxu1 %v4823_v40 }
 0x272   : > { %3578 = vmatprep.subr.bf16.mxu1 %v4828_v26 }
 0x275   : > { %3579 = vmatpush1.bf16.msra.mxu1 %v4826_v47 }
 0x276   : > { %3580 = vmatprep.subr.bf16.mxu1 %v4831_v13 }
 0x279   : > { %3581 = vmatpush1.bf16.msra.mxu1 %v4829_v15 }
 0x27a   : > { %3582 = vmatprep.subr.bf16.mxu1 %v4834_v29 }
 0x27d   : > { %3583 = vmatpush1.bf16.msra.mxu1 %v4832_v31 }
 0x27e   : > { %3584 = vmatprep.subr.bf16.mxu1 %v4837_v61 }
 0x281   : > { %3585 = vmatpush1.bf16.msra.mxu1 %v4835_v1 }
 0x282   : > { %3586 = vmatprep.subr.bf16.mxu1 %v4840_v43 }
 0x285   : > { %3587 = vmatpush1.bf16.msra.mxu1 %v4838_v45 }
 0x286   : > { %3588 = vmatprep.subr.bf16.mxu1 %v4843_v52 }
 0x289   : > { %3589 = vmatpush1.bf16.msra.mxu1 %v4841_v16 }
 0x28a   : > { %3590 = vmatprep.subr.bf16.mxu1 %v4846_v33 }
 0x28d   : > { %3591 = vmatpush1.bf16.msra.mxu1 %v4844_v20 }
 0x28e   : > { %3592 = vmatprep.subr.bf16.mxu1 %v4849_v37 }
 0x291   : > { %3593 = vmatpush1.bf16.msra.mxu1 %v4847_v54 }
 0x292   : > { %3594 = vmatprep.subr.bf16.mxu1 %v4852_v22 }
 0x295   : > { %3595 = vmatpush1.bf16.msra.mxu1 %v4850_v23 }
 0x296   : > { %3596 = vmatprep.subr.bf16.mxu1 %v4855_v24 }
 0x299   : > { %3597 = vmatpush1.bf16.msra.mxu1 %v4853_v25 }
 0x29a   : > { %3742 = vmatprep.subr.bf16.mxu1 %v4932_v3 }
 0x33f   : > { %v3400_v32 = vpop.f32.mrb[4].mxu1 }
 0x340   : > { %v3401_v34 = vadd.f32 %v3400_v32, %v3236_v28  ;;  %v3402_v35 = vpop.f32.mrb[5].mxu1 }
 0x341   : > { %v3403_v36 = vadd.f32 %v3402_v35, %v3240_v30  ;;  %v3404_v38 = vpop.f32.mrb[6].mxu1 }
 0x342   : > { %v3405_v39 = vadd.f32 %v3404_v38, %v3236_v28  ;;  %v3406_v41 = vpop.f32.mrb[7].mxu1  ;;  %v3409_v49 = vmax.f32 %v3401_v34, 0.0 }
 0x343   : > { %v3407_v46 = vadd.f32 %v3406_v41, %v3240_v30  ;;  %v3410_v44 = vmax.f32 %v3403_v36, 0.0 }
 0x344   : > { %v3411_v50 = vmax.f32 %v3405_v39, 0.0 }
 0x345   : > { %v3412_v48 = vmax.f32 %v3407_v46, 0.0 }
 0x346   : > { %v3413_v11 = vpack.c.bf16 %v3411_v50, %v3409_v49 }
 0x347   : > { %v3414_v17 = vpack.c.bf16 %v3412_v48, %v3410_v44 }
 0x349   : > { %4258 = vmatprep.mubr.msk.bf16.mxu1 %vm398_vm1, %v3414_v17 }
 0x34a   : > { %3607 = vmatmul.mubr.bf16.vlgmr.msra.gmra.mrb[8].mxu1 %v3413_v11 }
 0x34b   : > { %3743 = vmatpush1.bf16.msra.mxu1 %v4856_v51 }
 0x34c   : > { %3744 = vmatprep.subr.bf16.mxu1 %v4932_v3 }
 0x34f   : > { %3745 = vmatpush1.bf16.msra.mxu1 %v4857_v55 }
 0x350   : > { %3746 = vmatprep.subr.bf16.mxu1 %v4932_v3 }
 0x353   : > { %3747 = vmatpush1.bf16.msra.mxu1 %v4858_v56 }
 0x354   : > { %3748 = vmatprep.subr.bf16.mxu1 %v4932_v3 }
 0x357   : > { %3749 = vmatpush1.bf16.msra.mxu1 %v4859_v57 }
 0x358   : > { %3750 = vmatprep.subr.bf16.mxu1 %v4932_v3 }
 0x35b   : > { %3751 = vmatpush1.bf16.msra.mxu1 %v4860_v59 }
 0x35c   : > { %3752 = vmatprep.subr.bf16.mxu1 %v4932_v3 }
 0x35f   : > { %3753 = vmatpush1.bf16.msra.mxu1 %v4861_v60 }
 0x360   : > { %3754 = vmatprep.subr.bf16.mxu1 %v4932_v3 }
 0x363   : > { %3755 = vmatpush1.bf16.msra.mxu1 %v4862_v62 }
 0x364   : > { %3756 = vmatprep.subr.bf16.mxu1 %v4932_v3 }
 0x367   : > { %3757 = vmatpush1.bf16.msra.mxu1 %v4863_v63 }
 0x368   : > { %3758 = vmatprep.subr.bf16.mxu1 %v4932_v3 }
 0x36b   : > { %3759 = vmatpush1.bf16.msra.mxu1 %v4864_v0 }
 0x36c   : > { %3760 = vmatprep.subr.bf16.mxu1 %v4932_v3 }
 0x36f   : > { %3761 = vmatpush1.bf16.msra.mxu1 %v4865_v2 }
 0x370   : > { %3762 = vmatprep.subr.bf16.mxu1 %v4932_v3 }
 0x373   : > { %3763 = vmatpush1.bf16.msra.mxu1 %v4866_v4 }
 0x374   : > { %3764 = vmatprep.subr.bf16.mxu1 %v4932_v3 }
 0x377   : > { %3765 = vmatpush1.bf16.msra.mxu1 %v4867_v5 }
 0x41d   : > { %v3608_v9 = vpop.f32.mrb[8].mxu1 }
 0x41e   : > { %v3609_v10 = vadd.f32 %v3608_v9, %v3444_v7  ;;  %v3610_v19 = vpop.f32.mrb[9].mxu1 }
 0x41f   : > { %v3611_v58 = vadd.f32 %v3610_v19, %v3448_v8  ;;  %v3612_v18 = vpop.f32.mrb[10].mxu1 }
 0x420   : > { %v3613_v42 = vadd.f32 %v3612_v18, %v3444_v7  ;;  %v3614_v12 = vpop.f32.mrb[11].mxu1  ;;  %v3617_v26 = vmax.f32 %v3609_v10, 0.0 }
 0x421   : > { %v3618_v21 = vmax.f32 %v3611_v58, 0.0  ;;  %v3615_v40 = vadd.f32 %v3614_v12, %v3448_v8 }
 0x422   : > { %v3619_v3 = vmax.f32 %v3613_v42, 0.0 }
 0x423   : > { %v3620_v47 = vmax.f32 %v3615_v40, 0.0  ;;  %v3628_v15 = vsel %vm398_vm1, %v3618_v21, 0.0 }
 0x424   : > { %v3621_v13 = vadd.f32 %v3619_v3, %v3617_v26 }
 0x425   : > { %v3629_v29 = vsel %vm398_vm1, %v3620_v47, 0.0 }
 0x426   : > { %v3622_v14 = vrot.slane %v3621_v13, 4  ;;  %v3630_v31 = vadd.f32 %v3629_v29, %v3628_v15 }
 0x428   : > { %v3623_v53 = vadd.f32 %v3622_v14, %v3621_v13  ;;  %v3631_v61 = vrot.slane %v3630_v31, 4 }
 0x42a   : > { %v3624_v1 = vrot.slane %v3623_v53, 2  ;;  %v3632_v43 = vadd.f32 %v3631_v61, %v3630_v31 }
 0x42c   : > { %v3625_v45 = vadd.f32 %v3624_v1, %v3623_v53  ;;  %v3633_v52 = vrot.slane %v3632_v43, 2 }
 0x42e   : > { %v3626_v16 = vrot.slane %v3625_v45, 1  ;;  %v3634_v33 = vadd.f32 %v3633_v52, %v3632_v43 }
 0x430   : > { %v3635_v20 = vrot.slane %v3634_v33, 1  ;;  %v3627_v37 = vadd.f32 %v3626_v16, %v3625_v45 }
 0x432   : > { %v3636_v54 = vadd.f32 %v3635_v20, %v3634_v33  ;;  %v3638_v22 = vmul.f32 0.0625, %v3627_v37 }
 0x434   : > { %v3639_v23 = vmul.f32 0.0625, %v3636_v54  ;;  %v3640_v25 = vpack.c.bf16 %v3638_v22, %v3638_v22 }
 0x436   : > { %v3641_v24 = vpack.c.bf16 %v3639_v23, %v3639_v23 }
 0x438   : > { %4271 = vmatprep.mubr.msk.bf16.mxu1 %vm398_vm1, %v3641_v24 }
 0x439   : > { %3775 = vmatmul.mubr.bf16.vlgmr.msra.gmra.mrb[12].mxu1 %v3640_v25 }
 0x50c   : > { %v3776_v28 = vpop.f32.mrb[12].mxu1 }
 0x50d   : > { %v3777_v30 = vadd.f32 %v3776_v28, %v3666_v27  ;;  %v3778_v32 = vpop.f32.mrb[13].mxu1 }
 0x50e   : > { %v3779_v34 = vpop.f32.mrb[14].mxu1 }
 0x50f   : > { %v3780_v35 = vpop.f32.mrb[15].mxu1  ;;  %3783 = vst.msk [vmem:[%s324_s17] sm:$0x1] %vm3782_vm9, %v3777_v30 }
 0x510   : > { %4881 = shalt.err (!%p4878_p3)
}
 0x511   : > { %s4882_s23 = scalar_lea.hbm %s6354_s14, 16  ;;  %s4886_s17 = scalar_lea.hbm %s6405_s9, 32 }
 0x512   : > { %p4883_p4 = scmp.ne.s32.totalorder %s6354_s14, %s4882_s23  ;;  %p4887_p9 = scmp.lt.u32.totalorder %s6354_s14, %s6405_s9 }
 0x513   : > { %p4888_p10 = scmp.lt.u32.totalorder %s4886_s17, %s4882_s23  ;;  %p4890_p12 = scmp.lt.u32.totalorder %s4882_s23, %s6354_s14 }
 0x514   : > { %p4884_p7 = pnand %p4883_p4, %p5023_p5 }
 0x515   : > { %p4889_p11 = por %p4888_p10, %p4887_p9 }
 0x516   : > { %p4885_p8 = pneg %p4884_p7 }
 0x517   : > { %p4891_p13 = por %p4890_p12, %p4889_p11 }
 0x519   : > { %p4892_p0 = pnand %p4891_p13, %p4885_p8 }
 0x51b   : > { %4895 = shalt.err (!%p4892_p0)
}
 0x51c   : > { %4312 = dma.vmem_to_hbm [thread:$0]  (%p5023_p5), %s6356_s28, 16, %s6354_s14, %s3785_s13  }
 0x51d PF: > { %p4318_p1 = scmp.ge.s32.totalorder %s4930_s12, 2  ;;  %s3809_s16 = sand.u32 1, %s4918_s30  }
 0x51e   : > { %s3810_s21 = scalar_lea.sflag [#allocation4], %s3809_s16 }
 0x51f   : > { %p4315_p2 = pnand %p4318_p1, %p5027_p6 }
 0x521   : > { %4913 = dma.done.wait (!%p4315_p2), %s3810_s21, 16  }
 0x522   : > { %4915 = vsyncadd (!%p4315_p2), %s3810_s21, 4294967280  ;;  %p19_p3 = scmp.ge.s32.totalorder %s5010_s15, 4   ;;  %s6414_s30 = smov %s4922_s10 }
 0x523   : > { %s6415_s10 = smov %s4926_s11  ;;  %s6416_s11 = smov %s5021_s18 }
 0x524   : > { %s6417_s12 = smov %s5010_s15  ;;  %21 = sbr.rel (!%p19_p3) target bundleno = 3 (0x3), region = 96 }
 0x52b   :  { %3814 = vsyncpa [#allocation4], 1 }
 0x52c   :  { %3816 = vsyncpa [#allocation4 + $0x1], 1 }

</bundles_post_ra>
